<compile_context>
chip_gen: v5e
topology: v5e:2x2
jax: 0.10.0
libtpu: 0.0.40
codegen_flags: <defaults>
</compile_context>

<pallas_src>
import functools

import jax
import jax.numpy as jnp
from jax import lax
from jax.experimental import pallas as pl
from jax.experimental.pallas import tpu as pltpu

LANE = 128


def _round_up(n, m=LANE):
    return ((n + m - 1) // m) * m


def _pad_axis(a, axis, new_size):
    pad = new_size - a.shape[axis]
    if pad == 0:
        return a
    widths = [(0, 0)] * a.ndim
    widths[axis] = (0, pad)
    return jnp.pad(a, widths)


def _largest_divisor_leq(n, m):
    for d in range(min(n, m), 0, -1):
        if n % d == 0:
            return d
    return 1


# ------------------------------- kernel body -------------------------------
def bottleneck_kernel(x_ref, xtop_ref, xbot_ref,
                      w1_ref, b1_ref, w2_ref, b2_ref, w3_ref, b3_ref,
                      o_ref, h1_ref, xcol_ref, *, W, BR, Pp):
    b = pl.program_id(1)
    nb = pl.num_programs(1)
    M = BR * W
    Cin_p = x_ref.shape[-1]
    Cout_p = o_ref.shape[-1]

    w1 = w1_ref[...]
    b1 = b1_ref[...]

    def conv1_relu(v):                      # v: (rows, Cin_p) bf16 -> f32
        h = jnp.dot(v, w1, preferred_element_type=jnp.float32)
        return jnp.maximum(h + b1, 0.0)

    # ---- conv1 (1x1) + folded bn1 + relu on the band and the two halo rows.
    # Halo rows are zeroed at the image top/bottom, reproducing the SAME zero
    # padding of the conv2 input feature map.
    xb = x_ref[0].reshape(M, Cin_p)          # (M, Cin_p) bf16, residual source
    h1_ref[W:W + M, :] = conv1_relu(xb)
    top = conv1_relu(xtop_ref[0, 0])         # (W, Pp) f32
    h1_ref[0:W, :] = jnp.where(b > 0, top, jnp.zeros_like(top))
    bot = conv1_relu(xbot_ref[0, 0])
    h1_ref[W + M:W + 2 * W + M - W, :] = jnp.where(b < nb - 1, bot,
                                                   jnp.zeros_like(bot))

    # Left/right image-boundary masks for the dx = +-1 taps (vertical masking
    # is handled by the halo rows, so no dy masks are needed).
    xx = lax.broadcasted_iota(jnp.int32, (M, 1), 0) % W
    mask_l = xx >= 1          # reading column x-1 is valid
    mask_r = xx <= W - 2      # reading column x+1 is valid

    # ---- conv2 (3x3, SAME) + folded bn2 + relu.
    # Stream the 9 im2col taps (static dy slices of h1_ext + XLU rolls for dx,
    # masked at the left/right image edge) into the bf16 xcol scratch, then do
    # a single fat K = 9*Pp matmul on the MXU.
    k = 0
    for dy in (-1, 0, 1):
        base = h1_ref[(1 + dy) * W:(1 + dy) * W + M, :]      # (M, Pp) f32
        for dx in (-1, 0, 1):
            if dx == 0:
                tap = base
            else:
                rolled = pltpu.roll(base, shift=(-dx) % M, axis=0)
                mask = mask_l if dx == -1 else mask_r
                tap = jnp.where(mask, rolled, 0.0)
            xcol_ref[:, k * Pp:(k + 1) * Pp] = tap.astype(jnp.bfloat16)
            k += 1

    h2 = jnp.dot(xcol_ref[...], w2_ref[...],
                 preferred_element_type=jnp.float32)
    h2 = jnp.maximum(h2 + b2_ref[...], 0.0).astype(jnp.bfloat16)

    # ---- conv3 (1x1) + folded bn3 + residual add + relu (residual in f32).
    h3 = jnp.dot(h2, w3_ref[...], preferred_element_type=jnp.float32)
    h3 = h3 + b3_ref[...] + xb.astype(jnp.float32)
    o_ref[0] = jnp.maximum(h3, 0.0).astype(o_ref.dtype).reshape(BR, W, Cout_p)


# ---------------------------- parameter folding ----------------------------
def fold_bottleneck_params(params, eps=1e-3):
    """Fold BN scales into conv weights, transpose to (Cin, Cout), pad to 128."""
    P = params["conv1_w"].shape[0]
    Cin = params["conv1_w"].shape[1]
    Cout = params["conv3_w"].shape[0]
    Cin_p, Pp, Cout_p = _round_up(Cin), _round_up(P), _round_up(Cout)

    def fold(g, beta, m, v, conv_b):
        scale = g / jnp.sqrt(v + eps)
        bias = beta - m * scale + conv_b * scale
        return scale, bias

    s1, b1 = fold(params["bn1_g"], params["bn1_b"], params["bn1_m"],
                  params["bn1_v"], params["conv1_b"])
    w1 = jnp.transpose(params["conv1_w"][:, :, 0, 0], (1, 0)) * s1[None, :]
    w1 = _pad_axis(_pad_axis(w1, 0, Cin_p), 1, Pp).astype(jnp.bfloat16)
    b1 = _pad_axis(b1, 0, Pp).reshape(1, Pp).astype(jnp.float32)

    s2, b2 = fold(params["bn2_g"], params["bn2_b"], params["bn2_m"],
                  params["bn2_v"], params["conv2_b"])
    w2 = jnp.transpose(params["conv2_w"], (2, 3, 1, 0)) * s2[None, None, None, :]
    w2 = _pad_axis(_pad_axis(w2, 2, Pp), 3, Pp)              # (3, 3, Pp, Pp)
    w2 = w2.reshape(9 * Pp, Pp).astype(jnp.bfloat16)         # rows = (ky,kx,cin)
    b2 = _pad_axis(b2, 0, Pp).reshape(1, Pp).astype(jnp.float32)

    s3, b3 = fold(params["bn3_g"], params["bn3_b"], params["bn3_m"],
                  params["bn3_v"], params["conv3_b"])
    w3 = jnp.transpose(params["conv3_w"][:, :, 0, 0], (1, 0)) * s3[None, :]
    w3 = _pad_axis(_pad_axis(w3, 0, Pp), 1, Cout_p).astype(jnp.bfloat16)
    b3 = _pad_axis(b3, 0, Cout_p).reshape(1, Cout_p).astype(jnp.float32)

    return (w1, b1, w2, b2, w3, b3), (Cin_p, Pp, Cout_p)


# ------------------------- channel-last entry point -------------------------
def bottleneck_pallas_nhwc(x_nhwc_p, folded, *, band_rows=8):
    """x_nhwc_p: (N, H, W, Cin_p) bf16, channels zero-padded to a multiple of
    128.  Returns (N, H, W, Cout_p) bf16.  Chain-friendly: no layout passes."""
    w1, b1, w2, b2, w3, b3 = folded
    N, H, W, Cin_p = x_nhwc_p.shape
    Pp = w1.shape[1]
    Cout_p = w3.shape[1]
    assert Cin_p == Cout_p, "residual add requires Cin_p == Cout_p"

    BR = _largest_divisor_leq(H, band_rows)   # rows per band (divides H)
    nb = H // BR
    M = BR * W

    def const(*shape):
        return pl.BlockSpec(shape, lambda n, b, _s=len(shape): (0,) * _s)

    flops = 2 * N * H * W * (Cin_p * Pp + 9 * Pp * Pp + Pp * Cout_p)
    bytes_accessed = (N * H * W * (Cin_p + Cout_p) * 2
                      + (w1.size + w2.size + w3.size) * 2
                      + (b1.size + b2.size + b3.size) * 4)

    kern = functools.partial(bottleneck_kernel, W=W, BR=BR, Pp=Pp)

    # TODO(synk): weight/bias inputs have constant index_maps; on v7x they could
    #             be single-buffered (pipeline_mode) to shave a little VMEM.
    return pl.pallas_call(
        kern,
        out_shape=jax.ShapeDtypeStruct((N, H, W, Cout_p), jnp.bfloat16),
        grid_spec=pltpu.PrefetchScalarGridSpec(
            num_scalar_prefetch=0,
            grid=(N, nb),
            in_specs=[
                # band of BR rows
                pl.BlockSpec((1, BR, W, Cin_p), lambda n, b: (n, b, 0, 0)),
                # 1-row top halo (clamped; zeroed in-kernel when b == 0)
                pl.BlockSpec((1, 1, W, Cin_p),
                             lambda n, b: (n, jnp.maximum(b * BR - 1, 0), 0, 0)),
                # 1-row bottom halo (clamped; zeroed in-kernel when b == nb-1)
                pl.BlockSpec((1, 1, W, Cin_p),
                             lambda n, b: (n, jnp.minimum((b + 1) * BR, H - 1),
                                           0, 0)),
                const(Cin_p, Pp), const(1, Pp),        # conv1 / bn1 (folded)
                const(9 * Pp, Pp), const(1, Pp),       # conv2 / bn2 (folded)
                const(Pp, Cout_p), const(1, Cout_p),   # conv3 / bn3 (folded)
            ],
            out_specs=pl.BlockSpec((1, BR, W, Cout_p), lambda n, b: (n, b, 0, 0)),
            scratch_shapes=[
                pltpu.VMEM(((BR + 2) * W, Pp), jnp.float32),   # h1 band + halo
                pltpu.VMEM((M, 9 * Pp), jnp.bfloat16),         # im2col slab
            ],
        ),
        compiler_params=pltpu.CompilerParams(
            dimension_semantics=("parallel", "parallel"),
            vmem_limit_bytes=32 * 1024 * 1024),
        cost_estimate=pl.CostEstimate(flops=flops, transcendentals=0,
                                      bytes_accessed=bytes_accessed),
    )(x_nhwc_p, x_nhwc_p, x_nhwc_p, w1, b1, w2, b2, w3, b3)


# ------------------------- NCHW convenience wrapper -------------------------
def bottleneck_pallas(x_nchw, params, *, band_rows=8):
    N, Cin, H, W = x_nchw.shape
    Cout = params["conv3_w"].shape[0]
    assert Cin == Cout, "downsample=None / stride=1 requires inplanes == planes*4"
    folded, (Cin_p, _, _) = fold_bottleneck_params(params)
    # One-time layout conversion + channel pad (bf16).  For chained bottleneck
    # blocks keep activations in (N, H, W, Cpad) bf16 and call
    # bottleneck_pallas_nhwc directly so this happens once per network.
    x = jnp.transpose(x_nchw, (0, 2, 3, 1)).astype(jnp.bfloat16)
    x = _pad_axis(x, 3, Cin_p)
    out = bottleneck_pallas_nhwc(x, folded, band_rows=band_rows)
    out = out[:, :, :, :Cout].astype(jnp.float32)
    return jnp.transpose(out, (0, 3, 1, 2))


# ----------------------------- pure-JAX reference -----------------------------
def bottleneck_ref(x_nchw, params):
    x = jnp.transpose(x_nchw, (0, 2, 3, 1)).astype(jnp.float32)
    dn = ("NHWC", "HWIO", "NHWC")

    def conv(h, w_oihw, b):
        w = jnp.transpose(w_oihw, (2, 3, 1, 0))  # HWIO
        y = lax.conv_general_dilated(h, w, (1, 1), "VALID", dimension_numbers=dn)
        return y + b.reshape(1, 1, 1, -1)

    def bn(h, g, bt, m, v, eps=1e-3):
        return (h - m) / jnp.sqrt(v + eps) * g + bt

    h = jax.nn.relu(bn(conv(x, params["conv1_w"], params["conv1_b"]),
                       params["bn1_g"], params["bn1_b"],
                       params["bn1_m"], params["bn1_v"]))
    h = jnp.pad(h, ((0, 0), (1, 1), (1, 1), (0, 0)))           # SamePad2d(3,1)
    h = jax.nn.relu(bn(conv(h, params["conv2_w"], params["conv2_b"]),
                       params["bn2_g"], params["bn2_b"],
                       params["bn2_m"], params["bn2_v"]))
    h = bn(conv(h, params["conv3_w"], params["conv3_b"]),
           params["bn3_g"], params["bn3_b"], params["bn3_m"], params["bn3_v"])
    h = jax.nn.relu(h + x)
    return jnp.transpose(h, (0, 3, 1, 2))


# ---------------------------------- params ----------------------------------
def make_params(key, inplanes, planes):
    Cout = planes * 4
    ks = jax.random.split(key, 16)

    def nrm(k, shape, s):
        return (s * jax.random.normal(k, shape)).astype(jnp.float32)

    return {
        "conv1_w": nrm(ks[0], (planes, inplanes, 1, 1), inplanes ** -0.5),
        "conv1_b": nrm(ks[1], (planes,), 0.1),
        "bn1_g": 1.0 + nrm(ks[2], (planes,), 0.1),
        "bn1_b": nrm(ks[3], (planes,), 0.1),
        "bn1_m": nrm(ks[4], (planes,), 0.1),
        "bn1_v": 1.0 + 0.2 * jax.random.uniform(ks[5], (planes,), jnp.float32),
        "conv2_w": nrm(ks[6], (planes, planes, 3, 3), (9 * planes) ** -0.5),
        "conv2_b": nrm(ks[7], (planes,), 0.1),
        "bn2_g": 1.0 + nrm(ks[8], (planes,), 0.1),
        "bn2_b": nrm(ks[9], (planes,), 0.1),
        "bn2_m": nrm(ks[10], (planes,), 0.1),
        "bn2_v": 1.0 + 0.2 * jax.random.uniform(ks[11], (planes,), jnp.float32),
        "conv3_w": nrm(ks[12], (Cout, planes, 1, 1), planes ** -0.5),
        "conv3_b": nrm(ks[13], (Cout,), 0.1),
        "bn3_g": 1.0 + nrm(ks[14], (Cout,), 0.1),
        "bn3_b": nrm(ks[15], (Cout,), 0.1),
        "bn3_m": jnp.linspace(-0.1, 0.1, Cout, dtype=jnp.float32),
        "bn3_v": 1.0 + jnp.linspace(0.0, 0.2, Cout, dtype=jnp.float32),
    }


# ----------------------------------- main -----------------------------------
if __name__ == "__main__":
    # (N, inplanes, planes, H, W): a small case (2 row-bands, batch grid, edge
    # masks) and a production-shaped ResNet layer1 case (56x56, 256 channels).
    cases = [(2, 16, 4, 16, 16), (1, 256, 64, 56, 56)]
    key = jax.random.PRNGKey(0)

    for (N, inplanes, planes, H, W) in cases:
        Cout = planes * 4
        kp, kx, key = jax.random.split(key, 3)
        params = make_params(kp, inplanes, planes)
        x = jax.random.normal(kx, (N, inplanes, H, W), jnp.float32)

        out = jax.block_until_ready(bottleneck_pallas(x, params))
        ref = jax.block_until_ready(bottleneck_ref(x, params))

        assert out.shape == (N, Cout, H, W), out.shape
        # bf16 activation I/O + bf16 MXU operands with f32 accumulation.
        assert jnp.allclose(out, ref, atol=5e-2, rtol=3e-2), \
            (N, inplanes, planes, H, W, float(jnp.max(jnp.abs(out - ref))))

    print("KERNEL_OK")
</pallas_src>

<mosaic_0001>
module attributes {stable_mosaic.version = 11 : i64} {
  func.func @bottleneck_kernel(%arg0: i32, %arg1: i32, %arg2: memref<1x8x16x128xbf16, #tpu.memory_space<vmem>>, %arg3: memref<1x1x16x128xbf16, #tpu.memory_space<vmem>>, %arg4: memref<1x1x16x128xbf16, #tpu.memory_space<vmem>>, %arg5: memref<128x128xbf16, #tpu.memory_space<vmem>>, %arg6: memref<1x128xf32, #tpu.memory_space<vmem>>, %arg7: memref<1152x128xbf16, #tpu.memory_space<vmem>>, %arg8: memref<1x128xf32, #tpu.memory_space<vmem>>, %arg9: memref<128x128xbf16, #tpu.memory_space<vmem>>, %arg10: memref<1x128xf32, #tpu.memory_space<vmem>>, %arg11: memref<1x8x16x128xbf16, #tpu.memory_space<vmem>>, %arg12: memref<160x128xf32, #tpu.memory_space<vmem>>, %arg13: memref<128x1152xbf16, #tpu.memory_space<vmem>>) attributes {dimension_semantics = [#tpu.dimension_semantics<parallel>, #tpu.dimension_semantics<parallel>], iteration_bounds = array<i64: 2, 2>, scalar_prefetch = 0 : i64, scratch_operands = 2 : i64, tpu.core_type = #tpu.core_type<tc>, window_params = [{transform_indices = @transform_0, window_bounds = array<i64: 1, 8, 16, 128>}, {transform_indices = @transform_1, window_bounds = array<i64: 1, 1, 16, 128>}, {transform_indices = @transform_2, window_bounds = array<i64: 1, 1, 16, 128>}, {pipeline_mode = #tpu.pipeline_mode<synchronous>, transform_indices = @transform_3, window_bounds = array<i64: 128, 128>}, {pipeline_mode = #tpu.pipeline_mode<synchronous>, transform_indices = @transform_4, window_bounds = array<i64: 1, 128>}, {pipeline_mode = #tpu.pipeline_mode<synchronous>, transform_indices = @transform_5, window_bounds = array<i64: 1152, 128>}, {pipeline_mode = #tpu.pipeline_mode<synchronous>, transform_indices = @transform_6, window_bounds = array<i64: 1, 128>}, {pipeline_mode = #tpu.pipeline_mode<synchronous>, transform_indices = @transform_7, window_bounds = array<i64: 128, 128>}, {pipeline_mode = #tpu.pipeline_mode<synchronous>, transform_indices = @transform_8, window_bounds = array<i64: 1, 128>}, {transform_indices = @transform_9, window_bounds = array<i64: 1, 8, 16, 128>}]} {
    %c0 = arith.constant 0 : index
    %c0_0 = arith.constant 0 : index
    %0 = vector.load %arg5[%c0, %c0_0] : memref<128x128xbf16, #tpu.memory_space<vmem>>, vector<128x128xbf16>
    %c0_1 = arith.constant 0 : index
    %c0_2 = arith.constant 0 : index
    %1 = vector.load %arg6[%c0_1, %c0_2] : memref<1x128xf32, #tpu.memory_space<vmem>>, vector<1x128xf32>
    %c0_3 = arith.constant 0 : index
    %c0_4 = arith.constant 0 : index
    %c0_5 = arith.constant 0 : index
    %c0_6 = arith.constant 0 : index
    %2 = vector.load %arg2[%c0_3, %c0_4, %c0_5, %c0_6] : memref<1x8x16x128xbf16, #tpu.memory_space<vmem>>, vector<1x8x16x128xbf16>
    %3 = vector.shape_cast %2 : vector<1x8x16x128xbf16> to vector<8x16x128xbf16>
    %4 = vector.shape_cast %3 : vector<8x16x128xbf16> to vector<128x128xbf16>
    %cst = arith.constant dense<0.000000e+00> : vector<128x128xf32>
    %5 = tpu.matmul %4, %0, %cst {dimension_numbers = #tpu.dot_dimension_numbers<[1], [0], [0], [1], [0, 0, 1, 1], [], []>} : vector<128x128xbf16>, vector<128x128xbf16>, vector<128x128xf32> -> vector<128x128xf32>
    %6 = vector.broadcast %1 : vector<1x128xf32> to vector<128x128xf32>
    %7 = arith.addf %5, %6 : vector<128x128xf32>
    %cst_7 = arith.constant 0.000000e+00 : f32
    %8 = vector.broadcast %cst_7 : f32 to vector<128x128xf32>
    %9 = arith.maximumf %7, %8 : vector<128x128xf32>
    %c16 = arith.constant 16 : index
    %c0_8 = arith.constant 0 : index
    %10 = vector.load %arg12[%c16, %c0_8] : memref<160x128xf32, #tpu.memory_space<vmem>>, vector<128x128xf32>
    tpu.vector_store %arg12[%c16, %c0_8], %9 {strides = array<i32>} : memref<160x128xf32, #tpu.memory_space<vmem>>, vector<128x128xf32>,
    %c0_9 = arith.constant 0 : index
    %c0_10 = arith.constant 0 : index
    %c0_11 = arith.constant 0 : index
    %c0_12 = arith.constant 0 : index
    %11 = vector.load %arg3[%c0_9, %c0_10, %c0_11, %c0_12] : memref<1x1x16x128xbf16, #tpu.memory_space<vmem>>, vector<1x1x16x128xbf16>
    %12 = vector.shape_cast %11 : vector<1x1x16x128xbf16> to vector<16x128xbf16>
    %cst_13 = arith.constant dense<0.000000e+00> : vector<16x128xf32>
    %13 = tpu.matmul %12, %0, %cst_13 {dimension_numbers = #tpu.dot_dimension_numbers<[1], [0], [0], [1], [0, 0, 1, 1], [], []>} : vector<16x128xbf16>, vector<128x128xbf16>, vector<16x128xf32> -> vector<16x128xf32>
    %14 = vector.broadcast %1 : vector<1x128xf32> to vector<16x128xf32>
    %15 = arith.addf %13, %14 : vector<16x128xf32>
    %cst_14 = arith.constant 0.000000e+00 : f32
    %16 = vector.broadcast %cst_14 : f32 to vector<16x128xf32>
    %17 = arith.maximumf %15, %16 : vector<16x128xf32>
    %c0_i32 = arith.constant 0 : i32
    %18 = arith.cmpi sgt, %arg1, %c0_i32 : i32
    %cst_15 = arith.constant 0.000000e+00 : f32
    %19 = vector.broadcast %cst_15 : f32 to vector<16x128xf32>
    %20 = arith.select %18, %17, %19 : vector<16x128xf32>
    %c0_16 = arith.constant 0 : index
    %c0_17 = arith.constant 0 : index
    %21 = vector.load %arg12[%c0_16, %c0_17] : memref<160x128xf32, #tpu.memory_space<vmem>>, vector<16x128xf32>
    tpu.vector_store %arg12[%c0_16, %c0_17], %20 {strides = array<i32>} : memref<160x128xf32, #tpu.memory_space<vmem>>, vector<16x128xf32>,
    %c0_18 = arith.constant 0 : index
    %c0_19 = arith.constant 0 : index
    %c0_20 = arith.constant 0 : index
    %c0_21 = arith.constant 0 : index
    %22 = vector.load %arg4[%c0_18, %c0_19, %c0_20, %c0_21] : memref<1x1x16x128xbf16, #tpu.memory_space<vmem>>, vector<1x1x16x128xbf16>
    %23 = vector.shape_cast %22 : vector<1x1x16x128xbf16> to vector<16x128xbf16>
    %cst_22 = arith.constant dense<0.000000e+00> : vector<16x128xf32>
    %24 = tpu.matmul %23, %0, %cst_22 {dimension_numbers = #tpu.dot_dimension_numbers<[1], [0], [0], [1], [0, 0, 1, 1], [], []>} : vector<16x128xbf16>, vector<128x128xbf16>, vector<16x128xf32> -> vector<16x128xf32>
    %25 = vector.broadcast %1 : vector<1x128xf32> to vector<16x128xf32>
    %26 = arith.addf %24, %25 : vector<16x128xf32>
    %cst_23 = arith.constant 0.000000e+00 : f32
    %27 = vector.broadcast %cst_23 : f32 to vector<16x128xf32>
    %28 = arith.maximumf %26, %27 : vector<16x128xf32>
    %c1_i32 = arith.constant 1 : i32
    %29 = arith.cmpi slt, %arg1, %c1_i32 : i32
    %cst_24 = arith.constant 0.000000e+00 : f32
    %30 = vector.broadcast %cst_24 : f32 to vector<16x128xf32>
    %31 = arith.select %29, %28, %30 : vector<16x128xf32>
    %c144 = arith.constant 144 : index
    %c0_25 = arith.constant 0 : index
    %32 = vector.load %arg12[%c144, %c0_25] : memref<160x128xf32, #tpu.memory_space<vmem>>, vector<16x128xf32>
    tpu.vector_store %arg12[%c144, %c0_25], %31 {strides = array<i32>} : memref<160x128xf32, #tpu.memory_space<vmem>>, vector<16x128xf32>,
    %33 = tpu.iota {dimensions = array<i32: 0>} : vector<128x1xi32>
    %c16_i32 = arith.constant 16 : i32
    %c0_i32_26 = arith.constant 0 : i32
    %34 = arith.cmpi eq, %c16_i32, %c0_i32_26 : i32
    %c1_i32_27 = arith.constant 1 : i32
    %35 = arith.select %34, %c1_i32_27, %c16_i32 : i32
    %36 = vector.broadcast %35 : i32 to vector<128x1xi32>
    %37 = arith.remsi %33, %36 : vector<128x1xi32>
    %c0_i32_28 = arith.constant 0 : i32
    %38 = vector.broadcast %c0_i32_28 : i32 to vector<128x1xi32>
    %39 = arith.cmpi ne, %37, %38 : vector<128x1xi32>
    %c0_i32_29 = arith.constant 0 : i32
    %40 = vector.broadcast %c0_i32_29 : i32 to vector<128x1xi32>
    %41 = arith.cmpi slt, %37, %40 : vector<128x1xi32>
    %c0_i32_30 = arith.constant 0 : i32
    %42 = arith.cmpi slt, %35, %c0_i32_30 : i32
    %43 = vector.broadcast %42 : i1 to vector<128x1xi1>
    %44 = vector.broadcast %43 : vector<128x1xi1> to vector<128x1xi1>
    %45 = arith.xori %41, %44 : vector<128x1xi1>
    %46 = arith.andi %45, %39 : vector<128x1xi1>
    %47 = vector.broadcast %35 : i32 to vector<128x1xi32>
    %48 = arith.addi %37, %47 : vector<128x1xi32>
    %49 = arith.select %46, %48, %37 : vector<128x1xi1>, vector<128x1xi32>
    %c1_i32_31 = arith.constant 1 : i32
    %50 = vector.broadcast %c1_i32_31 : i32 to vector<128x1xi32>
    %51 = arith.cmpi sge, %49, %50 : vector<128x1xi32>
    %c14_i32 = arith.constant 14 : i32
    %52 = vector.broadcast %c14_i32 : i32 to vector<128x1xi32>
    %53 = arith.cmpi sle, %49, %52 : vector<128x1xi32>
    %c0_32 = arith.constant 0 : index
    %c0_33 = arith.constant 0 : index
    %54 = vector.load %arg12[%c0_32, %c0_33] : memref<160x128xf32, #tpu.memory_space<vmem>>, vector<128x128xf32>
    %c1_i32_34 = arith.constant 1 : i32
    %55 = tpu.dynamic_rotate %54 by %c1_i32_34 dim 0 : vector<128x128xf32>, i32 -> vector<128x128xf32>
    %cst_35 = arith.constant 0.000000e+00 : f32
    %56 = vector.shape_cast %51 : vector<128x1xi1> to vector<128x1xi1>
    %57 = vector.broadcast %56 : vector<128x1xi1> to vector<128x128xi1>
    %58 = vector.broadcast %cst_35 : f32 to vector<128x128xf32>
    %59 = arith.select %57, %55, %58 : vector<128x128xi1>, vector<128x128xf32>
    %60 = arith.truncf %59 : vector<128x128xf32> to vector<128x128xbf16>
    %c0_36 = arith.constant 0 : index
    %c0_37 = arith.constant 0 : index
    %61 = vector.load %arg13[%c0_36, %c0_37] : memref<128x1152xbf16, #tpu.memory_space<vmem>>, vector<128x128xbf16>
    tpu.vector_store %arg13[%c0_36, %c0_37], %60 {strides = array<i32>} : memref<128x1152xbf16, #tpu.memory_space<vmem>>, vector<128x128xbf16>,
    %62 = arith.truncf %54 : vector<128x128xf32> to vector<128x128xbf16>
    %c0_38 = arith.constant 0 : index
    %c128 = arith.constant 128 : index
    %63 = vector.load %arg13[%c0_38, %c128] : memref<128x1152xbf16, #tpu.memory_space<vmem>>, vector<128x128xbf16>
    tpu.vector_store %arg13[%c0_38, %c128], %62 {strides = array<i32>} : memref<128x1152xbf16, #tpu.memory_space<vmem>>, vector<128x128xbf16>,
    %c127_i32 = arith.constant 127 : i32
    %64 = tpu.dynamic_rotate %54 by %c127_i32 dim 0 : vector<128x128xf32>, i32 -> vector<128x128xf32>
    %cst_39 = arith.constant 0.000000e+00 : f32
    %65 = vector.shape_cast %53 : vector<128x1xi1> to vector<128x1xi1>
    %66 = vector.broadcast %65 : vector<128x1xi1> to vector<128x128xi1>
    %67 = vector.broadcast %cst_39 : f32 to vector<128x128xf32>
    %68 = arith.select %66, %64, %67 : vector<128x128xi1>, vector<128x128xf32>
    %69 = arith.truncf %68 : vector<128x128xf32> to vector<128x128xbf16>
    %c0_40 = arith.constant 0 : index
    %c256 = arith.constant 256 : index
    %70 = vector.load %arg13[%c0_40, %c256] : memref<128x1152xbf16, #tpu.memory_space<vmem>>, vector<128x128xbf16>
    tpu.vector_store %arg13[%c0_40, %c256], %69 {strides = array<i32>} : memref<128x1152xbf16, #tpu.memory_space<vmem>>, vector<128x128xbf16>,
    %c16_41 = arith.constant 16 : index
    %c0_42 = arith.constant 0 : index
    %71 = vector.load %arg12[%c16_41, %c0_42] : memref<160x128xf32, #tpu.memory_space<vmem>>, vector<128x128xf32>
    %c1_i32_43 = arith.constant 1 : i32
    %72 = tpu.dynamic_rotate %71 by %c1_i32_43 dim 0 : vector<128x128xf32>, i32 -> vector<128x128xf32>
    %cst_44 = arith.constant 0.000000e+00 : f32
    %73 = vector.shape_cast %51 : vector<128x1xi1> to vector<128x1xi1>
    %74 = vector.broadcast %73 : vector<128x1xi1> to vector<128x128xi1>
    %75 = vector.broadcast %cst_44 : f32 to vector<128x128xf32>
    %76 = arith.select %74, %72, %75 : vector<128x128xi1>, vector<128x128xf32>
    %77 = arith.truncf %76 : vector<128x128xf32> to vector<128x128xbf16>
    %c0_45 = arith.constant 0 : index
    %c384 = arith.constant 384 : index
    %78 = vector.load %arg13[%c0_45, %c384] : memref<128x1152xbf16, #tpu.memory_space<vmem>>, vector<128x128xbf16>
    tpu.vector_store %arg13[%c0_45, %c384], %77 {strides = array<i32>} : memref<128x1152xbf16, #tpu.memory_space<vmem>>, vector<128x128xbf16>,
    %79 = arith.truncf %71 : vector<128x128xf32> to vector<128x128xbf16>
    %c0_46 = arith.constant 0 : index
    %c512 = arith.constant 512 : index
    %80 = vector.load %arg13[%c0_46, %c512] : memref<128x1152xbf16, #tpu.memory_space<vmem>>, vector<128x128xbf16>
    tpu.vector_store %arg13[%c0_46, %c512], %79 {strides = array<i32>} : memref<128x1152xbf16, #tpu.memory_space<vmem>>, vector<128x128xbf16>,
    %c127_i32_47 = arith.constant 127 : i32
    %81 = tpu.dynamic_rotate %71 by %c127_i32_47 dim 0 : vector<128x128xf32>, i32 -> vector<128x128xf32>
    %cst_48 = arith.constant 0.000000e+00 : f32
    %82 = vector.shape_cast %53 : vector<128x1xi1> to vector<128x1xi1>
    %83 = vector.broadcast %82 : vector<128x1xi1> to vector<128x128xi1>
    %84 = vector.broadcast %cst_48 : f32 to vector<128x128xf32>
    %85 = arith.select %83, %81, %84 : vector<128x128xi1>, vector<128x128xf32>
    %86 = arith.truncf %85 : vector<128x128xf32> to vector<128x128xbf16>
    %c0_49 = arith.constant 0 : index
    %c640 = arith.constant 640 : index
    %87 = vector.load %arg13[%c0_49, %c640] : memref<128x1152xbf16, #tpu.memory_space<vmem>>, vector<128x128xbf16>
    tpu.vector_store %arg13[%c0_49, %c640], %86 {strides = array<i32>} : memref<128x1152xbf16, #tpu.memory_space<vmem>>, vector<128x128xbf16>,
    %c32 = arith.constant 32 : index
    %c0_50 = arith.constant 0 : index
    %88 = vector.load %arg12[%c32, %c0_50] : memref<160x128xf32, #tpu.memory_space<vmem>>, vector<128x128xf32>
    %c1_i32_51 = arith.constant 1 : i32
    %89 = tpu.dynamic_rotate %88 by %c1_i32_51 dim 0 : vector<128x128xf32>, i32 -> vector<128x128xf32>
    %cst_52 = arith.constant 0.000000e+00 : f32
    %90 = vector.shape_cast %51 : vector<128x1xi1> to vector<128x1xi1>
    %91 = vector.broadcast %90 : vector<128x1xi1> to vector<128x128xi1>
    %92 = vector.broadcast %cst_52 : f32 to vector<128x128xf32>
    %93 = arith.select %91, %89, %92 : vector<128x128xi1>, vector<128x128xf32>
    %94 = arith.truncf %93 : vector<128x128xf32> to vector<128x128xbf16>
    %c0_53 = arith.constant 0 : index
    %c768 = arith.constant 768 : index
    %95 = vector.load %arg13[%c0_53, %c768] : memref<128x1152xbf16, #tpu.memory_space<vmem>>, vector<128x128xbf16>
    tpu.vector_store %arg13[%c0_53, %c768], %94 {strides = array<i32>} : memref<128x1152xbf16, #tpu.memory_space<vmem>>, vector<128x128xbf16>,
    %96 = arith.truncf %88 : vector<128x128xf32> to vector<128x128xbf16>
    %c0_54 = arith.constant 0 : index
    %c896 = arith.constant 896 : index
    %97 = vector.load %arg13[%c0_54, %c896] : memref<128x1152xbf16, #tpu.memory_space<vmem>>, vector<128x128xbf16>
    tpu.vector_store %arg13[%c0_54, %c896], %96 {strides = array<i32>} : memref<128x1152xbf16, #tpu.memory_space<vmem>>, vector<128x128xbf16>,
    %c127_i32_55 = arith.constant 127 : i32
    %98 = tpu.dynamic_rotate %88 by %c127_i32_55 dim 0 : vector<128x128xf32>, i32 -> vector<128x128xf32>
    %cst_56 = arith.constant 0.000000e+00 : f32
    %99 = vector.shape_cast %53 : vector<128x1xi1> to vector<128x1xi1>
    %100 = vector.broadcast %99 : vector<128x1xi1> to vector<128x128xi1>
    %101 = vector.broadcast %cst_56 : f32 to vector<128x128xf32>
    %102 = arith.select %100, %98, %101 : vector<128x128xi1>, vector<128x128xf32>
    %103 = arith.truncf %102 : vector<128x128xf32> to vector<128x128xbf16>
    %c0_57 = arith.constant 0 : index
    %c1024 = arith.constant 1024 : index
    %104 = vector.load %arg13[%c0_57, %c1024] : memref<128x1152xbf16, #tpu.memory_space<vmem>>, vector<128x128xbf16>
    tpu.vector_store %arg13[%c0_57, %c1024], %103 {strides = array<i32>} : memref<128x1152xbf16, #tpu.memory_space<vmem>>, vector<128x128xbf16>,
    %c0_58 = arith.constant 0 : index
    %c0_59 = arith.constant 0 : index
    %105 = vector.load %arg13[%c0_58, %c0_59] : memref<128x1152xbf16, #tpu.memory_space<vmem>>, vector<128x1152xbf16>
    %c0_60 = arith.constant 0 : index
    %c0_61 = arith.constant 0 : index
    %106 = vector.load %arg7[%c0_60, %c0_61] : memref<1152x128xbf16, #tpu.memory_space<vmem>>, vector<1152x128xbf16>
    %cst_62 = arith.constant dense<0.000000e+00> : vector<128x128xf32>
    %107 = tpu.matmul %105, %106, %cst_62 {dimension_numbers = #tpu.dot_dimension_numbers<[1], [0], [0], [1], [0, 0, 1, 1], [], []>} : vector<128x1152xbf16>, vector<1152x128xbf16>, vector<128x128xf32> -> vector<128x128xf32>
    %c0_63 = arith.constant 0 : index
    %c0_64 = arith.constant 0 : index
    %108 = vector.load %arg8[%c0_63, %c0_64] : memref<1x128xf32, #tpu.memory_space<vmem>>, vector<1x128xf32>
    %109 = vector.broadcast %108 : vector<1x128xf32> to vector<128x128xf32>
    %110 = arith.addf %107, %109 : vector<128x128xf32>
    %cst_65 = arith.constant 0.000000e+00 : f32
    %111 = vector.broadcast %cst_65 : f32 to vector<128x128xf32>
    %112 = arith.maximumf %110, %111 : vector<128x128xf32>
    %113 = arith.truncf %112 : vector<128x128xf32> to vector<128x128xbf16>
    %c0_66 = arith.constant 0 : index
    %c0_67 = arith.constant 0 : index
    %114 = vector.load %arg9[%c0_66, %c0_67] : memref<128x128xbf16, #tpu.memory_space<vmem>>, vector<128x128xbf16>
    %cst_68 = arith.constant dense<0.000000e+00> : vector<128x128xf32>
    %115 = tpu.matmul %113, %114, %cst_68 {dimension_numbers = #tpu.dot_dimension_numbers<[1], [0], [0], [1], [0, 0, 1, 1], [], []>} : vector<128x128xbf16>, vector<128x128xbf16>, vector<128x128xf32> -> vector<128x128xf32>
    %c0_69 = arith.constant 0 : index
    %c0_70 = arith.constant 0 : index
    %116 = vector.load %arg10[%c0_69, %c0_70] : memref<1x128xf32, #tpu.memory_space<vmem>>, vector<1x128xf32>
    %117 = vector.broadcast %116 : vector<1x128xf32> to vector<128x128xf32>
    %118 = arith.addf %115, %117 : vector<128x128xf32>
    %119 = arith.extf %4 : vector<128x128xbf16> to vector<128x128xf32>
    %120 = arith.addf %118, %119 : vector<128x128xf32>
    %cst_71 = arith.constant 0.000000e+00 : f32
    %121 = vector.broadcast %cst_71 : f32 to vector<128x128xf32>
    %122 = arith.maximumf %120, %121 : vector<128x128xf32>
    %123 = arith.truncf %122 : vector<128x128xf32> to vector<128x128xbf16>
    %124 = vector.shape_cast %123 : vector<128x128xbf16> to vector<8x16x128xbf16>
    %c0_72 = arith.constant 0 : index
    %c0_73 = arith.constant 0 : index
    %c0_74 = arith.constant 0 : index
    %c0_75 = arith.constant 0 : index
    %125 = vector.load %arg11[%c0_72, %c0_73, %c0_74, %c0_75] : memref<1x8x16x128xbf16, #tpu.memory_space<vmem>>, vector<1x8x16x128xbf16>
    %126 = vector.shape_cast %125 : vector<1x8x16x128xbf16> to vector<8x16x128xbf16>
    %127 = vector.shape_cast %124 : vector<8x16x128xbf16> to vector<1x8x16x128xbf16>
    tpu.vector_store %arg11[%c0_72, %c0_73, %c0_74, %c0_75], %127 {strides = array<i32>} : memref<1x8x16x128xbf16, #tpu.memory_space<vmem>>, vector<1x8x16x128xbf16>,
    return
  }
  func.func @transform_0(%arg0: i32, %arg1: i32) -> (i32, i32, i32, i32) {
    %c0_i32 = arith.constant 0 : i32
    %c0_i32_0 = arith.constant 0 : i32
    %c0_i32_1 = arith.constant 0 : i32
    return %arg0, %arg1, %c0_i32, %c0_i32_0 : i32, i32, i32, i32
  }
  func.func @transform_1(%arg0: i32, %arg1: i32) -> (i32, i32, i32, i32) {
    %c8_i32 = arith.constant 8 : i32
    %0 = arith.muli %arg1, %c8_i32 : i32
    %c1_i32 = arith.constant 1 : i32
    %1 = arith.subi %0, %c1_i32 : i32
    %c0_i32 = arith.constant 0 : i32
    %2 = arith.maxsi %1, %c0_i32 : i32
    %c0_i32_0 = arith.constant 0 : i32
    %c0_i32_1 = arith.constant 0 : i32
    %c0_i32_2 = arith.constant 0 : i32
    return %arg0, %2, %c0_i32_0, %c0_i32_1 : i32, i32, i32, i32
  }
  func.func @transform_2(%arg0: i32, %arg1: i32) -> (i32, i32, i32, i32) {
    %c1_i32 = arith.constant 1 : i32
    %0 = arith.addi %arg1, %c1_i32 : i32
    %c8_i32 = arith.constant 8 : i32
    %1 = arith.muli %0, %c8_i32 : i32
    %c15_i32 = arith.constant 15 : i32
    %2 = arith.minsi %1, %c15_i32 : i32
    %c0_i32 = arith.constant 0 : i32
    %c0_i32_0 = arith.constant 0 : i32
    %c0_i32_1 = arith.constant 0 : i32
    return %arg0, %2, %c0_i32, %c0_i32_0 : i32, i32, i32, i32
  }
  func.func @transform_3(%arg0: i32, %arg1: i32) -> (i32, i32) {
    %c0_i32 = arith.constant 0 : i32
    %c0_i32_0 = arith.constant 0 : i32
    %c0_i32_1 = arith.constant 0 : i32
    return %c0_i32, %c0_i32_0 : i32, i32
  }
  func.func @transform_4(%arg0: i32, %arg1: i32) -> (i32, i32) {
    %c0_i32 = arith.constant 0 : i32
    %c0_i32_0 = arith.constant 0 : i32
    %c0_i32_1 = arith.constant 0 : i32
    return %c0_i32, %c0_i32_0 : i32, i32
  }
  func.func @transform_5(%arg0: i32, %arg1: i32) -> (i32, i32) {
    %c0_i32 = arith.constant 0 : i32
    %c0_i32_0 = arith.constant 0 : i32
    %c0_i32_1 = arith.constant 0 : i32
    return %c0_i32, %c0_i32_0 : i32, i32
  }
  func.func @transform_6(%arg0: i32, %arg1: i32) -> (i32, i32) {
    %c0_i32 = arith.constant 0 : i32
    %c0_i32_0 = arith.constant 0 : i32
    %c0_i32_1 = arith.constant 0 : i32
    return %c0_i32, %c0_i32_0 : i32, i32
  }
  func.func @transform_7(%arg0: i32, %arg1: i32) -> (i32, i32) {
    %c0_i32 = arith.constant 0 : i32
    %c0_i32_0 = arith.constant 0 : i32
    %c0_i32_1 = arith.constant 0 : i32
    return %c0_i32, %c0_i32_0 : i32, i32
  }
  func.func @transform_8(%arg0: i32, %arg1: i32) -> (i32, i32) {
    %c0_i32 = arith.constant 0 : i32
    %c0_i32_0 = arith.constant 0 : i32
    %c0_i32_1 = arith.constant 0 : i32
    return %c0_i32, %c0_i32_0 : i32, i32
  }
  func.func @transform_9(%arg0: i32, %arg1: i32) -> (i32, i32, i32, i32) {
    %c0_i32 = arith.constant 0 : i32
    %c0_i32_0 = arith.constant 0 : i32
    %c0_i32_1 = arith.constant 0 : i32
    return %arg0, %arg1, %c0_i32, %c0_i32_0 : i32, i32, i32, i32
  }
}

</mosaic_0001>

<bundles_post_ra>
// kernel: tpu_custom_call.1
= control target key start
LH: loop header
LB: loop body
LE: loop exit
PB: predicated region body
PF: predicated region fallthrough
CT: control target
= control target key end

     0   :  { %s6180_s0 = inlined_call_operand.hbm [shape: bf16[2,16,16,128], index: 0, kind: input, shape index: {}]   ;;  %s6181_s1 = inlined_call_operand.hbm [shape: bf16[2,16,16,128], index: 1, kind: input, shape index: {}]   ;;  %s6182_s2 = inlined_call_operand.hbm [shape: bf16[2,16,16,128], index: 2, kind: input, shape index: {}]   ;;  %s6183_s3 = inlined_call_operand.hbm [shape: bf16[128,128], index: 3, kind: input, shape index: {}]   ;;  %s6184_s4 = inlined_call_operand.vmem [shape: f32[1,128], index: 4, kind: input, shape index: {}]   ;;  %s6185_s5 = inlined_call_operand.hbm [shape: bf16[1152,128], index: 5, kind: input, shape index: {}]   ;;  %s6186_s6 = inlined_call_operand.vmem [shape: f32[1,128], index: 6, kind: input, shape index: {}]   ;;  %s6187_s7 = inlined_call_operand.hbm [shape: bf16[128,128], index: 7, kind: input, shape index: {}]   ;;  %s6188_s8 = inlined_call_operand.vmem [shape: f32[1,128], index: 8, kind: input, shape index: {}]   ;;  %s6189_s9 = inlined_call_operand.hbm [shape: bf16[2,16,16,128], index: 9, kind: output, shape index: {}]  }
   0x1   :  { %6211 = sst [smem:[#allocation39_spill]] %s6180_s0 }
   0x2   :  { %6212 = sst [smem:[#allocation40_spill]] %s6181_s1 }
   0x3   :  { %6213 = sst [smem:[#allocation41_spill]] %s6182_s2 }
   0x4   :  { %6214 = sst [smem:[#allocation42_spill]] %s6183_s3 }
   0x5   :  { %6215 = sst [smem:[#allocation43_spill]] %s6184_s4 }
   0x6   :  { %6216 = sst [smem:[#allocation44_spill]] %s6185_s5 }
   0x7   :  { %6217 = sst [smem:[#allocation45_spill]] %s6186_s6 }
   0x8   :  { %6218 = sst [smem:[#allocation46_spill]] %s6187_s7 }
   0x9   :  { %6219 = sst [smem:[#allocation47_spill]] %s6188_s8 }
   0xa   :  { %6220 = sst [smem:[#allocation48_spill]] %s6189_s9 }
   0xb   :  { %14 = vsyncpa [#allocation5], 0 }
   0xc   :  { %16 = vsyncpa [#allocation5 + $0x1], 0 }
   0xd   :  { %17 = vsyncpa [#allocation8], 0 }
   0xe   :  { %19 = vsyncpa [#allocation8 + $0x1], 0 }
   0xf   :  { %20 = vsyncpa [#allocation11], 0 }
  0x10   :  { %21 = vsyncpa [#allocation14], 0 }
  0x11   :  { %22 = vsyncpa [#allocation6], 0 }
  0x12   :  { %24 = vsyncpa [#allocation6 + $0x1], 0  ;;  %s5170_s30 = smov 0   ;;  %s5172_s10 = smov 0  }
  0x13   :  { %s5174_s11 = smov 0   ;;  %s5176_s12 = smov 0  }
  0x14   :  { %s5178_s13 = smov 0   ;;  %s5180_s14 = smov 0  }
  0x15   :  { %s5182_s15 = smov 0   ;;  %s5184_s16 = smov 0  }
  0x16   :  { %s5186_s17 = smov 0   ;;  %s5188_s18 = smov 0  }
  0x17   :  { %s5190_s19 = smov 0   ;;  %s5192_s20 = smov 0  }
  0x18   :  { %s5194_s21 = smov 0   ;;  %s5196_s22 = smov 0  }
  0x19 LB: > { %6221 = sst [smem:[#allocation22_spill]] %s5059_s30  ;;  %s5241_s23 = sadd.s32 4294967295, %s5111_s22   ;;  %s5111_s22 = sphi %s5196_s22, %s30_s22   ;;  %s5107_s21 = sphi %s5194_s21, %s6318_s21   ;;  %s5103_s20 = sphi %s5192_s20, %s6317_s20   ;;  %s5099_s19 = sphi %s5190_s19, %s6316_s19   ;;  %s5095_s18 = sphi %s5188_s18, %s6315_s18   ;;  %s5091_s17 = sphi %s5186_s17, %s6314_s17   ;;  %s5087_s16 = sphi %s5184_s16, %s6322_s16   ;;  %s5083_s15 = sphi %s5182_s15, %s6321_s15   ;;  %s5079_s14 = sphi %s5180_s14, %s6312_s14   ;;  %s5075_s13 = sphi %s5178_s13, %s6311_s13   ;;  %s5071_s12 = sphi %s5176_s12, %s6310_s12   ;;  %s5067_s11 = sphi %s5174_s11, %s6320_s11   ;;  %s5063_s10 = sphi %s5172_s10, %s6319_s10   ;;  %s5059_s30 = sphi %s5170_s30, %s6309_s30  }
  0x1a   : > { %6222 = sst [smem:[#allocation23_spill]] %s5063_s10  ;;  %p3638_p0 = scmp.ge.s32.totalorder %s5111_s22, 1 }
  0x1b   : > { %6223 = sst [smem:[#allocation24_spill]] %s5075_s13  ;;  %p65_p1 = scmp.eq.s32.totalorder %s5241_s23, 0 }
  0x1c   : > { %6224 = sst [smem:[#allocation25_spill]] %s5079_s14  ;;  %p301_p2 = scmp.lt.s32.totalorder %s5111_s22, 5 }
  0x1d   : > { %6225 = sst [smem:[#allocation26_spill]] %s5091_s17  ;;  %s5113_s28 = smov [#allocation10]  }
  0x1e   : > { %6226 = sst [smem:[#allocation27_spill]] %s5095_s18  ;;  %p5249_p3 = pnand %p3638_p0, %p301_p2 }
  0x1f   : > { %6227 = sst [smem:[#allocation28_spill]] %s5099_s19  ;;  %s314_s29 = sshll.u32 %s5113_s28, 4  ;;  %s315_s29 = int_to_ptr.vmem [resolvable:$true] %s314_s29 }
  0x20   : > { %6228 = sst [smem:[#allocation29_spill]] %s5103_s20  ;;  %p4615_p4 = pneg %p5249_p3 }
  0x21   : > { %6229 = sst [smem:[#allocation30_spill]] %s5107_s21  ;;  %s6191_s24 = smov 64  }
  0x22   : > { %s6230_s3 = sld [smem:[#allocation42_spill]]  ;;  %p5257_p5 = pnand %p4615_p4, %p65_p1 }
  0x23   : > { %s6231_s27 = scalar_select %p5249_p3, 1, 0 }
  0x24   : > { %s6193_s25 = smov 4   ;;  %s42_s19 = sadd.s32 1, %s5107_s21 }
  0x25   : > { %6232 = sst [smem:[#allocation31_spill]] %s6231_s27  ;;  %p59_p7 = scmp.eq.s32.totalorder %s5111_s22, 0 }
  0x26   : > { %s3632_s28 = sshll.u32 %s5103_s20, 3  ;;  %p94_p12 = scmp.ne.s32.totalorder %s5079_s14, %s5075_s13 }
  0x27   : > { %s3633_s6 = sadd.s32 4294967295, %s3632_s28  ;;  %p100_p0 = scmp.ne.s32.totalorder %s5075_s13, %s5071_s12 }
  0x28   : > { %s312_s26 = sshll.u32 %s6230_s3, 4  ;;  %s39_s3 = sadd.s32 1, %s5103_s20  ;;  %s313_s26 = int_to_ptr.hbm [resolvable:$true] %s312_s26 }
  0x29   : > { %4618 = dma.hbm_to_vmem [thread:$0]  (!%p5257_p5), %s313_s26, 1024, %s315_s29, [#allocation11], %s6191_s24, %s6191_s24, %s6193_s25  }
  0x2a   : > { %p40_p6 = scmp.ge.s32.totalorder %s39_s3, 2  ;;  %p76_p9 = scmp.gt.s32.totalorder %s3633_s6, 0 }
  0x2b   : > { %s87_s29 = sadd.s32 1, %s5079_s14  ;;  %p5291_p13 = por %p94_p12, %p59_p7 }
  0x2c   : > { %s6324_s3 = smov (%p40_p6, %s39_s3), 0  ;;  %s6326_s19 = smov (!%p40_p6, %s42_s19), %s5107_s21 }
  0x2d   : > { %6234 = sst [smem:[#allocation32_spill]] %s6324_s3  ;;  %s47_s8 = ssub.s32 %s5103_s20, %s6324_s3 }
  0x2e   : > { %p44_p8 = scmp.ge.s32.totalorder %s6326_s19, 2  ;;  %s3634_s26 = sshll.u32 %s6324_s3, 3 }
  0x2f   : > { %s6330_s6 = smov (!%p76_p9, %s3633_s6), 0  ;;  %s3635_s25 = sadd.s32 4294967295, %s3634_s26 }
  0x30   : > { %s6328_s19 = smov (%p44_p8, %s6326_s19), 0  ;;  %p80_p10 = scmp.gt.s32.totalorder %s3635_s25, 0 }
  0x31   : > { %6235 = sst [smem:[#allocation33_spill]] %s6328_s19  ;;  %s5281_s24 = ssub.s32 %s5107_s21, %s6328_s19 }
  0x32   : > { %6236 = sst [smem:[#allocation34_spill]] %s5281_s24  ;;  %s5284_s4 = sor.u32 %s47_s8, %s5281_s24 }
  0x33   : > { %p49_p11 = scmp.eq.s32.totalorder %s5284_s4, 0  ;;  %s6332_s25 = smov (!%p80_p10, %s3635_s25), 0 }
  0x34   : > { %s83_s19 = ssub.s32 %s6330_s6, %s6332_s25  ;;  %s5297_s18 = sadd.s32 8, %s3632_s28 }
  0x35   : > { %6238 = sst [smem:[#allocation35_spill]] %s5297_s18  ;;  %s84_s8 = sor.u32 %s83_s19, %s5281_s24 }
  0x36   : > { %p5302_p2 = por %p100_p0, %p65_p1  ;;  %p85_p4 = scmp.eq.s32.totalorder %s84_s8, 0 }
  0x37   : > { %p112_p6 = scmp.lt.s32.totalorder %s5297_s18, 15  ;;  %s5307_s2 = sadd.s32 8, %s3634_s26 }
  0x38   : > { %s6239_s27 = scalar_select %p5302_p2, 1, 0 }
  0x39   : > { %p6210_p8 = scmp.lt.s32.totalorder %s5111_s22, 4  ;;  %s5315_s12 = sshll.u32 %s5107_s21, 5 }
  0x3a   : > { %6240 = sst [smem:[#allocation36_spill]] %s6239_s27  ;;  %s390_s19 = sand.u32 1, %s5111_s22  }
  0x3b   : > { %s5311_s0 = scalar_select %p85_p4, %s5079_s14, %s87_s29  }
  0x3c   : > { %s392_s25 = sand.u32 1, %s5079_s14   ;;  %s3651_s13 = sshll.u32 %s6330_s6, 1 }
  0x3d   : > { %6241 = sst [smem:[#allocation37_spill]] %s5311_s0  ;;  %s3648_s28 = sshll.u32 %s392_s25, 3 }
  0x3e   : > { %s403_s24 = sadd.s32 %s3651_s13, %s5315_s12  ;;  %s394_s27 = scalar_lea.vmem [#allocation7], %s3648_s28 }
  0x3f   : > { %s408_s8 = sshll.u32 %s394_s27, 4  ;;  %s3653_s30 = sshll.u32 %s403_s24, 2  ;;  %s409_s8 = int_to_ptr.vmem [resolvable:$true] %s408_s8 }
  0x40   : > { %s6242_s1 = sld [smem:[#allocation40_spill]]  ;;  %p4629_p10 = pnand %p6210_p8, %p5291_p13 }
  0x41   : > { %s6243_s5 = sld [smem:[#allocation44_spill]]  ;;  %s5330_s13 = scalar_lea.sflag [#allocation8], %s390_s19 }
  0x42   : > { %s6244_s27 = smov 4   ;;  %s6245_s24 = smov 64  }
  0x43   : > { %s5116_s0 = smov [#allocation12]   ;;  %s6246_s7 = sld [smem:[#allocation46_spill]] }
  0x44   : > { %s331_s3 = sshll.u32 %s5116_s0, 4  ;;  %s5117_s21 = smov [#allocation13]   ;;  %s332_s3 = int_to_ptr.vmem [resolvable:$true] %s331_s3 }
  0x45   : > { %s348_s19 = sshll.u32 %s5117_s21, 4  ;;  %s3631_s25 = sadd.s32 4294967294, %s5111_s22   ;;  %s349_s19 = int_to_ptr.vmem [resolvable:$true] %s348_s19 }
  0x46   : > { %s405_s18 = scalar_lea.hbm %s6242_s1, %s3653_s30  ;;  %s51_s28 = sadd.s32 1, %s5091_s17 }
  0x47   : > { %s406_s29 = sshll.u32 %s405_s18, 4  ;;  %s329_s6 = sshll.u32 %s6243_s5, 4  ;;  %s407_s29 = int_to_ptr.hbm [resolvable:$true] %s406_s29  ;;  %s330_s6 = int_to_ptr.hbm [resolvable:$true] %s329_s6 }
  0x48   : > { %4631 = dma.hbm_to_vmem [thread:$0]  (!%p4629_p10), %s407_s29, 128, %s409_s8, %s5330_s13, %s6245_s24, %s6245_s24, %s6244_s27  }
  0x49   : > { %s346_s18 = sshll.u32 %s6246_s7, 4  ;;  %p58_p12 = scmp.ne.s32.totalorder %s5091_s17, %s5087_s16  ;;  %s347_s18 = int_to_ptr.hbm [resolvable:$true] %s346_s18 }
  0x4a   : > { %4621 = dma.hbm_to_vmem [thread:$0]  (!%p5257_p5), %s330_s6, 9216, %s332_s3, [#allocation11], %s6245_s24, %s6245_s24, %s6244_s27  }
  0x4b   : > { %4624 = dma.hbm_to_vmem [thread:$0]  (!%p5257_p5), %s347_s18, 1024, %s349_s19, [#allocation14], %s6245_s24, %s6245_s24, %s6244_s27  }
  0x4c   : > { %s5356_s8 = scalar_select %p49_p11, %s5091_s17, %s51_s28  }
  0x4d   : > { %p5360_p13 = por %p59_p7, %p58_p12  ;;  %p64_p0 = scmp.ne.s32.totalorder %s5087_s16, %s5083_s15 }
  0x4e   : > { %6247 = sst [smem:[#allocation38_spill]] %s5356_s8  ;;  %p288_p4 = scmp.eq.s32.totalorder %s5241_s23, 3 }
  0x4f   : > { %p294_p10 = scmp.eq.s32.totalorder %s3631_s25, 3  ;;  %p5369_p9 = por %p65_p1, %p64_p0 }
  0x50   : > { %s365_s29 = sand.u32 1, %s5091_s17   ;;  %p5374_p5 = por %p288_p4, %p58_p12 }
  0x51   : > { %s6251_s6 = sld [smem:[#allocation35_spill]]  ;;  %p5378_p11 = por %p294_p10, %p64_p0 }
  0x52   : > { %s3643_s3 = sshll.u32 %s365_s29, 6  ;;  %s6253_s30 = sld [smem:[#allocation23_spill]] }
  0x53   : > { %s4358_s10 = sshll.u32 %s5103_s20, 4  ;;  %s6254_s18 = sld [smem:[#allocation22_spill]] }
  0x54   : > { %s375_s21 = sadd.s32 %s4358_s10, %s5315_s12  ;;  %s369_s19 = scalar_lea.vmem [#allocation4], %s3643_s3 }
  0x55   : > { %s380_s25 = sshll.u32 %s369_s19, 4  ;;  %s6255_s28 = sld [smem:[#allocation34_spill]]  ;;  %s381_s25 = int_to_ptr.vmem [resolvable:$true] %s380_s25 }
  0x56   : > { %s3647_s1 = sshll.u32 %s375_s21, 2  ;;  %s6256_s8 = sld [smem:[#allocation39_spill]] }
  0x57   : > { %p4626_p12 = pnand %p6210_p8, %p5360_p13  ;;  %s366_s20 = scalar_lea.sflag [#allocation5], %s365_s29 }
  0x58   : > { %s123_s3 = sadd.s32 1, %s5067_s11  ;;  %s6334_s6 = smov (!%p112_p6, %s6251_s6), 15 }
  0x59   : > { %p6257_p0 = scmp.lt.s32.totalorder %s5307_s2, 15  ;;  %p130_p4 = scmp.ne.s32.totalorder %s5067_s11, %s6253_s30 }
  0x5a   : > { %p136_p10 = scmp.ne.s32.totalorder %s6253_s30, %s6254_s18  ;;  %s420_s5 = sand.u32 1, %s5067_s11  }
  0x5b   : > { %s6336_s2 = smov (!%p6257_p0, %s5307_s2), 15  ;;  %p5409_p13 = por %p130_p4, %p59_p7 }
  0x5c   : > { %s377_s17 = scalar_lea.hbm %s6256_s8, %s3647_s1  ;;  %s119_s1 = ssub.s32 %s6334_s6, %s6336_s2 }
  0x5d   : > { %s378_s14 = sshll.u32 %s377_s17, 4  ;;  %s120_s7 = sor.u32 %s119_s1, %s6255_s28  ;;  %s379_s14 = int_to_ptr.hbm [resolvable:$true] %s378_s14 }
  0x5e   : > { %4628 = dma.hbm_to_vmem [thread:$0]  (!%p4626_p12), %s379_s14, 1024, %s381_s25, %s366_s20, %s6245_s24, %s6245_s24, %s6244_s27  }
  0x5f   : > { %p121_p8 = scmp.eq.s32.totalorder %s120_s7, 0  ;;  %p5415_p12 = por %p136_p10, %p65_p1 }
  0x60   : > { %s3654_s20 = sshll.u32 %s420_s5, 3  ;;  %s3656_s8 = sshll.u32 %s6334_s6, 1 }
  0x61   : > { %s5420_s26 = scalar_select %p121_p8, %s5067_s11, %s123_s3  }
  0x62   : > { %s431_s2 = sadd.s32 %s3656_s8, %s5315_s12  ;;  %s422_s30 = scalar_lea.vmem [#allocation9], %s3654_s20 }
  0x63   : > { %s3658_s29 = sshll.u32 %s431_s2, 2  ;;  %s436_s10 = sshll.u32 %s422_s30, 4  ;;  %s437_s10 = int_to_ptr.vmem [resolvable:$true] %s436_s10 }
  0x64   : > { %s6260_s19 = sld [smem:[#allocation41_spill]]  ;;  %p6261_p7 = scmp.lt.s32.totalorder %s5111_s22, 4 }
  0x65   : > { %s5437_s12 = sand.u32 (!%p5249_p3), 1, %s5087_s16  }
  0x66   : > { %p4632_p6 = pnand %p6261_p7, %p5409_p13  ;;  %s3660_s3 = sshll.u32 (!%p5249_p3), %s5437_s12, 6 }
  0x67   : > { %s451_s1 = scalar_lea.sflag (!%p5249_p3), [#allocation5], %s5437_s12  ;;  %s5443_s5 = scalar_lea.vmem (!%p5249_p3), [#allocation4], %s3660_s3 }
  0x68   : > { %448 = sbr.rel (%p5249_p3) target bundleno = 1090 (0x442), region = 56 }
  0x6a   : > { %s433_s25 = scalar_lea.hbm %s6260_s19, %s3658_s29 }
  0x6b   : > { %s434_s28 = sshll.u32 %s433_s25, 4  ;;  %s435_s28 = int_to_ptr.hbm [resolvable:$true] %s434_s28 }
  0x6c   : > { %4634 = dma.hbm_to_vmem [thread:$0]  (!%p4632_p6), %s435_s28, 128, %s437_s10, %s5330_s13, %s6245_s24, %s6245_s24, %s6244_s27  }
  0x6d   : > { %5034 = dma.done.wait (%p5369_p9), %s451_s1, 1024  }
  0x6e   : > { %5036 = vsyncadd (%p5369_p9), %s451_s1, 4294966272  ;;  %s6263_s13 = sld [smem:[#allocation24_spill]]  ;;  %s460_s24 = sand.u32 1, %s5241_s23  }
  0x6f   : > { %s461_s20 = scalar_lea.sflag [#allocation8], %s460_s24 }
  0x74   : > { %s462_s7 = sand.u32 1, %s6263_s13  }
  0x75   : > { %s5451_s17 = sshll.u32 %s462_s7, 3 }
  0x76   : > { %s464_s8 = scalar_lea.vmem [#allocation7], %s5451_s17 }
  0x77   : > { %5038 = dma.done.wait (%p5302_p2), %s461_s20, 128  }
  0x78   : > { %5040 = vsyncadd (%p5302_p2), %s461_s20, 4294967168  ;;  %s6265_s2 = sld [smem:[#allocation23_spill]] }
  0x7e   : > { %s472_s29 = sand.u32 1, %s6265_s2  }
  0x7f   : > { %s5459_s9 = sshll.u32 %s472_s29, 3 }
  0x80   : > { %s474_s30 = scalar_lea.vmem [#allocation9], %s5459_s9 }
  0x81   : > { %5042 = dma.done.wait (%p5415_p12), %s461_s20, 128  }
  0x82   : > { %5044 = vsyncadd (%p5415_p12), %s461_s20, 4294967168 }
  0x83   : > { %5046 = dma.done.wait (%p65_p1), [#allocation11], 10240  }
  0x84   : > { %5048 = vsyncadd (%p65_p1), [#allocation11], 4294957056 }
  0x85   : > { %5050 = dma.done.wait (%p65_p1), [#allocation14], 1024  }
  0x86   : > { %5052 = vsyncadd (%p65_p1), [#allocation14], 4294966272  ;;  %v4368_v0 = vld [vmem:[#allocation10 + $0x38] sm:$0xff]  ;;  %v4367_v1 = vld [vmem:[#allocation10 + $0x30] sm:$0xff]  ;;  %s6266_s23 = sld [smem:[#allocation27_spill]]  ;;  %v822_v24 = vlaneseq  ;;  %s6080_s24 = scalar_lea.vmem [#allocation15], %s3660_s3 }
  0x87   : > { %677 = vmatpush.bf16.msra.mxu0 %v4368_v0  ;;  %766 = vmatpush.bf16.msra.mxu1 %v4368_v0  ;;  %v4366_v2 = vld [vmem:[#allocation10 + $0x28] sm:$0xff]  ;;  %v4365_v3 = vld [vmem:[#allocation10 + $0x20] sm:$0xff]  ;;  %v4364_v4 = vld [vmem:[#allocation10 + $0x18] sm:$0xff]  ;;  %s6267_s21 = sld [smem:[#allocation43_spill]] }
  0x88   : > { %798 = vmatpush.bf16.msra.mxu2 %v4368_v0  ;;  %v4363_v5 = vld [vmem:[#allocation10 + $0x10] sm:$0xff]  ;;  %v4362_v6 = vld [vmem:[#allocation10 + $0x8] sm:$0xff]  ;;  %v4361_v7 = vld [vmem:[#allocation10] sm:$0xff]  ;;  %v5493_v30 = vshrl.u32 %v822_v24, 7  ;;  %s6304_s6 = sld [smem:[#allocation45_spill]] }
  0x89   : > { %v4369_v8 = vld [vmem:[%s5443_s5] sm:$0xff]  ;;  %v4378_v10 = vld [vmem:[%s474_s30] sm:$0xff]  ;;  %v4370_v11 = vld [vmem:[%s5443_s5 + $0x8] sm:$0xff]  ;;  %s6305_s27 = sld [smem:[#allocation47_spill]] }
  0x8a   : > { %v4377_v9 = vld [vmem:[%s464_s8] sm:$0xff]  ;;  %v4371_v12 = vld [vmem:[%s5443_s5 + $0x10] sm:$0xff]  ;;  %v4372_v13 = vld [vmem:[%s5443_s5 + $0x18] sm:$0xff]  ;;  %v824_v37 = vadd.s32 8, %v5493_v30  ;;  %v825_v38 = vadd.s32 16, %v5493_v30  ;;  %vm1095_vm2 = vcmp.lt.s32.totalorder %v5493_v30, 1 }
  0x8b   : > { %678 = vmatpush.bf16.msra.mxu0 %v4367_v1  ;;  %767 = vmatpush.bf16.msra.mxu1 %v4367_v1  ;;  %v4373_v14 = vld [vmem:[%s5443_s5 + $0x20] sm:$0xff]  ;;  %v4374_v15 = vld [vmem:[%s5443_s5 + $0x28] sm:$0xff]  ;;  %v4466_v16 = vld [vmem:[#allocation12 + $0x78] sm:$0xff]  ;;  %vm1240_vm3 = vcmp.lt.s32.totalorder %v5493_v30, 7  ;;  %v843_v33 = vand.u32 15, %v5493_v30  ;;  %s6306_s3 = sld [smem:[#allocation28_spill]] }
  0x8c   : > { %799 = vmatpush.bf16.msra.mxu2 %v4367_v1  ;;  %v4465_v17 = vld [vmem:[#allocation12 + $0x70] sm:$0xff]  ;;  %v4464_v19 = vld [vmem:[#allocation12 + $0x68] sm:$0xff]  ;;  %v4463_v20 = vld [vmem:[#allocation12 + $0x60] sm:$0xff]  ;;  %p782_p1 = scmp.gt.s32.totalorder %s6266_s23, 0  ;;  %p814_p3 = scmp.lt.s32.totalorder %s6266_s23, 1  ;;  %v850_v47 = vand.u32 15, %v824_v37 }
  0x8d   : > { %v4375_v18 = vld [vmem:[%s5443_s5 + $0x30] sm:$0xff]  ;;  %v4376_v21 = vld [vmem:[%s5443_s5 + $0x38] sm:$0xff]  ;;  %v5490_v25 = vld [vmem:[%s6267_s21] ss:$0 sm:$0xff]  ;;  %v857_v48 = vand.u32 15, %v825_v38  ;;  %vm5600_vm8 = vcmp.ge.s32.totalorder %v843_v33, 1 }
  0x8e   : > { %v4462_v22 = vld [vmem:[#allocation12 + $0x58] sm:$0xff]  ;;  %v4461_v23 = vld [vmem:[#allocation12 + $0x50] sm:$0xff]  ;;  %s783_s14 = scalar_select %p782_p1, 1, 0  ;;  %v4460_v27 = vld [vmem:[#allocation12 + $0x48] sm:$0xff]  ;;  %vm5530_vm5 = vcmp.le.s32.totalorder %v850_v47, 14 }
  0x8f   : > { %679 = vmatpush.bf16.msra.mxu0 %v4366_v2  ;;  %768 = vmatpush.bf16.msra.mxu1 %v4366_v2  ;;  %s815_s19 = scalar_select %p814_p3, 1, 0  ;;  %v4459_v36 = vld [vmem:[#allocation12 + $0x40] sm:$0xff]  ;;  %vm5526_vm4 = vcmp.ge.s32.totalorder %v857_v48, 1 }
  0x90   : > { %800 = vmatpush.bf16.msra.mxu2 %v4366_v2  ;;  %v784_v26 = vstv %s783_s14  ;;  %s4531_s7 = sshll.u32 %s6266_s23, 4  ;;  %s6307_s9 = sld [smem:[#allocation48_spill]] }
  0x91   : > { %vm5497_vm0 = vcmp.eq.s32.totalorder %v784_v26, 1  ;;  %v816_v42 = vstv %s815_s19  ;;  %s4350_s17 = sshll.u32 %s6306_s3, 5  ;;  %s3459_s23 = sshll.u32 %s6080_s24, 4  ;;  %s3460_s23 = int_to_ptr.vmem [resolvable:$true] %s3459_s23 }
  0x92   : > { %vm5510_vm1 = vcmp.eq.s32.totalorder %v816_v42, 1  ;;  %s3456_s20 = sadd.s32 %s4531_s7, %s4350_s17  ;;  %s3444_s14 = scalar_lea.sflag [#allocation6], %s5437_s12 }
  0x93   : > { %680 = vmatpush.bf16.msra.mxu0 %v4365_v3  ;;  %769 = vmatpush.bf16.msra.mxu1 %v4365_v3  ;;  %s4351_s8 = sshll.u32 %s3456_s20, 2 }
  0x94   : > { %801 = vmatpush.bf16.msra.mxu2 %v4365_v3 }
  0x96   : > { %s3458_s30 = scalar_lea.hbm %s6307_s9, %s4351_s8  ;;  %s4969_s25 = scalar_lea.hbm %s6307_s9, 256 }
  0x97   : > { %681 = vmatpush.bf16.msra.mxu0 %v4364_v4  ;;  %770 = vmatpush.bf16.msra.mxu1 %v4364_v4 }
  0x98   : > { %802 = vmatpush.bf16.msra.mxu2 %v4364_v4 }
  0x9b   : > { %682 = vmatpush.bf16.msra.mxu0 %v4363_v5  ;;  %771 = vmatpush.bf16.msra.mxu1 %v4363_v5 }
  0x9c   : > { %803 = vmatpush.bf16.msra.mxu2 %v4363_v5 }
  0x9f   : > { %683 = vmatpush.bf16.msra.mxu0 %v4362_v6  ;;  %772 = vmatpush.bf16.msra.mxu1 %v4362_v6 }
  0xa0   : > { %804 = vmatpush.bf16.msra.mxu2 %v4362_v6 }
  0xa3   : > { %684 = vmatpush.bf16.msra.mxu0 %v4361_v7  ;;  %773 = vmatpush.bf16.msra.mxu1 %v4361_v7 }
  0xa4   : > { %805 = vmatpush.bf16.msra.mxu2 %v4361_v7  ;;  %v827_v7 = vadd.s32 32, %v5493_v30 }
  0xa6   : > { %685 = vmatmul.bf16.vlgmr.msra.gmra.mxu0 %v4369_v8  ;;  %774 = vmatmul.bf16.vlgmr.msra.gmra.mxu1 %v4377_v9  ;;  %v871_v24 = vand.u32 15, %v827_v7 }
  0xa7   : > { %806 = vmatmul.bf16.vlgmr.msra.gmra.mxu2 %v4378_v10  ;;  %2830 = vmatpush.bf16.msrb.mxu1 %v4466_v16 }
  0xa8   : > { %4579 = vmatpush.bf16.msrb.mxu2 %v4466_v16  ;;  %vm5584_vm6 = vcmp.ge.s32.totalorder %v871_v24, 1 }
  0xab   : > { %2831 = vmatpush.bf16.msrb.mxu1 %v4465_v17 }
  0xac   : > { %4580 = vmatpush.bf16.msrb.mxu2 %v4465_v17 }
  0xaf   : > { %2832 = vmatpush.bf16.msrb.mxu1 %v4464_v19 }
  0xb0   : > { %4581 = vmatpush.bf16.msrb.mxu2 %v4464_v19 }
  0xb3   : > { %2833 = vmatpush.bf16.msrb.mxu1 %v4463_v20 }
  0xb4   : > { %4582 = vmatpush.bf16.msrb.mxu2 %v4463_v20  ;;  %v838_v20 = vadd.s32 120, %v5493_v30 }
  0xb6   : > { %690 = vmatmul.bf16.gmra.mxu0 %v4370_v11 }
  0xb7   : > { %2834 = vmatpush.bf16.msrb.mxu1 %v4462_v22 }
  0xb8   : > { %4583 = vmatpush.bf16.msrb.mxu2 %v4462_v22 }
  0xbb   : > { %2835 = vmatpush.bf16.msrb.mxu1 %v4461_v23 }
  0xbc   : > { %4584 = vmatpush.bf16.msrb.mxu2 %v4461_v23 }
  0xbf   : > { %2836 = vmatpush.bf16.msrb.mxu1 %v4460_v27 }
  0xc0   : > { %4585 = vmatpush.bf16.msrb.mxu2 %v4460_v27 }
  0xc3   : > { %2837 = vmatpush.bf16.msrb.mxu1 %v4459_v36 }
  0xc4   : > { %4586 = vmatpush.bf16.msrb.mxu2 %v4459_v36 }
  0xc6   : > { %695 = vmatmul.bf16.gmra.mxu0 %v4371_v12  ;;  %v826_v12 = vadd.s32 24, %v5493_v30 }
  0xd6   : > { %700 = vmatmul.bf16.gmra.mxu0 %v4372_v13 }
  0xe6   : > { %705 = vmatmul.bf16.gmra.mxu0 %v4373_v14 }
  0xf6   : > { %710 = vmatmul.bf16.gmra.mxu0 %v4374_v15 }
 0x106   : > { %715 = vmatmul.bf16.gmra.mxu0 %v4375_v18 }
 0x116   : > { %720 = vmatmul.bf16.gmra.mxu0 %v4376_v21 }
 0x123   : > { %v686_v28 = vpop.f32.mrf.mxu0  ;;  %v775_v29 = vpop.f32.mrf.mxu1 }
 0x124   : > { %v687_v31 = vadd.f32 %v5490_v25, %v686_v28  ;;  %v776_v32 = vadd.f32 %v5490_v25, %v775_v29 }
 0x126   : > { %v726_v34 = vmax.f32 %v687_v31, 0.0  ;;  %v780_v35 = vmax.f32 %v776_v32, 0.0 }
 0x128   : > { %v1194_v39 = vpack.c.bf16 %v726_v34, %v726_v34  ;;  %v5505_v40 = vsel %vm5497_vm0, %v780_v35, 0.0  ;;  %v5520_v55 = vrot.slane %v726_v34, 7  ;;  %v5534_v59 = vrot.slane %v726_v34, 1 }
 0x129   : > { %v1192_v41 = vpack.c.bf16 %v5505_v40, %v5505_v40  ;;  %v1079_v60 = vrot.slane %v5505_v40, 7  ;;  %v1224_v63 = vrot.slane %v5505_v40, 1  ;;  %v864_v34 = vand.u32 15, %v826_v12 }
 0x12a   : > { %1210 = vst [vmem:[#allocation3 + $0x4c] sm:$0xf] %v1194_v39  ;;  %v807_v43 = vpop.f32.mrf.mxu2  ;;  %v829_v12 = vadd.s32 48, %v5493_v30 }
 0x12b   : > { %1449 = vst [vmem:[#allocation3 + $0x10] sm:$0xf] %v1194_v39  ;;  %v808_v44 = vadd.f32 %v5490_v25, %v807_v43  ;;  %v688_v45 = vpop.f32.mrf.mxu0  ;;  %v777_v46 = vpop.f32.mrf.mxu1  ;;  %v948_v39 = vand.u32 15, %v838_v20  ;;  %vm5596_vm7 = vcmp.le.s32.totalorder %v864_v34, 14 }
 0x12c   : > { %1208 = vst [vmem:[#allocation3 + $0x4] sm:$0xf] %v1192_v41  ;;  %v689_v50 = vadd.f32 %v5490_v25, %v688_v45  ;;  %v778_v51 = vadd.f32 %v5490_v25, %v777_v46 }
 0x12d   : > { %v812_v52 = vmax.f32 %v808_v44, 0.0  ;;  %vm5619_vm9 = vcmp.le.s32.totalorder %v948_v39, 14 }
 0x12e   : > { %v5516_v53 = vmax.f32 %v689_v50, 0.0  ;;  %v781_v54 = vmax.f32 %v778_v51, 0.0 }
 0x12f   : > { %v5524_v56 = vsel %vm5510_vm1, %v812_v52, 0.0 }
 0x130   : > { %v1655_v61 = vpack.c.bf16 %v5524_v56, %v5524_v56  ;;  %v1082_v62 = vrot.slane %v5516_v53, 7  ;;  %v1195_v0 = vpack.c.bf16 %v5516_v53, %v5516_v53  ;;  %v1227_v1 = vrot.slane %v5516_v53, 1 }
 0x131   : > { %v787_v2 = vsel %vm5497_vm0, %v781_v54, 0.0  ;;  %v1575_v26 = vrot.slane %v5524_v56, 7  ;;  %v1687_v27 = vrot.slane %v5524_v56, 1 }
 0x132   : > { %1671 = vst [vmem:[#allocation3 + $0x214] sm:$0xf] %v1655_v61  ;;  %v1108_v3 = vsel %vm1095_vm2, %v5520_v55, %v1082_v62  ;;  %v1080_v4 = vrot.slane %v787_v2, 7  ;;  %v1225_v5 = vrot.slane %v787_v2, 1  ;;  %v809_v6 = vpop.f32.mrf.mxu2  ;;  %v1253_v9 = vsel %vm1240_vm3, %v5534_v59, %v1227_v1 }
 0x133   : > { %v1163_v8 = vpack.c.bf16 %v1108_v3, %v1108_v3  ;;  %1211 = vst [vmem:[#allocation3 + $0x70] sm:$0xf] %v1195_v0  ;;  %v810_v10 = vadd.f32 %v5490_v25, %v809_v6  ;;  %v691_v11 = vpop.f32.mrf.mxu0  ;;  %v1307_v13 = vpack.c.bf16 %v1253_v9, %v1253_v9  ;;  %v1193_v28 = vpack.c.bf16 %v787_v2, %v787_v2 }
 0x134   : > { %1450 = vst [vmem:[#allocation3 + $0x34] sm:$0xf] %v1195_v0  ;;  %v1109_v14 = vsel %vm1095_vm2, %v1080_v4, %v5520_v55  ;;  %v1110_v15 = vsel %vm1095_vm2, %v1079_v60, %v1080_v4  ;;  %v1254_v16 = vsel %vm1240_vm3, %v1225_v5, %v5534_v59  ;;  %v1255_v19 = vsel %vm1240_vm3, %v1224_v63, %v1225_v5 }
 0x135   : > { %1179 = vst [vmem:[#allocation3 + $0x6c] sm:$0xf] %v1163_v8  ;;  %v1146_v17 = vsel %vm5526_vm4, %v1109_v14, 0.0  ;;  %v1161_v18 = vpack.c.bf16 %v1110_v15, %v1110_v15  ;;  %v1290_v22 = vsel %vm5530_vm5, %v1254_v16, 0.0  ;;  %v813_v23 = vmax.f32 %v810_v10, 0.0 }
 0x136   : > { %1323 = vst [vmem:[#allocation3 + $0x50] sm:$0xf] %v1307_v13  ;;  %v1162_v21 = vpack.c.bf16 %v1146_v17, %v1146_v17  ;;  %v692_v29 = vadd.f32 %v5490_v25, %v691_v11  ;;  %v1305_v31 = vpack.c.bf16 %v1255_v19, %v1255_v19  ;;  %v1306_v35 = vpack.c.bf16 %v1290_v22, %v1290_v22  ;;  %v4379_v10 = vld [vmem:[#allocation3 + $0x4] sm:$0xf] }
 0x137   : > { %1418 = vst [vmem:[#allocation3 + $0x30] sm:$0xf] %v1163_v8  ;;  %v819_v32 = vsel %vm5510_vm1, %v813_v23, 0.0  ;;  %v828_v16 = vadd.s32 40, %v5493_v30 }
 0x138   : > { %1529 = vst [vmem:[#allocation3 + $0x14] sm:$0xf] %v1307_v13  ;;  %v1576_v36 = vrot.slane %v819_v32, 7  ;;  %v1688_v37 = vrot.slane %v819_v32, 1  ;;  %v728_v38 = vmax.f32 %v692_v29, 0.0  ;;  %v1656_v43 = vpack.c.bf16 %v819_v32, %v819_v32 }
 0x139   : > { %1177 = vst [vmem:[#allocation3 + $0x24] sm:$0xf] %v1161_v18  ;;  %v885_v29 = vand.u32 15, %v829_v12  ;;  %v878_v34 = vand.u32 15, %v828_v16 }
 0x13a   : > { %1178 = vst [vmem:[#allocation3 + $0x48] sm:$0xf] %v1162_v21  ;;  %v1577_v42 = vsel %vm1095_vm2, %v1575_v26, %v1576_v36  ;;  %v1689_v44 = vsel %vm1240_vm3, %v1687_v27, %v1688_v37  ;;  %v1083_v45 = vrot.slane %v728_v38, 7  ;;  %v1228_v50 = vrot.slane %v728_v38, 1 }
 0x13b   : > { %1209 = vst [vmem:[#allocation3 + $0x28] sm:$0xf] %v1193_v28  ;;  %v693_v46 = vpop.f32.mrf.mxu0  ;;  %v1624_v47 = vpack.c.bf16 %v1577_v42, %v1577_v42  ;;  %v1735_v48 = vpack.c.bf16 %v1689_v44, %v1689_v44  ;;  %v1196_v2 = vpack.c.bf16 %v728_v38, %v728_v38  ;;  %vm5640_vm10 = vcmp.ge.s32.totalorder %v885_v29, 1 }
 0x13c   : > { %1321 = vst [vmem:[#allocation3 + $0x8] sm:$0xf] %v1305_v31  ;;  %v1107_v52 = vsel %vm1095_vm2, %v1082_v62, %v1083_v45  ;;  %v1592_v54 = vsel %vm1095_vm2, %v1576_v36, %v1083_v45  ;;  %v694_v61 = vadd.f32 %v5490_v25, %v693_v46  ;;  %v1252_v3 = vsel %vm1240_vm3, %v1227_v1, %v1228_v50 }
 0x13d   : > { %1322 = vst [vmem:[#allocation3 + $0x2c] sm:$0xf] %v1306_v35  ;;  %v1148_v0 = vsel %vm5584_vm6, %v1107_v52, 0.0  ;;  %v1387_v4 = vsel %vm5526_vm4, %v1107_v52, 0.0  ;;  %v1292_v6 = vsel %vm5596_vm7, %v1252_v3, 0.0  ;;  %v1498_v7 = vsel %vm5530_vm5, %v1252_v3, 0.0 }
 0x13e   : > { %1640 = vst [vmem:[#allocation3 + $0x234] sm:$0xf] %v1624_v47  ;;  %v1164_v5 = vpack.c.bf16 %v1148_v0, %v1148_v0  ;;  %v1308_v53 = vpack.c.bf16 %v1292_v6, %v1292_v6  ;;  %v1403_v8 = vpack.c.bf16 %v1387_v4, %v1387_v4  ;;  %v1593_v1 = vsel %vm5600_vm8, %v1592_v54, 0.0  ;;  %v4388_v6 = vld [vmem:[#allocation3 + $0x4c] sm:$0xf] }
 0x13f   : > { %1672 = vst [vmem:[#allocation3 + $0x238] sm:$0xf] %v1656_v43  ;;  %v1704_v9 = vsel %vm1240_vm3, %v1688_v37, %v1228_v50  ;;  %v729_v11 = vmax.f32 %v694_v61, 0.0  ;;  %v1514_v13 = vpack.c.bf16 %v1498_v7, %v1498_v7  ;;  %v1609_v17 = vpack.c.bf16 %v1593_v1, %v1593_v1  ;;  %v3779_v61 = vld [vmem:[#allocation3 + $0x6c] sm:$0xf0] }
 0x140   : > { %1751 = vst [vmem:[#allocation3 + $0x218] sm:$0xf] %v1735_v48  ;;  %v1720_v14 = vsel %vm5619_vm9, %v1704_v9, 0.0  ;;  %vm5646_vm11 = vcmp.le.s32.totalorder %v878_v34, 14  ;;  %v831_v1 = vadd.s32 64, %v5493_v30 }
 0x141   : > { %1180 = vst [vmem:[#allocation3 + $0x90] sm:$0xf] %v1164_v5  ;;  %v1084_v18 = vrot.slane %v729_v11, 7  ;;  %v1229_v19 = vrot.slane %v729_v11, 1  ;;  %v1736_v23 = vpack.c.bf16 %v1720_v14, %v1720_v14  ;;  %v1197_v33 = vpack.c.bf16 %v729_v11, %v729_v11 }
 0x142   : > { %1212 = vst [vmem:[#allocation3 + $0x94] sm:$0xf] %v1196_v2  ;;  %v3743_v15 = vld [vmem:[#allocation3 + $0x24] sm:$0xf0]  ;;  %v899_v58 = vand.u32 15, %v831_v1 }
 0x143   : > { %1324 = vst [vmem:[#allocation3 + $0x74] sm:$0xf] %v1308_v53  ;;  %v3746_v20 = vor.u32 %v4379_v10, %v3743_v15  ;;  %v696_v21 = vpop.f32.mrf.mxu0  ;;  %v1106_v24 = vsel %vm1095_vm2, %v1083_v45, %v1084_v18  ;;  %v1251_v28 = vsel %vm1240_vm3, %v1228_v50, %v1229_v19  ;;  %v3782_v53 = vor.u32 %v4388_v6, %v3779_v61  ;;  %v3749_v56 = vld [vmem:[#allocation3 + $0x8] sm:$0xf] }
 0x144   : > { %1419 = vst [vmem:[#allocation3 + $0x54] sm:$0xf] %v1403_v8  ;;  %v697_v22 = vadd.f32 %v5490_v25, %v696_v21  ;;  %v1165_v31 = vpack.c.bf16 %v1106_v24, %v1106_v24  ;;  %v1309_v35 = vpack.c.bf16 %v1251_v28, %v1251_v28  ;;  %vm5676_vm12 = vcmp.ge.s32.totalorder %v899_v58, 1  ;;  %v4469_v58 = vld [vmem:[#allocation12 + $0x90] sm:$0xff] }
 0x145   : > { %1451 = vst [vmem:[#allocation3 + $0x58] sm:$0xf] %v1196_v2  ;;  %2838 = vmatmul.bf16.vlgmr.msrb.gmra.mxu1 %v3746_v20 }
 0x146   : > { %1530 = vst [vmem:[#allocation3 + $0x38] sm:$0xf] %v1514_v13  ;;  %v730_v32 = vmax.f32 %v697_v22, 0.0  ;;  %v830_v13 = vadd.s32 56, %v5493_v30 }
 0x147   : > { %1625 = vst [vmem:[#allocation3 + $0x18] sm:$0xf] %v1609_v17 }
 0x148   : > { %1657 = vst [vmem:[#allocation3 + $0x1c] sm:$0xf] %v1196_v2  ;;  %v1085_v36 = vrot.slane %v730_v32, 7  ;;  %v1230_v37 = vrot.slane %v730_v32, 1  ;;  %v1198_v54 = vpack.c.bf16 %v730_v32, %v730_v32  ;;  %v892_v20 = vand.u32 15, %v830_v13 }
 0x149   : > { %1752 = vst [vmem:[#allocation3 + $0x23c] sm:$0xf] %v1736_v23 }
 0x14a   : > { %1181 = vst [vmem:[#allocation3 + $0xb4] sm:$0xf] %v1165_v31  ;;  %v1105_v39 = vsel %vm1095_vm2, %v1084_v18, %v1085_v36  ;;  %v1250_v43 = vsel %vm1240_vm3, %v1229_v19, %v1230_v37  ;;  %vm5682_vm13 = vcmp.le.s32.totalorder %v892_v20, 14 }
 0x14b   : > { %1213 = vst [vmem:[#allocation3 + $0xb8] sm:$0xf] %v1197_v33  ;;  %v698_v44 = vpop.f32.mrf.mxu0  ;;  %v1150_v45 = vsel %vm5640_vm10, %v1105_v39, 0.0  ;;  %v1294_v47 = vsel %vm5646_vm11, %v1250_v43, 0.0  ;;  %v1389_v50 = vsel %vm5584_vm6, %v1105_v39, 0.0  ;;  %v1500_v2 = vsel %vm5596_vm7, %v1250_v43, 0.0 }
 0x14c   : > { %1325 = vst [vmem:[#allocation3 + $0x98] sm:$0xf] %v1309_v35  ;;  %v699_v46 = vadd.f32 %v5490_v25, %v698_v44  ;;  %v1166_v48 = vpack.c.bf16 %v1150_v45, %v1150_v45  ;;  %v1310_v0 = vpack.c.bf16 %v1294_v47, %v1294_v47  ;;  %v1405_v4 = vpack.c.bf16 %v1389_v50, %v1389_v50  ;;  %v4397_v45 = vld [vmem:[#allocation3 + $0x94] sm:$0xf] }
 0x14d   : > { %1420 = vst [vmem:[#allocation3 + $0x78] sm:$0xf] %v1165_v31  ;;  %v1595_v5 = vsel %vm5526_vm4, %v1105_v39, 0.0  ;;  %v1516_v9 = vpack.c.bf16 %v1500_v2, %v1500_v2  ;;  %v1706_v10 = vsel %vm5530_vm5, %v1250_v43, 0.0  ;;  %v4498_v43 = vld [vmem:[#allocation12 + $0x178] sm:$0xff] }
 0x14e   : > { %1452 = vst [vmem:[#allocation3 + $0x7c] sm:$0xf] %v1197_v33  ;;  %v731_v52 = vmax.f32 %v699_v46, 0.0  ;;  %v1611_v12 = vpack.c.bf16 %v1595_v5, %v1595_v5  ;;  %v1722_v15 = vpack.c.bf16 %v1706_v10, %v1706_v10  ;;  %3026 = vmatpush.bf16.msra.mxu1 %v4498_v43 }
 0x14f   : > { %1531 = vst [vmem:[#allocation3 + $0x5c] sm:$0xf] %v1309_v35 }
 0x150   : > { %1626 = vst [vmem:[#allocation3 + $0x3c] sm:$0xf] %v1165_v31  ;;  %v1086_v3 = vrot.slane %v731_v52, 7  ;;  %v1231_v7 = vrot.slane %v731_v52, 1  ;;  %v1199_v19 = vpack.c.bf16 %v731_v52, %v731_v52 }
 0x151   : > { %1658 = vst [vmem:[#allocation3 + $0x40] sm:$0xf] %v1197_v33 }
 0x152   : > { %1737 = vst [vmem:[#allocation3 + $0x20] sm:$0xf] %v1309_v35  ;;  %v1104_v57 = vsel %vm1095_vm2, %v1085_v36, %v1086_v3  ;;  %v1249_v16 = vsel %vm1240_vm3, %v1230_v37, %v1231_v7  ;;  %v3815_v36 = vld [vmem:[#allocation3 + $0xb4] sm:$0xf0] }
 0x153   : > { %1182 = vst [vmem:[#allocation3 + $0xd8] sm:$0xf] %v1166_v48  ;;  %v701_v8 = vpop.f32.mrf.mxu0  ;;  %v1167_v17 = vpack.c.bf16 %v1104_v57, %v1104_v57  ;;  %v1311_v22 = vpack.c.bf16 %v1249_v16, %v1249_v16  ;;  %v3818_v50 = vor.u32 %v4397_v45, %v3815_v36 }
 0x154   : > { %1214 = vst [vmem:[#allocation3 + $0xdc] sm:$0xf] %v1198_v54  ;;  %v702_v11 = vadd.f32 %v5490_v25, %v701_v8  ;;  %v832_v8 = vadd.s32 72, %v5493_v30 }
 0x155   : > { %1326 = vst [vmem:[#allocation3 + $0xbc] sm:$0xf] %v1310_v0  ;;  %2843 = vmatmul.bf16.gmra.mxu1 %v3782_v53 }
 0x156   : > { %1421 = vst [vmem:[#allocation3 + $0x9c] sm:$0xf] %v1405_v4  ;;  %v5670_v14 = vmax.f32 %v702_v11, 0.0  ;;  %v4497_v4 = vld [vmem:[#allocation12 + $0x170] sm:$0xff]  ;;  %v906_v13 = vand.u32 15, %v832_v8 }
 0x157   : > { %1453 = vst [vmem:[#allocation3 + $0xa0] sm:$0xf] %v1198_v54  ;;  %3027 = vmatpush.bf16.msra.mxu1 %v4497_v4 }
 0x158   : > { %1532 = vst [vmem:[#allocation3 + $0x80] sm:$0xf] %v1516_v9  ;;  %v1087_v18 = vrot.slane %v5670_v14, 7  ;;  %v1232_v21 = vrot.slane %v5670_v14, 1  ;;  %v1200_v44 = vpack.c.bf16 %v5670_v14, %v5670_v14  ;;  %vm5727_vm15 = vcmp.le.s32.totalorder %v906_v13, 14 }
 0x159   : > { %1627 = vst [vmem:[#allocation3 + $0x60] sm:$0xf] %v1611_v12  ;;  %v4496_v12 = vld [vmem:[#allocation12 + $0x168] sm:$0xff] }
 0x15a   : > { %1659 = vst [vmem:[#allocation3 + $0x64] sm:$0xf] %v1198_v54  ;;  %v1103_v24 = vsel %vm1095_vm2, %v1086_v3, %v1087_v18  ;;  %v1248_v31 = vsel %vm1240_vm3, %v1231_v7, %v1232_v21  ;;  %v833_v3 = vadd.s32 80, %v5493_v30 }
 0x15b   : > { %1738 = vst [vmem:[#allocation3 + $0x44] sm:$0xf] %v1722_v15  ;;  %v703_v28 = vpop.f32.mrf.mxu0  ;;  %v1152_v33 = vsel %vm5676_vm12, %v1103_v24, 0.0  ;;  %v1296_v35 = vsel %vm5682_vm13, %v1248_v31, 0.0  ;;  %v1391_v39 = vsel %vm5640_vm10, %v1103_v24, 0.0  ;;  %v1502_v47 = vsel %vm5646_vm11, %v1248_v31, 0.0  ;;  %3028 = vmatpush.bf16.msra.mxu1 %v4496_v12 }
 0x15c   : > { %1183 = vst [vmem:[#allocation3 + $0xfc] sm:$0xf] %v1167_v17  ;;  %v704_v32 = vadd.f32 %v5490_v25, %v703_v28  ;;  %v1168_v37 = vpack.c.bf16 %v1152_v33, %v1152_v33  ;;  %v1312_v46 = vpack.c.bf16 %v1296_v35, %v1296_v35  ;;  %v1407_v54 = vpack.c.bf16 %v1391_v39, %v1391_v39 }
 0x15d   : > { %1215 = vst [vmem:[#allocation3 + $0x100] sm:$0xf] %v1199_v19  ;;  %v1597_v61 = vsel %vm5584_vm6, %v1103_v24, 0.0  ;;  %v1518_v5 = vpack.c.bf16 %v1502_v47, %v1502_v47  ;;  %v1708_v6 = vsel %vm5596_vm7, %v1248_v31, 0.0  ;;  %v913_v10 = vand.u32 15, %v833_v3 }
 0x15e   : > { %1327 = vst [vmem:[#allocation3 + $0xe0] sm:$0xf] %v1311_v22  ;;  %v5691_v34 = vmax.f32 %v704_v32, 0.0  ;;  %v1613_v53 = vpack.c.bf16 %v1597_v61, %v1597_v61  ;;  %v1724_v1 = vpack.c.bf16 %v1708_v6, %v1708_v6  ;;  %v4406_v32 = vld [vmem:[#allocation3 + $0xdc] sm:$0xf]  ;;  %v835_v61 = vadd.s32 96, %v5493_v30 }
 0x15f   : > { %1422 = vst [vmem:[#allocation3 + $0xc0] sm:$0xf] %v1167_v17  ;;  %vm5720_vm14 = vcmp.ge.s32.totalorder %v913_v10, 1 }
 0x160   : > { %1454 = vst [vmem:[#allocation3 + $0xc4] sm:$0xf] %v1199_v19  ;;  %v1088_v48 = vrot.slane %v5691_v34, 7  ;;  %v1233_v2 = vrot.slane %v5691_v34, 1  ;;  %v1201_v57 = vpack.c.bf16 %v5691_v34, %v5691_v34 }
 0x161   : > { %1533 = vst [vmem:[#allocation3 + $0xa4] sm:$0xf] %v1311_v22 }
 0x162   : > { %1628 = vst [vmem:[#allocation3 + $0x84] sm:$0xf] %v1167_v17  ;;  %v1102_v41 = vsel %vm1095_vm2, %v1087_v18, %v1088_v48  ;;  %v1247_v9 = vsel %vm1240_vm3, %v1232_v21, %v1233_v2 }
 0x163   : > { %1660 = vst [vmem:[#allocation3 + $0x88] sm:$0xf] %v1199_v19  ;;  %v706_v52 = vpop.f32.mrf.mxu0  ;;  %v1169_v11 = vpack.c.bf16 %v1102_v41, %v1102_v41  ;;  %v1313_v16 = vpack.c.bf16 %v1247_v9, %v1247_v9  ;;  %v4495_v19 = vld [vmem:[#allocation12 + $0x160] sm:$0xff]  ;;  %v4492_v9 = vld [vmem:[#allocation12 + $0x148] sm:$0xff] }
 0x164   : > { %1739 = vst [vmem:[#allocation3 + $0x68] sm:$0xf] %v1311_v22  ;;  %v707_v0 = vadd.f32 %v5490_v25, %v706_v52  ;;  %v3851_v24 = vld [vmem:[#allocation3 + $0xfc] sm:$0xf0]  ;;  %3029 = vmatpush.bf16.msra.mxu1 %v4495_v19 }
 0x165   : > { %1184 = vst [vmem:[#allocation3 + $0x120] sm:$0xf] %v1168_v37  ;;  %2848 = vmatmul.bf16.gmra.mxu1 %v3818_v50  ;;  %v3854_v35 = vor.u32 %v4406_v32, %v3851_v24  ;;  %v4494_v37 = vld [vmem:[#allocation12 + $0x158] sm:$0xff] }
 0x166   : > { %1216 = vst [vmem:[#allocation3 + $0x124] sm:$0xf] %v1200_v44  ;;  %v5709_v7 = vmax.f32 %v707_v0, 0.0  ;;  %v4458_v50 = vld [vmem:[#allocation12 + $0x38] sm:$0xff]  ;;  %v4493_v0 = vld [vmem:[#allocation12 + $0x150] sm:$0xff] }
 0x167   : > { %1328 = vst [vmem:[#allocation3 + $0x104] sm:$0xf] %v1312_v46  ;;  %2781 = vmatpush.bf16.msra.mxu3 %v4458_v50 }
 0x168   : > { %1423 = vst [vmem:[#allocation3 + $0xe4] sm:$0xf] %v1407_v54  ;;  %v1089_v49 = vrot.slane %v5709_v7, 7  ;;  %v1234_v14 = vrot.slane %v5709_v7, 1  ;;  %v1202_v39 = vpack.c.bf16 %v5709_v7, %v5709_v7  ;;  %3030 = vmatpush.bf16.msra.mxu1 %v4494_v37  ;;  %v836_v37 = vadd.s32 104, %v5493_v30 }
 0x169   : > { %1455 = vst [vmem:[#allocation3 + $0xe8] sm:$0xf] %v1200_v44 }
 0x16a   : > { %1534 = vst [vmem:[#allocation3 + $0xc8] sm:$0xf] %v1518_v5  ;;  %v1101_v17 = vsel %vm1095_vm2, %v1088_v48, %v1089_v49  ;;  %v1246_v21 = vsel %vm1240_vm3, %v1233_v2, %v1234_v14  ;;  %v834_v5 = vadd.s32 88, %v5493_v30 }
 0x16b   : > { %1629 = vst [vmem:[#allocation3 + $0xa8] sm:$0xf] %v1613_v53  ;;  %v708_v15 = vpop.f32.mrf.mxu0  ;;  %v1154_v22 = vsel %vm5720_vm14, %v1101_v17, 0.0  ;;  %v1298_v31 = vsel %vm5727_vm15, %v1246_v21, 0.0  ;;  %v1393_v34 = vsel %vm5676_vm12, %v1101_v17, 0.0  ;;  %v1504_v45 = vsel %vm5682_vm13, %v1246_v21, 0.0 }
 0x16c   : > { %1661 = vst [vmem:[#allocation3 + $0xac] sm:$0xf] %v1200_v44  ;;  %v709_v18 = vadd.f32 %v5490_v25, %v708_v15  ;;  %v1170_v33 = vpack.c.bf16 %v1154_v22, %v1154_v22  ;;  %v1314_v44 = vpack.c.bf16 %v1298_v31, %v1298_v31  ;;  %v1409_v47 = vpack.c.bf16 %v1393_v34, %v1393_v34 }
 0x16d   : > { %1740 = vst [vmem:[#allocation3 + $0x8c] sm:$0xf] %v1724_v1  ;;  %v1599_v48 = vsel %vm5640_vm10, %v1101_v17, 0.0  ;;  %v1520_v2 = vpack.c.bf16 %v1504_v45, %v1504_v45  ;;  %v1710_v3 = vsel %vm5646_vm11, %v1246_v21, 0.0  ;;  %3031 = vmatpush.bf16.msra.mxu1 %v4493_v0  ;;  %v927_v53 = vand.u32 15, %v835_v61  ;;  %v4457_v1 = vld [vmem:[#allocation12 + $0x30] sm:$0xff] }
 0x16e   : > { %1185 = vst [vmem:[#allocation3 + $0x144] sm:$0xf] %v1169_v11  ;;  %v5735_v28 = vmax.f32 %v709_v18, 0.0  ;;  %v1615_v4 = vpack.c.bf16 %v1599_v48, %v1599_v48  ;;  %v1726_v6 = vpack.c.bf16 %v1710_v3, %v1710_v3  ;;  %2782 = vmatpush.bf16.msra.mxu3 %v4457_v1  ;;  %v4491_v17 = vld [vmem:[#allocation12 + $0x140] sm:$0xff]  ;;  %v837_v3 = vadd.s32 112, %v5493_v30 }
 0x16f   : > { %1217 = vst [vmem:[#allocation3 + $0x148] sm:$0xf] %v1201_v57  ;;  %vm5764_vm0 = vcmp.ge.s32.totalorder %v927_v53, 1  ;;  %v4415_v22 = vld [vmem:[#allocation3 + $0x124] sm:$0xf] }
 0x170   : > { %1329 = vst [vmem:[#allocation3 + $0x128] sm:$0xf] %v1313_v16  ;;  %v1090_v46 = vrot.slane %v5735_v28, 7  ;;  %v1235_v52 = vrot.slane %v5735_v28, 1  ;;  %v1203_v10 = vpack.c.bf16 %v5735_v28, %v5735_v28 }
 0x171   : > { %1424 = vst [vmem:[#allocation3 + $0x108] sm:$0xf] %v1169_v11  ;;  %3032 = vmatpush.bf16.msra.mxu1 %v4492_v9  ;;  %v941_v9 = vand.u32 15, %v837_v3 }
 0x172   : > { %1456 = vst [vmem:[#allocation3 + $0x10c] sm:$0xf] %v1201_v57  ;;  %v1100_v38 = vsel %vm1095_vm2, %v1089_v49, %v1090_v46  ;;  %v1245_v7 = vsel %vm1240_vm3, %v1234_v14, %v1235_v52  ;;  %v920_v49 = vand.u32 15, %v834_v5  ;;  %v4473_v5 = vld [vmem:[#allocation12 + $0xb0] sm:$0xff] }
 0x173   : > { %1535 = vst [vmem:[#allocation3 + $0xec] sm:$0xf] %v1313_v16  ;;  %v711_v36 = vpop.f32.mrf.mxu0  ;;  %v1171_v8 = vpack.c.bf16 %v1100_v38, %v1100_v38  ;;  %v1315_v12 = vpack.c.bf16 %v1245_v7, %v1245_v7  ;;  %v4454_v38 = vld [vmem:[#allocation12 + $0x18] sm:$0xff]  ;;  %vm5817_vm4 = vcmp.ge.s32.totalorder %v941_v9, 1 }
 0x174   : > { %1630 = vst [vmem:[#allocation3 + $0xcc] sm:$0xf] %v1169_v11  ;;  %v712_v43 = vadd.f32 %v5490_v25, %v711_v36  ;;  %vm5773_vm1 = vcmp.le.s32.totalorder %v920_v49, 14 }
 0x175   : > { %1662 = vst [vmem:[#allocation3 + $0xd0] sm:$0xf] %v1201_v57  ;;  %2853 = vmatmul.bf16.gmra.mxu1 %v3854_v35 }
 0x176   : > { %1741 = vst [vmem:[#allocation3 + $0xb0] sm:$0xf] %v1313_v16  ;;  %v5750_v54 = vmax.f32 %v712_v43, 0.0  ;;  %v3887_v15 = vld [vmem:[#allocation3 + $0x144] sm:$0xf0]  ;;  %3033 = vmatpush.bf16.msra.mxu1 %v4491_v17  ;;  %v4474_v43 = vld [vmem:[#allocation12 + $0xb8] sm:$0xff] }
 0x177   : > { %1186 = vst [vmem:[#allocation3 + $0x168] sm:$0xf] %v1170_v33  ;;  %v4456_v16 = vld [vmem:[#allocation12 + $0x28] sm:$0xff]  ;;  %v3890_v28 = vor.u32 %v4415_v22, %v3887_v15  ;;  %2879 = vmatpush.bf16.msra.mxu2 %v4474_v43  ;;  %v4481_v15 = vld [vmem:[#allocation12 + $0xf0] sm:$0xff]  ;;  %v4451_v43 = vld [vmem:[#allocation12] sm:$0xff] }
 0x178   : > { %1218 = vst [vmem:[#allocation3 + $0x16c] sm:$0xf] %v1202_v39  ;;  %v1091_v41 = vrot.slane %v5750_v54, 7  ;;  %v1236_v11 = vrot.slane %v5750_v54, 1  ;;  %2783 = vmatpush.bf16.msra.mxu3 %v4456_v16  ;;  %v1204_v36 = vpack.c.bf16 %v5750_v54, %v5750_v54  ;;  %v3759_v16 = vld [vmem:[#allocation3 + $0x34] sm:$0xf0] }
 0x179   : > { %1330 = vst [vmem:[#allocation3 + $0x14c] sm:$0xf] %v1314_v44  ;;  %v4381_v22 = vld [vmem:[#allocation3 + $0x14] sm:$0xf] }
 0x17a   : > { %1425 = vst [vmem:[#allocation3 + $0x12c] sm:$0xf] %v1409_v47  ;;  %v1099_v13 = vsel %vm1095_vm2, %v1090_v46, %v1091_v41  ;;  %v1244_v19 = vsel %vm1240_vm3, %v1235_v52, %v1236_v11 }
 0x17b   : > { %1457 = vst [vmem:[#allocation3 + $0x130] sm:$0xf] %v1202_v39  ;;  %v713_v42 = vpop.f32.mrf.mxu0  ;;  %v1156_v21 = vsel %vm5764_vm0, %v1099_v13, 0.0  ;;  %v1300_v32 = vsel %vm5773_vm1, %v1244_v19, 0.0  ;;  %v1395_v34 = vsel %vm5720_vm14, %v1099_v13, 0.0  ;;  %v1506_v45 = vsel %vm5727_vm15, %v1244_v19, 0.0  ;;  %2880 = vmatpush.bf16.msra.mxu2 %v4473_v5 }
 0x17c   : > { %1536 = vst [vmem:[#allocation3 + $0x110] sm:$0xf] %v1520_v2  ;;  %v714_v14 = vadd.f32 %v5490_v25, %v713_v42  ;;  %v1172_v33 = vpack.c.bf16 %v1156_v21, %v1156_v21  ;;  %v1316_v44 = vpack.c.bf16 %v1300_v32, %v1300_v32  ;;  %v1601_v46 = vsel %vm5676_vm12, %v1099_v13, 0.0  ;;  %v4453_v13 = vld [vmem:[#allocation12 + $0x10] sm:$0xff]  ;;  %v4471_v32 = vld [vmem:[#allocation12 + $0xa0] sm:$0xff] }
 0x17d   : > { %1631 = vst [vmem:[#allocation3 + $0xf0] sm:$0xf] %v1615_v4  ;;  %v1411_v48 = vpack.c.bf16 %v1395_v34, %v1395_v34  ;;  %v1522_v4 = vpack.c.bf16 %v1506_v45, %v1506_v45  ;;  %v1712_v23 = vsel %vm5682_vm13, %v1244_v19, 0.0  ;;  %v1617_v7 = vpack.c.bf16 %v1601_v46, %v1601_v46  ;;  %v4479_v45 = vld [vmem:[#allocation12 + $0xe0] sm:$0xff] }
 0x17e   : > { %1663 = vst [vmem:[#allocation3 + $0xf4] sm:$0xf] %v1202_v39  ;;  %v5783_v24 = vmax.f32 %v714_v14, 0.0  ;;  %v4455_v39 = vld [vmem:[#allocation12 + $0x20] sm:$0xff]  ;;  %v1728_v1 = vpack.c.bf16 %v1712_v23, %v1712_v23  ;;  %v4472_v14 = vld [vmem:[#allocation12 + $0xa8] sm:$0xff]  ;;  %v3762_v34 = vor.u32 %v4381_v22, %v3759_v16 }
 0x17f   : > { %1742 = vst [vmem:[#allocation3 + $0xd4] sm:$0xf] %v1726_v6  ;;  %v4424_v50 = vld [vmem:[#allocation3 + $0x16c] sm:$0xf]  ;;  %2784 = vmatpush.bf16.msra.mxu3 %v4455_v39  ;;  %v4482_v6 = vld [vmem:[#allocation12 + $0xf8] sm:$0xff]  ;;  %2881 = vmatpush.bf16.msra.mxu2 %v4472_v14 }
 0x180   : > { %1187 = vst [vmem:[#allocation3 + $0x18c] sm:$0xf] %v1171_v8  ;;  %v1092_v47 = vrot.slane %v5783_v24, 7  ;;  %v1237_v61 = vrot.slane %v5783_v24, 1  ;;  %2928 = vmatpush.bf16.msrb.mxu0 %v4482_v6  ;;  %v1205_v54 = vpack.c.bf16 %v5783_v24, %v5783_v24  ;;  %v4478_v6 = vld [vmem:[#allocation12 + $0xd8] sm:$0xff] }
 0x181   : > { %1219 = vst [vmem:[#allocation3 + $0x190] sm:$0xf] %v1203_v10  ;;  %v4390_v22 = vld [vmem:[#allocation3 + $0x5c] sm:$0xf] }
 0x182   : > { %1331 = vst [vmem:[#allocation3 + $0x170] sm:$0xf] %v1315_v12  ;;  %v1098_v53 = vsel %vm1095_vm2, %v1091_v41, %v1092_v47  ;;  %v1243_v29 = vsel %vm1240_vm3, %v1236_v11, %v1237_v61 }
 0x183   : > { %1426 = vst [vmem:[#allocation3 + $0x150] sm:$0xf] %v1171_v8  ;;  %v716_v31 = vpop.f32.mrf.mxu0  ;;  %2785 = vmatpush.bf16.msra.mxu3 %v4454_v38  ;;  %v1173_v49 = vpack.c.bf16 %v1098_v53, %v1098_v53  ;;  %v1317_v11 = vpack.c.bf16 %v1243_v29, %v1243_v29  ;;  %2882 = vmatpush.bf16.msra.mxu2 %v4471_v32  ;;  %v4467_v32 = vld [vmem:[#allocation12 + $0x80] sm:$0xff]  ;;  %v3867_v19 = vld [vmem:[#allocation3 + $0x10c] sm:$0xf0] }
 0x184   : > { %1458 = vst [vmem:[#allocation3 + $0x154] sm:$0xf] %v1203_v10  ;;  %v717_v35 = vadd.f32 %v5490_v25, %v716_v31  ;;  %2929 = vmatpush.bf16.msrb.mxu0 %v4481_v15  ;;  %v4452_v31 = vld [vmem:[#allocation12 + $0x8] sm:$0xff] }
 0x185   : > { %1537 = vst [vmem:[#allocation3 + $0x134] sm:$0xf] %v1315_v12  ;;  %2858 = vmatmul.bf16.gmra.mxu1 %v3890_v28 }
 0x186   : > { %1632 = vst [vmem:[#allocation3 + $0x114] sm:$0xf] %v1171_v8  ;;  %v5799_v2 = vmax.f32 %v717_v35, 0.0  ;;  %v934_v8 = vand.u32 15, %v836_v37 }
 0x187   : > { %1664 = vst [vmem:[#allocation3 + $0x118] sm:$0xf] %v1203_v10  ;;  %2786 = vmatpush.bf16.msra.mxu3 %v4453_v13  ;;  %v4477_v13 = vld [vmem:[#allocation12 + $0xd0] sm:$0xff] }
 0x188   : > { %1743 = vst [vmem:[#allocation3 + $0xf8] sm:$0xf] %v1315_v12  ;;  %v3923_v52 = vld [vmem:[#allocation3 + $0x18c] sm:$0xf0]  ;;  %v1093_v10 = vrot.slane %v5799_v2, 7  ;;  %v1238_v41 = vrot.slane %v5799_v2, 1 }
 0x189   : > { %1188 = vst [vmem:[#allocation3 + $0x1b0] sm:$0xf] %v1172_v33  ;;  %v3926_v0 = vor.u32 %v4424_v50, %v3923_v52  ;;  %vm5821_vm5 = vcmp.le.s32.totalorder %v934_v8, 14  ;;  %v4480_v33 = vld [vmem:[#allocation12 + $0xe8] sm:$0xff] }
 0x18a   : > { %1220 = vst [vmem:[#allocation3 + $0x1b4] sm:$0xf] %v1204_v36  ;;  %v1097_v21 = vsel %vm1095_vm2, %v1092_v47, %v1093_v10  ;;  %v1242_v24 = vsel %vm1240_vm3, %v1237_v61, %v1238_v41  ;;  %2930 = vmatpush.bf16.msrb.mxu0 %v4480_v33  ;;  %v4476_v33 = vld [vmem:[#allocation12 + $0xc8] sm:$0xff] }
 0x18b   : > { %1332 = vst [vmem:[#allocation3 + $0x194] sm:$0xf] %v1316_v44  ;;  %2863 = vmatmul.bf16.vlgmr.msrb.gmra.mxu2 %v3926_v0  ;;  %v718_v42 = vpop.f32.mrf.mxu0  ;;  %v1302_v37 = vsel %vm5821_vm5, %v1242_v24, 0.0  ;;  %2787 = vmatpush.bf16.msra.mxu3 %v4452_v31  ;;  %v4470_v44 = vld [vmem:[#allocation12 + $0x98] sm:$0xff]  ;;  %v1397_v47 = vsel %vm5764_vm0, %v1097_v21, 0.0  ;;  %v1508_v50 = vsel %vm5773_vm1, %v1242_v24, 0.0 }
 0x18c   : > { %1427 = vst [vmem:[#allocation3 + $0x174] sm:$0xf] %v1411_v48  ;;  %v719_v12 = vadd.f32 %v5490_v25, %v718_v42  ;;  %v1206_v48 = vpack.c.bf16 %v5799_v2, %v5799_v2  ;;  %v1318_v52 = vpack.c.bf16 %v1302_v37, %v1302_v37  ;;  %v1603_v61 = vsel %vm5720_vm14, %v1097_v21, 0.0  ;;  %2883 = vmatpush.bf16.msra.mxu2 %v4470_v44  ;;  %v4475_v37 = vld [vmem:[#allocation12 + $0xc0] sm:$0xff] }
 0x18d   : > { %1459 = vst [vmem:[#allocation3 + $0x178] sm:$0xf] %v1204_v36  ;;  %v1413_v23 = vpack.c.bf16 %v1397_v47, %v1397_v47  ;;  %v1524_v53 = vpack.c.bf16 %v1508_v50, %v1508_v50  ;;  %v1714_v42 = vsel %vm5727_vm15, %v1242_v24, 0.0  ;;  %v4383_v44 = vld [vmem:[#allocation3 + $0x20] sm:$0xf0] }
 0x18e   : > { %1538 = vst [vmem:[#allocation3 + $0x158] sm:$0xf] %v1522_v4  ;;  %v5833_v28 = vmax.f32 %v719_v12, 0.0  ;;  %2931 = vmatpush.bf16.msrb.mxu0 %v4479_v45  ;;  %v4468_v12 = vld [vmem:[#allocation12 + $0x88] sm:$0xff]  ;;  %v1730_v14 = vpack.c.bf16 %v1714_v42, %v1714_v42 }
 0x18f   : > { %1633 = vst [vmem:[#allocation3 + $0x138] sm:$0xf] %v1617_v7  ;;  %2788 = vmatpush.bf16.msra.mxu3 %v4451_v43 }
 0x190   : > { %1665 = vst [vmem:[#allocation3 + $0x13c] sm:$0xf] %v1204_v36  ;;  %v1158_v36 = vsel %vm5817_vm4, %v1097_v21, 0.0  ;;  %v5840_v39 = vrot.slane %v5833_v28, 7  ;;  %v5851_v0 = vrot.slane %v5833_v28, 1  ;;  %2884 = vmatpush.bf16.msra.mxu2 %v4469_v58  ;;  %v4489_v21 = vld [vmem:[#allocation12 + $0x130] sm:$0xff] }
 0x191   : > { %1744 = vst [vmem:[#allocation3 + $0x11c] sm:$0xf] %v1728_v1  ;;  %v1174_v46 = vpack.c.bf16 %v1158_v36, %v1158_v36  ;;  %v4433_v3 = vld [vmem:[#allocation3 + $0x1b4] sm:$0xf]  ;;  %v1619_v1 = vpack.c.bf16 %v1603_v61, %v1603_v61 }
 0x192   : > { %1189 = vst [vmem:[#allocation3 + $0x1d4] sm:$0xf] %v1173_v49  ;;  %v1111_v38 = vsel %vm1095_vm2, %v5840_v39, %v1079_v60  ;;  %v1096_v9 = vsel %vm1095_vm2, %v1093_v10, %v5840_v39  ;;  %v1256_v20 = vsel %vm1240_vm3, %v5851_v0, %v1224_v63  ;;  %2932 = vmatpush.bf16.msrb.mxu0 %v4478_v6  ;;  %v3795_v10 = vld [vmem:[#allocation3 + $0x7c] sm:$0xf0]  ;;  %v3831_v6 = vld [vmem:[#allocation3 + $0xc4] sm:$0xf0] }
 0x193   : > { %1221 = vst [vmem:[#allocation3 + $0x1d8] sm:$0xf] %v1205_v54  ;;  %v721_v35 = vpop.f32.mrf.mxu0  ;;  %v1144_v29 = vsel %vm5600_vm8, %v1111_v38, 0.0  ;;  %v1241_v40 = vsel %vm1240_vm3, %v1238_v41, %v5851_v0  ;;  %v1175_v63 = vpack.c.bf16 %v1096_v9, %v1096_v9  ;;  %v3798_v31 = vor.u32 %v4390_v22, %v3795_v10  ;;  %v4393_v22 = vld [vmem:[#allocation3 + $0x70] sm:$0xf0] }
 0x194   : > { %1333 = vst [vmem:[#allocation3 + $0x1b8] sm:$0xf] %v1317_v11  ;;  %v722_v4 = vadd.f32 %v5490_v25, %v721_v35  ;;  %2885 = vmatpush.bf16.msra.mxu2 %v4468_v12  ;;  %v1319_v2 = vpack.c.bf16 %v1241_v40, %v1241_v40 }
 0x195   : > { %1428 = vst [vmem:[#allocation3 + $0x198] sm:$0xf] %v1173_v49  ;;  %3034 = vmatmul.bf16.vlgmr.msra.gmra.mxu1 %v3762_v34 }
 0x196   : > { %1460 = vst [vmem:[#allocation3 + $0x19c] sm:$0xf] %v1205_v54  ;;  %v5863_v60 = vmax.f32 %v722_v4, 0.0  ;;  %2933 = vmatpush.bf16.msrb.mxu0 %v4477_v13  ;;  %v3777_v13 = vld [vmem:[#allocation3 + $0x48] sm:$0xf] }
 0x197   : > { %1539 = vst [vmem:[#allocation3 + $0x17c] sm:$0xf] %v1317_v11 }
 0x198   : > { %1634 = vst [vmem:[#allocation3 + $0x15c] sm:$0xf] %v1173_v49  ;;  %v4490_v49 = vld [vmem:[#allocation12 + $0x138] sm:$0xff]  ;;  %v1367_v16 = vrot.slane %v5863_v60, 7  ;;  %v1479_v41 = vrot.slane %v5863_v60, 1  ;;  %2886 = vmatpush.bf16.msra.mxu2 %v4467_v32 }
 0x199   : > { %1666 = vst [vmem:[#allocation3 + $0x160] sm:$0xf] %v1205_v54  ;;  %v1160_v54 = vpack.c.bf16 %v1144_v29, %v1144_v29  ;;  %2977 = vmatpush.bf16.msrb.mxu3 %v4490_v49 }
 0x19a   : > { %1745 = vst [vmem:[#allocation3 + $0x140] sm:$0xf] %v1317_v11  ;;  %v3959_v5 = vld [vmem:[#allocation3 + $0x1d4] sm:$0xf0]  ;;  %v1304_v11 = vsel %vm5619_vm9, %v1256_v20, 0.0  ;;  %v1370_v35 = vsel %vm1095_vm2, %v5840_v39, %v1367_v16  ;;  %2934 = vmatpush.bf16.msrb.mxu0 %v4476_v33 }
 0x19b   : > { %1190 = vst [vmem:[#allocation3 + $0x1f8] sm:$0xf] %v1174_v46  ;;  %v3962_v7 = vor.u32 %v4433_v3, %v3959_v5  ;;  %v723_v8 = vpop.f32.mrf.mxu0  ;;  %v1320_v34 = vpack.c.bf16 %v1304_v11, %v1304_v11  ;;  %v1399_v43 = vsel %vm5817_vm4, %v1370_v35, 0.0  ;;  %v1605_v46 = vsel %vm5764_vm0, %v1370_v35, 0.0  ;;  %v4408_v11 = vld [vmem:[#allocation3 + $0xec] sm:$0xf] }
 0x19c   : > { %1222 = vst [vmem:[#allocation3 + $0x1fc] sm:$0xf] %v1206_v48  ;;  %v724_v15 = vadd.f32 %v5490_v25, %v723_v8  ;;  %v1207_v25 = vpack.c.bf16 %v5833_v28, %v5833_v28  ;;  %v1482_v28 = vsel %vm1240_vm3, %v5851_v0, %v1479_v41  ;;  %v1415_v45 = vpack.c.bf16 %v1399_v43, %v1399_v43  ;;  %v4486_v35 = vld [vmem:[#allocation12 + $0x118] sm:$0xff]  ;;  %v3823_v43 = vld [vmem:[#allocation3 + $0xbc] sm:$0xf0] }
 0x19d   : > { %1334 = vst [vmem:[#allocation3 + $0x1dc] sm:$0xf] %v1318_v52  ;;  %2868 = vmatmul.bf16.gmra.mxu2 %v3962_v7  ;;  %2978 = vmatpush.bf16.msrb.mxu3 %v4489_v21  ;;  %v1510_v39 = vsel %vm5821_vm5, %v1482_v28, 0.0  ;;  %v1447_v52 = vpack.c.bf16 %v5863_v60, %v5863_v60  ;;  %v1716_v61 = vsel %vm5773_vm1, %v1482_v28, 0.0  ;;  %v4488_v7 = vld [vmem:[#allocation12 + $0x128] sm:$0xff] }
 0x19e   : > { %1429 = vst [vmem:[#allocation3 + $0x1bc] sm:$0xf] %v1413_v23  ;;  %v741_v24 = vmax.f32 %v724_v15, 0.0  ;;  %2935 = vmatpush.bf16.msrb.mxu0 %v4475_v37  ;;  %v1526_v3 = vpack.c.bf16 %v1510_v39, %v1510_v39  ;;  %v1621_v23 = vpack.c.bf16 %v1605_v46, %v1605_v46  ;;  %v1732_v58 = vpack.c.bf16 %v1716_v61, %v1716_v61  ;;  %v4384_v15 = vld [vmem:[#allocation3 + $0x28] sm:$0xf0]  ;;  %v4485_v61 = vld [vmem:[#allocation12 + $0x110] sm:$0xff] }
 0x19f   : > { %1461 = vst [vmem:[#allocation3 + $0x1c0] sm:$0xf] %v1206_v48  ;;  %v3750_v10 = vor.u32 %v4384_v15, %v3749_v56  ;;  %v4401_v21 = vld [vmem:[#allocation3 + $0xb0] sm:$0xf0]  ;;  %v4410_v37 = vld [vmem:[#allocation3 + $0xf8] sm:$0xf0] }
 0x1a0   : > { %1540 = vst [vmem:[#allocation3 + $0x1a0] sm:$0xf] %v1524_v53  ;;  %v1368_v36 = vrot.slane %v741_v24, 7  ;;  %v1448_v29 = vpack.c.bf16 %v741_v24, %v741_v24  ;;  %v4417_v28 = vld [vmem:[#allocation3 + $0x134] sm:$0xf]  ;;  %v4514_v56 = vld [vmem:[#allocation12 + $0x1f8] sm:$0xff] }
 0x1a1   : > { %1635 = vst [vmem:[#allocation3 + $0x180] sm:$0xf] %v1619_v1  ;;  %v4399_v1 = vld [vmem:[#allocation3 + $0xa4] sm:$0xf]  ;;  %2979 = vmatpush.bf16.msrb.mxu3 %v4488_v7  ;;  %v4402_v39 = vld [vmem:[#allocation3 + $0xb8] sm:$0xf0] }
 0x1a2   : > { %1667 = vst [vmem:[#allocation3 + $0x184] sm:$0xf] %v1206_v48  ;;  %v1384_v47 = vsel %vm1095_vm2, %v1368_v36, %v5520_v55  ;;  %v1480_v48 = vrot.slane %v741_v24, 1  ;;  %v1369_v5 = vsel %vm1095_vm2, %v1367_v16, %v1368_v36  ;;  %v1578_v42 = vsel %vm1095_vm2, %v1368_v36, %v1575_v26  ;;  %v4389_v24 = vld [vmem:[#allocation3 + $0x54] sm:$0xf]  ;;  %3124 = vmatpush.bf16.msra.mxu0 %v4514_v56 }
 0x1a3   : > { %1746 = vst [vmem:[#allocation3 + $0x164] sm:$0xf] %v1730_v14  ;;  %v4442_v4 = vld [vmem:[#allocation3 + $0x1fc] sm:$0xf]  ;;  %v1385_v55 = vsel %vm5600_vm8, %v1384_v47, 0.0  ;;  %v1416_v8 = vpack.c.bf16 %v1369_v5, %v1369_v5  ;;  %v3834_v60 = vor.u32 %v4399_v1, %v3831_v6  ;;  %v1607_v20 = vsel %vm5817_vm4, %v1578_v42, 0.0 }
 0x1a4   : > { %1176 = vst [vmem:[#allocation3] sm:$0xf] %v1160_v54  ;;  %v1496_v18 = vsel %vm1240_vm3, %v1480_v48, %v5534_v59  ;;  %v1401_v53 = vpack.c.bf16 %v1385_v55, %v1385_v55  ;;  %v1481_v51 = vsel %vm1240_vm3, %v1479_v41, %v1480_v48  ;;  %v1690_v26 = vsel %vm1240_vm3, %v1480_v48, %v1687_v27  ;;  %v4392_v14 = vld [vmem:[#allocation3 + $0x68] sm:$0xf0]  ;;  %v3751_v54 = vld [vmem:[#allocation3 + $0x2c] sm:$0xf0] }
 0x1a5   : > { %1191 = vst [vmem:[#allocation3 + $0x21c] sm:$0xf] %v1175_v63  ;;  %3039 = vmatmul.bf16.gmra.mxu1 %v3798_v31  ;;  %v1512_v59 = vsel %vm5619_vm9, %v1496_v18, 0.0  ;;  %v1527_v9 = vpack.c.bf16 %v1481_v51, %v1481_v51  ;;  %v1623_v62 = vpack.c.bf16 %v1607_v20, %v1607_v20  ;;  %v1718_v12 = vsel %vm5821_vm5, %v1690_v26, 0.0  ;;  %v3785_v31 = vld [vmem:[#allocation3 + $0x50] sm:$0xf] }
 0x1a6   : > { %1223 = vst [vmem:[#allocation3 + $0x220] sm:$0xf] %v1207_v25  ;;  %v1528_v49 = vpack.c.bf16 %v1512_v59, %v1512_v59  ;;  %v1734_v17 = vpack.c.bf16 %v1718_v12, %v1718_v12  ;;  %v3778_v30 = vor.u32 %v4392_v14, %v3777_v13  ;;  %v3870_v16 = vor.u32 %v4408_v11, %v3867_v19  ;;  %v4398_v46 = vld [vmem:[#allocation3 + $0x9c] sm:$0xf]  ;;  %v3821_v47 = vld [vmem:[#allocation3 + $0x98] sm:$0xf] }
 0x1a7   : > { %1335 = vst [vmem:[#allocation3 + $0x200] sm:$0xf] %v1319_v2  ;;  %v3786_v33 = vor.u32 %v4393_v22, %v3785_v31  ;;  %v3826_v48 = vor.u32 %v4398_v46, %v3823_v43  ;;  %v3885_v55 = vld [vmem:[#allocation3 + $0x120] sm:$0xf]  ;;  %v4407_v5 = vld [vmem:[#allocation3 + $0xe4] sm:$0xf] }
 0x1a8   : > { %1336 = vst [vmem:[#allocation3 + $0x224] sm:$0xf] %v1320_v34  ;;  %v3903_v34 = vld [vmem:[#allocation3 + $0x154] sm:$0xf0]  ;;  %v3857_v18 = vld [vmem:[#allocation3 + $0xe0] sm:$0xf] }
 0x1a9   : > { %1430 = vst [vmem:[#allocation3 + $0x1e0] sm:$0xf] %v1175_v63  ;;  %v3906_v36 = vor.u32 %v4417_v28, %v3903_v34  ;;  %v3895_v59 = vld [vmem:[#allocation3 + $0x14c] sm:$0xf0]  ;;  %v4416_v20 = vld [vmem:[#allocation3 + $0x12c] sm:$0xf] }
 0x1aa   : > { %1462 = vst [vmem:[#allocation3 + $0x1e4] sm:$0xf] %v1207_v25  ;;  %v3893_v26 = vld [vmem:[#allocation3 + $0x128] sm:$0xf]  ;;  %v4483_v14 = vld [vmem:[#allocation12 + $0x100] sm:$0xff]  ;;  %v4505_v15 = vld [vmem:[#allocation12 + $0x1b0] sm:$0xff] }
 0x1ab   : > { %1541 = vst [vmem:[#allocation3 + $0x1c4] sm:$0xf] %v1319_v2  ;;  %v3741_v50 = vld [vmem:[#allocation3] sm:$0xf]  ;;  %v4437_v19 = vld [vmem:[#allocation3 + $0x1d0] sm:$0xf0] }
 0x1ac   : > { %1636 = vst [vmem:[#allocation3 + $0x1a4] sm:$0xf] %v1175_v63  ;;  %v3742_v0 = vor.u32 %v4383_v44, %v3741_v50  ;;  %v4487_v63 = vld [vmem:[#allocation12 + $0x120] sm:$0xff]  ;;  %v3849_v44 = vld [vmem:[#allocation3 + $0xd8] sm:$0xf]  ;;  %v3822_v50 = vor.u32 %v4402_v39, %v3821_v47  ;;  %v4509_v43 = vld [vmem:[#allocation12 + $0x1d0] sm:$0xff] }
 0x1ad   : > { %1668 = vst [vmem:[#allocation3 + $0x1a8] sm:$0xf] %v1207_v25  ;;  %v3995_v57 = vld [vmem:[#allocation3 + $0x21c] sm:$0xf0]  ;;  %2980 = vmatpush.bf16.msrb.mxu3 %v4487_v63  ;;  %v3787_v25 = vld [vmem:[#allocation3 + $0x74] sm:$0xf0] }
 0x1ae   : > { %1747 = vst [vmem:[#allocation3 + $0x188] sm:$0xf] %v1319_v2  ;;  %v3998_v38 = vor.u32 %v4442_v4, %v3995_v57  ;;  %2789 = vmatmul.bf16.vlgmr.msra.gmra.mxu3 %v3742_v0  ;;  %v3813_v2 = vld [vmem:[#allocation3 + $0x90] sm:$0xf]  ;;  %v3790_v32 = vor.u32 %v4389_v24, %v3787_v25  ;;  %v4426_v0 = vld [vmem:[#allocation3 + $0x17c] sm:$0xf] }
 0x1af   : > { %1431 = vst [vmem:[#allocation3 + $0x204] sm:$0xf] %v1415_v45  ;;  %v3814_v41 = vor.u32 %v4401_v21, %v3813_v2  ;;  %v3850_v45 = vor.u32 %v4410_v37, %v3849_v44  ;;  %v4419_v4 = vld [vmem:[#allocation3 + $0x140] sm:$0xf0]  ;;  %v3859_v57 = vld [vmem:[#allocation3 + $0x104] sm:$0xf0] }
 0x1b0   : > { %1463 = vst [vmem:[#allocation3 + $0x208] sm:$0xf] %v1447_v52  ;;  %2873 = vmatmul.bf16.gmra.mxu2 %v3998_v38  ;;  %v3886_v38 = vor.u32 %v4419_v4, %v3885_v55  ;;  %v3931_v63 = vld [vmem:[#allocation3 + $0x194] sm:$0xf0]  ;;  %v4503_v11 = vld [vmem:[#allocation12 + $0x1a0] sm:$0xff]  ;;  %v4500_v37 = vld [vmem:[#allocation12 + $0x188] sm:$0xff] }
 0x1b1   : > { %1542 = vst [vmem:[#allocation3 + $0x1e8] sm:$0xf] %v1526_v3  ;;  %2981 = vmatpush.bf16.msrb.mxu3 %v4486_v35  ;;  %v3957_v21 = vld [vmem:[#allocation3 + $0x1b0] sm:$0xf]  ;;  %v4425_v22 = vld [vmem:[#allocation3 + $0x174] sm:$0xf] }
 0x1b2   : > { %1637 = vst [vmem:[#allocation3 + $0x1c8] sm:$0xf] %v1621_v23  ;;  %v4411_v23 = vld [vmem:[#allocation3 + $0x100] sm:$0xf0]  ;;  %v3958_v25 = vor.u32 %v4437_v19, %v3957_v21  ;;  %v3929_v2 = vld [vmem:[#allocation3 + $0x170] sm:$0xf] }
 0x1b3   : > { %1669 = vst [vmem:[#allocation3 + $0x1cc] sm:$0xf] %v1447_v52  ;;  %v3939_v52 = vld [vmem:[#allocation3 + $0x19c] sm:$0xf0]  ;;  %v3858_v6 = vor.u32 %v4411_v23, %v3857_v18  ;;  %v4435_v51 = vld [vmem:[#allocation3 + $0x1c4] sm:$0xf] }
 0x1b4   : > { %1748 = vst [vmem:[#allocation3 + $0x1ac] sm:$0xf] %v1732_v58  ;;  %v3942_v3 = vor.u32 %v4426_v0, %v3939_v52  ;;  %v3862_v58 = vor.u32 %v4407_v5, %v3859_v57  ;;  %v4522_v34 = vld [vmem:[#allocation12 + $0x238] sm:$0xff]  ;;  %v4501_v35 = vld [vmem:[#allocation12 + $0x190] sm:$0xff]  ;;  %v3967_v44 = vld [vmem:[#allocation3 + $0x1dc] sm:$0xf0] }
 0x1b5   : > { %1417 = vst [vmem:[#allocation3 + $0xc] sm:$0xf] %v1401_v53  ;;  %3044 = vmatmul.bf16.gmra.mxu1 %v3834_v60  ;;  %2982 = vmatpush.bf16.msrb.mxu3 %v4485_v61  ;;  %v4484_v53 = vld [vmem:[#allocation12 + $0x108] sm:$0xff]  ;;  %v4510_v28 = vld [vmem:[#allocation12 + $0x1d8] sm:$0xff]  ;;  %v4499_v47 = vld [vmem:[#allocation12 + $0x180] sm:$0xff] }
 0x1b6   : > { %1432 = vst [vmem:[#allocation3 + $0x228] sm:$0xf] %v1416_v8  ;;  %v3921_v60 = vld [vmem:[#allocation3 + $0x168] sm:$0xf]  ;;  %v4446_v39 = vld [vmem:[#allocation3 + $0x218] sm:$0xf0] }
 0x1b7   : > { %1464 = vst [vmem:[#allocation3 + $0x22c] sm:$0xf] %v1448_v29  ;;  %v3993_v46 = vld [vmem:[#allocation3 + $0x1f8] sm:$0xf]  ;;  %v4508_v52 = vld [vmem:[#allocation12 + $0x1c8] sm:$0xff]  ;;  %v4507_v57 = vld [vmem:[#allocation12 + $0x1c0] sm:$0xff] }
 0x1b8   : > { %1543 = vst [vmem:[#allocation3 + $0x20c] sm:$0xf] %v1527_v9  ;;  %v3975_v7 = vld [vmem:[#allocation3 + $0x1e4] sm:$0xf0]  ;;  %v3965_v61 = vld [vmem:[#allocation3 + $0x1b8] sm:$0xf] }
 0x1b9   : > { %1544 = vst [vmem:[#allocation3 + $0x230] sm:$0xf] %v1528_v49  ;;  %2983 = vmatpush.bf16.msrb.mxu3 %v4484_v53  ;;  %v3978_v42 = vor.u32 %v4435_v51, %v3975_v7  ;;  %v3898_v49 = vor.u32 %v4416_v20, %v3895_v59  ;;  %v4521_v23 = vld [vmem:[#allocation12 + $0x230] sm:$0xff]  ;;  %v4001_v18 = vld [vmem:[#allocation3 + $0x200] sm:$0xf] }
 0x1ba   : > { %1638 = vst [vmem:[#allocation3 + $0x1ec] sm:$0xf] %v1416_v8  ;;  %v4428_v8 = vld [vmem:[#allocation3 + $0x188] sm:$0xf0]  ;;  %v4443_v7 = vld [vmem:[#allocation3 + $0x204] sm:$0xf] }
 0x1bb   : > { %1639 = vst [vmem:[#allocation3 + $0x210] sm:$0xf] %v1623_v62  ;;  %v5946_v20 = vld [vmem:[%s6304_s6] ss:$0 sm:$0xff] }
 0x1bc   : > { %1670 = vst [vmem:[#allocation3 + $0x1f0] sm:$0xf] %v1448_v29  ;;  %v4380_v27 = vld [vmem:[#allocation3 + $0xc] sm:$0xf]  ;;  %v4519_v21 = vld [vmem:[#allocation12 + $0x220] sm:$0xff] }
 0x1bd   : > { %1749 = vst [vmem:[#allocation3 + $0x1d0] sm:$0xf] %v1527_v9  ;;  %v3754_v40 = vor.u32 %v4380_v27, %v3751_v54  ;;  %v4420_v29 = vld [vmem:[#allocation3 + $0x148] sm:$0xf0]  ;;  %v3922_v9 = vor.u32 %v4428_v8, %v3921_v60  ;;  %2984 = vmatpush.bf16.msrb.mxu3 %v4483_v14  ;;  %v4513_v27 = vld [vmem:[#allocation12 + $0x1f0] sm:$0xff] }
 0x1be   : > { %1750 = vst [vmem:[#allocation3 + $0x1f4] sm:$0xf] %v1734_v17  ;;  %2794 = vmatmul.bf16.gmra.mxu3 %v3778_v30  ;;  %v3894_v62 = vor.u32 %v4420_v29, %v3893_v26  ;;  %v4506_v17 = vld [vmem:[#allocation12 + $0x1b8] sm:$0xff]  ;;  %3125 = vmatpush.bf16.msra.mxu0 %v4513_v27  ;;  %v4003_v5 = vld [vmem:[#allocation3 + $0x224] sm:$0xf0] }
 0x1bf   : > { %2936 = vmatmul.bf16.vlgmr.msrb.gmra.mxu0 %v3754_v40  ;;  %v4444_v12 = vld [vmem:[#allocation3 + $0x20c] sm:$0xf]  ;;  %3075 = vmatpush.bf16.msrb.mxu2 %v4506_v17  ;;  %v4006_v51 = vor.u32 %v4443_v7, %v4003_v5  ;;  %v3767_v26 = vld [vmem:[#allocation3 + $0x3c] sm:$0xf0]  ;;  %v4382_v14 = vld [vmem:[#allocation3 + $0x1c] sm:$0xf] }
 0x1c0   : > { %2887 = vmatmul.bf16.vlgmr.msra.gmra.mxu2 %v3750_v10  ;;  %v4011_v13 = vld [vmem:[#allocation3 + $0x22c] sm:$0xf0]  ;;  %v4504_v40 = vld [vmem:[#allocation12 + $0x1a8] sm:$0xff] }
 0x1c1   : > { %v4014_v30 = vor.u32 %v4444_v12, %v4011_v13  ;;  %v4512_v10 = vld [vmem:[#allocation12 + $0x1e8] sm:$0xff]  ;;  %3173 = vmatpush.bf16.msra.mxu3 %v4522_v34  ;;  %v3793_v12 = vld [vmem:[#allocation3 + $0x58] sm:$0xf]  ;;  %v4395_v34 = vld [vmem:[#allocation3 + $0x80] sm:$0xf0] }
 0x1c2   : > { %v5929_v1 = vpop.f32.mrf.mxu1  ;;  %3126 = vmatpush.bf16.msra.mxu0 %v4512_v10  ;;  %v4520_v29 = vld [vmem:[#allocation12 + $0x228] sm:$0xff] }
 0x1c3   : > { %3076 = vmatpush.bf16.msrb.mxu2 %v4505_v15  ;;  %v3770_v15 = vor.u32 %v4382_v14, %v3767_v26 }
 0x1c5   : > { %3049 = vmatmul.bf16.gmra.mxu1 %v3870_v16  ;;  %v4429_v16 = vld [vmem:[#allocation3 + $0x190] sm:$0xf0]  ;;  %3174 = vmatpush.bf16.msra.mxu3 %v4521_v23 }
 0x1c6   : > { %v3930_v24 = vor.u32 %v4429_v16, %v3929_v2 }
 0x1c7   : > { %3077 = vmatpush.bf16.msrb.mxu2 %v4504_v40 }
 0x1c9   : > { %3175 = vmatpush.bf16.msra.mxu3 %v4520_v29 }
 0x1ca   : > { %v5931_v54 = vpop.f32.mrf.mxu1 }
 0x1cb   : > { %3078 = vmatpush.bf16.msrb.mxu2 %v4503_v11 }
 0x1cd   : > { %3176 = vmatpush.bf16.msra.mxu3 %v4519_v21  ;;  %v3875_v21 = vld [vmem:[#allocation3 + $0x114] sm:$0xf0] }
 0x1ce   : > { %2799 = vmatmul.bf16.gmra.mxu3 %v3814_v41  ;;  %v3934_v41 = vor.u32 %v4425_v22, %v3931_v63 }
 0x1cf   : > { %2941 = vmatmul.bf16.gmra.mxu0 %v3790_v32  ;;  %v4502_v32 = vld [vmem:[#allocation12 + $0x198] sm:$0xff] }
 0x1d0   : > { %2892 = vmatmul.bf16.gmra.mxu2 %v3786_v33  ;;  %v4511_v33 = vld [vmem:[#allocation12 + $0x1e0] sm:$0xff] }
 0x1d1   : > { %3079 = vmatpush.bf16.msrb.mxu2 %v4502_v32  ;;  %3127 = vmatpush.bf16.msra.mxu0 %v4511_v33  ;;  %v3803_v32 = vld [vmem:[#allocation3 + $0x84] sm:$0xf0] }
 0x1d2   : > { %v2844_v19 = vpop.f32.mrf.mxu1 }
 0x1d5   : > { %3054 = vmatmul.bf16.gmra.mxu1 %v3906_v36  ;;  %3080 = vmatpush.bf16.msrb.mxu2 %v4501_v35  ;;  %v3829_v35 = vld [vmem:[#allocation3 + $0xa0] sm:$0xf] }
 0x1d6   : > { %3128 = vmatpush.bf16.msra.mxu0 %v4510_v28 }
 0x1d9   : > { %3081 = vmatpush.bf16.msrb.mxu2 %v4500_v37 }
 0x1da   : > { %3129 = vmatpush.bf16.msra.mxu0 %v4509_v43 }
 0x1dd   : > { %3082 = vmatpush.bf16.msrb.mxu2 %v4499_v47 }
 0x1de   : > { %2804 = vmatmul.bf16.gmra.mxu3 %v3850_v45  ;;  %v4438_v45 = vld [vmem:[#allocation3 + $0x1d8] sm:$0xf0]  ;;  %3130 = vmatpush.bf16.msra.mxu0 %v4508_v52 }
 0x1df   : > { %2946 = vmatmul.bf16.gmra.mxu0 %v3826_v48  ;;  %v3994_v48 = vor.u32 %v4446_v39, %v3993_v46  ;;  %v2846_v39 = vpop.f32.mrf.mxu1 }
 0x1e0   : > { %2897 = vmatmul.bf16.gmra.mxu2 %v3822_v50  ;;  %v4434_v50 = vld [vmem:[#allocation3 + $0x1bc] sm:$0xf] }
 0x1e1   : > { %v3970_v0 = vor.u32 %v4434_v50, %v3967_v44  ;;  %4587 = vmatpush.bf16.msra.mxu2 %v4514_v56  ;;  %v3765_v56 = vld [vmem:[#allocation3 + $0x18] sm:$0xf]  ;;  %v3801_v44 = vld [vmem:[#allocation3 + $0x60] sm:$0xf] }
 0x1e2   : > { %3131 = vmatpush.bf16.msra.mxu0 %v4507_v57  ;;  %v3802_v47 = vor.u32 %v4395_v34, %v3801_v44 }
 0x1e5   : > { %3059 = vmatmul.bf16.gmra.mxu1 %v3942_v3  ;;  %v3966_v3 = vor.u32 %v4438_v45, %v3965_v61  ;;  %4588 = vmatpush.bf16.msra.mxu2 %v4513_v27 }
 0x1e9   : > { %4589 = vmatpush.bf16.msra.mxu2 %v4512_v10 }
 0x1ed   : > { %4590 = vmatpush.bf16.msra.mxu2 %v4511_v33 }
 0x1ee   : > { %2809 = vmatmul.bf16.gmra.mxu3 %v3886_v38  ;;  %v4385_v38 = vld [vmem:[#allocation3 + $0x30] sm:$0xf0] }
 0x1ef   : > { %2951 = vmatmul.bf16.gmra.mxu0 %v3862_v58  ;;  %v4447_v58 = vld [vmem:[#allocation3 + $0x220] sm:$0xf0] }
 0x1f0   : > { %2902 = vmatmul.bf16.gmra.mxu2 %v3858_v6  ;;  %v3757_v6 = vld [vmem:[#allocation3 + $0x10] sm:$0xf] }
 0x1f1   : > { %v3758_v53 = vor.u32 %v4385_v38, %v3757_v6  ;;  %4591 = vmatpush.bf16.msra.mxu2 %v4510_v28  ;;  %v2849_v38 = vpop.f32.mrf.mxu1  ;;  %v3839_v6 = vld [vmem:[#allocation3 + $0xcc] sm:$0xf0] }
 0x1f5   : > { %3064 = vmatmul.bf16.gmra.mxu1 %v3978_v42  ;;  %v4002_v42 = vor.u32 %v4447_v58, %v4001_v18  ;;  %4592 = vmatpush.bf16.msra.mxu2 %v4509_v43  ;;  %v4391_v43 = vld [vmem:[#allocation3 + $0x64] sm:$0xf]  ;;  %v4412_v18 = vld [vmem:[#allocation3 + $0x108] sm:$0xf0] }
 0x1f6   : > { %v3806_v45 = vor.u32 %v4391_v43, %v3803_v32 }
 0x1f9   : > { %4593 = vmatpush.bf16.msra.mxu2 %v4508_v52 }
 0x1fd   : > { %4594 = vmatpush.bf16.msra.mxu2 %v4507_v57 }
 0x1fe   : > { %2814 = vmatmul.bf16.gmra.mxu3 %v3922_v9  ;;  %v4394_v9 = vld [vmem:[#allocation3 + $0x78] sm:$0xf0] }
 0x1ff   : > { %2956 = vmatmul.bf16.gmra.mxu0 %v3898_v49  ;;  %v3794_v17 = vor.u32 %v4394_v9, %v3793_v12  ;;  %v3837_v9 = vld [vmem:[#allocation3 + $0xa8] sm:$0xf] }
 0x200   : > { %2907 = vmatmul.bf16.gmra.mxu2 %v3894_v62  ;;  %v4386_v62 = vld [vmem:[#allocation3 + $0x38] sm:$0xf0] }
 0x201   : > { %v3766_v27 = vor.u32 %v4386_v62, %v3765_v56 }
 0x205   : > { %3069 = vmatmul.bf16.gmra.mxu1 %v4014_v30 }
 0x20e   : > { %v5933_v31 = vpop.f32.mrf.mxu2  ;;  %2819 = vmatmul.bf16.gmra.mxu3 %v3958_v25 }
 0x20f   : > { %2961 = vmatmul.bf16.gmra.mxu0 %v3934_v41  ;;  %v4403_v41 = vld [vmem:[#allocation3 + $0xc0] sm:$0xf0] }
 0x210   : > { %2912 = vmatmul.bf16.gmra.mxu2 %v3930_v24  ;;  %v3830_v37 = vor.u32 %v4403_v41, %v3829_v35  ;;  %v4413_v41 = vld [vmem:[#allocation3 + $0x110] sm:$0xf0] }
 0x211   : > { %v4409_v35 = vld [vmem:[#allocation3 + $0xf4] sm:$0xf] }
 0x216   : > { %v5935_v36 = vpop.f32.mrf.mxu2 }
 0x21e   : > { %2824 = vmatmul.bf16.gmra.mxu3 %v3994_v48 }
 0x21f   : > { %2966 = vmatmul.bf16.gmra.mxu0 %v3970_v0 }
 0x220   : > { %2917 = vmatmul.bf16.gmra.mxu2 %v3966_v3  ;;  %v5937_v4 = vpop.f32.mrf.mxu2  ;;  %v4518_v3 = vld [vmem:[#allocation12 + $0x218] sm:$0xff] }
 0x221   : > { %3177 = vmatpush.bf16.msra.mxu3 %v4518_v3 }
 0x228   : > { %v5939_v55 = vpop.f32.mrf.mxu2 }
 0x22e   : > { %2985 = vmatmul.bf16.vlgmr.msrb.gmra.mxu3 %v3758_v53  ;;  %v4404_v53 = vld [vmem:[#allocation3 + $0xc8] sm:$0xf0] }
 0x22f   : > { %2971 = vmatmul.bf16.gmra.mxu0 %v4006_v51  ;;  %v3865_v51 = vld [vmem:[#allocation3 + $0xe8] sm:$0xf]  ;;  %v3838_v12 = vor.u32 %v4404_v53, %v3837_v9 }
 0x230   : > { %2922 = vmatmul.bf16.gmra.mxu2 %v4002_v42  ;;  %v3866_v29 = vor.u32 %v4412_v18, %v3865_v51 }
 0x231   : > { %v2790_v8 = vpop.f32.mrf.mxu3 }
 0x232   : > { %v2791_v30 = vadd.f32 %v5946_v20, %v2790_v8 }
 0x233   : > { %v5941_v59 = vpop.f32.mrf.mxu2 }
 0x234   : > { %v2840_v10 = vadd.f32 %v5929_v1, %v2791_v30 }
 0x239   : > { %v2792_v60 = vpop.f32.mrf.mxu3 }
 0x23a   : > { %v2793_v25 = vadd.f32 %v5946_v20, %v2792_v60  ;;  %v4400_v60 = vld [vmem:[#allocation3 + $0xac] sm:$0xf] }
 0x23b   : > { %v5948_v49 = vpop.f32.mrf.mxu2  ;;  %v3842_v26 = vor.u32 %v4400_v60, %v3839_v6  ;;  %v3937_v6 = vld [vmem:[#allocation3 + $0x178] sm:$0xf] }
 0x23c   : > { %v2937_v13 = vpop.f32.mrf.mxu0  ;;  %v2842_v24 = vadd.f32 %v5931_v54, %v2793_v25 }
 0x23e   : > { %2990 = vmatmul.bf16.gmra.mxu3 %v3794_v17  ;;  %v2851_v17 = vpop.f32.mrf.mxu1 }
 0x23f   : > { %3132 = vmatmul.bf16.vlgmr.msra.gmra.mxu0 %v3770_v15 }
 0x240   : > { %3083 = vmatmul.bf16.vlgmr.msrb.gmra.mxu2 %v3766_v27 }
 0x241   : > { %v2795_v40 = vpop.f32.mrf.mxu3 }
 0x242   : > { %v2796_v46 = vadd.f32 %v5946_v20, %v2795_v40  ;;  %v4517_v40 = vld [vmem:[#allocation12 + $0x210] sm:$0xff] }
 0x243   : > { %v2888_v63 = vpop.f32.mrf.mxu2  ;;  %3178 = vmatpush.bf16.msra.mxu3 %v4517_v40 }
 0x244   : > { %v2889_v11 = vadd.f32 %v2888_v63, %v2840_v10  ;;  %v2939_v16 = vpop.f32.mrf.mxu0  ;;  %v2845_v50 = vadd.f32 %v2844_v19, %v2796_v46 }
 0x246   : > { %v5953_v22 = vadd.f32 %v2937_v13, %v2889_v11  ;;  %v4421_v11 = vld [vmem:[#allocation3 + $0x150] sm:$0xf0]  ;;  %v2854_v25 = vpop.f32.mrf.mxu1 }
 0x249   : > { %v2797_v2 = vpop.f32.mrf.mxu3 }
 0x24a   : > { %v2798_v57 = vadd.f32 %v5946_v20, %v2797_v2 }
 0x24b   : > { %v2890_v33 = vpop.f32.mrf.mxu2 }
 0x24c   : > { %v2891_v28 = vadd.f32 %v2890_v33, %v2842_v24  ;;  %v2942_v1 = vpop.f32.mrf.mxu0  ;;  %v2847_v58 = vadd.f32 %v2846_v39, %v2798_v57  ;;  %v3901_v24 = vld [vmem:[#allocation3 + $0x130] sm:$0xf]  ;;  %v4430_v57 = vld [vmem:[#allocation3 + $0x198] sm:$0xf0] }
 0x24d   : > { %v3902_v34 = vor.u32 %v4421_v11, %v3901_v24  ;;  %v3938_v51 = vor.u32 %v4430_v57, %v3937_v6  ;;  %v4439_v11 = vld [vmem:[#allocation3 + $0x1e0] sm:$0xf0]  ;;  %v4448_v57 = vld [vmem:[#allocation3 + $0x228] sm:$0xf0] }
 0x24e   : > { %2995 = vmatmul.bf16.gmra.mxu3 %v3830_v37  ;;  %v5957_v48 = vadd.f32 %v2939_v16, %v2891_v28  ;;  %v3873_v28 = vld [vmem:[#allocation3 + $0xf0] sm:$0xf]  ;;  %v4440_v6 = vld [vmem:[#allocation3 + $0x1e8] sm:$0xf0] }
 0x24f   : > { %3137 = vmatmul.bf16.gmra.mxu0 %v3806_v45  ;;  %v3874_v43 = vor.u32 %v4413_v41, %v3873_v28  ;;  %v3973_v41 = vld [vmem:[#allocation3 + $0x1c0] sm:$0xf] }
 0x250   : > { %3088 = vmatmul.bf16.gmra.mxu2 %v3802_v47 }
 0x251   : > { %v2800_v54 = vpop.f32.mrf.mxu3 }
 0x252   : > { %v2801_v62 = vadd.f32 %v5946_v20, %v2800_v54 }
 0x253   : > { %v2893_v52 = vpop.f32.mrf.mxu2 }
 0x254   : > { %v2894_v61 = vadd.f32 %v2893_v52, %v2845_v50  ;;  %v2944_v0 = vpop.f32.mrf.mxu0  ;;  %v2850_v56 = vadd.f32 %v2849_v38, %v2801_v62  ;;  %v4516_v50 = vld [vmem:[#allocation12 + $0x208] sm:$0xff]  ;;  %v2856_v52 = vpop.f32.mrf.mxu1 }
 0x255   : > { %3179 = vmatpush.bf16.msra.mxu3 %v4516_v50 }
 0x256   : > { %v5960_v23 = vadd.f32 %v2942_v1, %v2894_v61  ;;  %v3878_v1 = vor.u32 %v4409_v35, %v3875_v21  ;;  %v3947_v21 = vld [vmem:[#allocation3 + $0x1a4] sm:$0xf0]  ;;  %v3945_v35 = vld [vmem:[#allocation3 + $0x180] sm:$0xf] }
 0x259   : > { %v2802_v5 = vpop.f32.mrf.mxu3 }
 0x25a   : > { %v2803_v10 = vadd.f32 %v5946_v20, %v2802_v5  ;;  %v3911_v5 = vld [vmem:[#allocation3 + $0x15c] sm:$0xf0] }
 0x25b   : > { %v2895_v7 = vpop.f32.mrf.mxu2 }
 0x25c   : > { %v2896_v42 = vadd.f32 %v2895_v7, %v2847_v58  ;;  %v2947_v8 = vpop.f32.mrf.mxu0  ;;  %v2852_v16 = vadd.f32 %v2851_v17, %v2803_v10  ;;  %v4422_v58 = vld [vmem:[#allocation3 + $0x158] sm:$0xf0]  ;;  %v2859_v62 = vpop.f32.mrf.mxu1 }
 0x25e   : > { %3000 = vmatmul.bf16.gmra.mxu3 %v3866_v29  ;;  %v5963_v13 = vadd.f32 %v2944_v0, %v2896_v42  ;;  %v4418_v42 = vld [vmem:[#allocation3 + $0x13c] sm:$0xf] }
 0x25f   : > { %3142 = vmatmul.bf16.gmra.mxu0 %v3842_v26  ;;  %v3914_v29 = vor.u32 %v4418_v42, %v3911_v5  ;;  %v4436_v5 = vld [vmem:[#allocation3 + $0x1cc] sm:$0xf] }
 0x260   : > { %3093 = vmatmul.bf16.gmra.mxu2 %v3838_v12 }
 0x261   : > { %v2805_v14 = vpop.f32.mrf.mxu3 }
 0x262   : > { %v2806_v37 = vadd.f32 %v5946_v20, %v2805_v14 }
 0x263   : > { %v2898_v15 = vpop.f32.mrf.mxu2 }
 0x264   : > { %v2899_v30 = vadd.f32 %v2898_v15, %v2850_v56  ;;  %v2949_v27 = vpop.f32.mrf.mxu0  ;;  %v2855_v45 = vadd.f32 %v2854_v25, %v2806_v37  ;;  %v2861_v10 = vpop.f32.mrf.mxu1 }
 0x266   : > { %v5966_v19 = vadd.f32 %v2947_v8, %v2899_v30  ;;  %v3909_v8 = vld [vmem:[#allocation3 + $0x138] sm:$0xf]  ;;  %v4515_v30 = vld [vmem:[#allocation12 + $0x200] sm:$0xff] }
 0x267   : > { %v3910_v9 = vor.u32 %v4422_v58, %v3909_v8  ;;  %3180 = vmatpush.bf16.msra.mxu3 %v4515_v30 }
 0x269   : > { %v2807_v63 = vpop.f32.mrf.mxu3 }
 0x26a   : > { %v2808_v61 = vadd.f32 %v5946_v20, %v2807_v63 }
 0x26b   : > { %v2900_v2 = vpop.f32.mrf.mxu2 }
 0x26c   : > { %v2901_v32 = vadd.f32 %v2900_v2, %v2852_v16  ;;  %v2952_v33 = vpop.f32.mrf.mxu0  ;;  %v2857_v38 = vadd.f32 %v2856_v52, %v2808_v61  ;;  %v4431_v2 = vld [vmem:[#allocation3 + $0x1a0] sm:$0xf0] }
 0x26d   : > { %v3946_v37 = vor.u32 %v4431_v2, %v3945_v35 }
 0x26e   : > { %3005 = vmatmul.bf16.gmra.mxu3 %v3902_v34  ;;  %v5969_v39 = vadd.f32 %v2949_v27, %v2901_v32  ;;  %v4427_v34 = vld [vmem:[#allocation3 + $0x184] sm:$0xf] }
 0x26f   : > { %3147 = vmatmul.bf16.gmra.mxu0 %v3878_v1  ;;  %v3950_v28 = vor.u32 %v4427_v34, %v3947_v21  ;;  %v3773_v21 = vld [vmem:[#allocation3 + $0x20] sm:$0xf] }
 0x270   : > { %3098 = vmatmul.bf16.gmra.mxu2 %v3874_v43 }
 0x271   : > { %v2810_v44 = vpop.f32.mrf.mxu3 }
 0x272   : > { %v2811_v60 = vadd.f32 %v5946_v20, %v2810_v44 }
 0x273   : > { %v2903_v46 = vpop.f32.mrf.mxu2 }
 0x274   : > { %v2904_v47 = vadd.f32 %v2903_v46, %v2855_v45  ;;  %v2954_v54 = vpop.f32.mrf.mxu0  ;;  %v2860_v17 = vadd.f32 %v2859_v62, %v2811_v60 }
 0x276   : > { %v5972_v0 = vadd.f32 %v2952_v33, %v2904_v47  ;;  %v3974_v33 = vor.u32 %v4439_v11, %v3973_v41  ;;  %v4017_v11 = vld [vmem:[#allocation3 + $0x210] sm:$0xf] }
 0x279   : > { %v2812_v3 = vpop.f32.mrf.mxu3 }
 0x27a   : > { %v2813_v27 = vadd.f32 %v5946_v20, %v2812_v3  ;;  %v4009_v3 = vld [vmem:[#allocation3 + $0x208] sm:$0xf] }
 0x27b   : > { %v2905_v18 = vpop.f32.mrf.mxu2 }
 0x27c   : > { %v2906_v7 = vadd.f32 %v2905_v18, %v2857_v38  ;;  %v2957_v53 = vpop.f32.mrf.mxu0  ;;  %v2862_v16 = vadd.f32 %v2861_v10, %v2813_v27  ;;  %v3983_v18 = vld [vmem:[#allocation3 + $0x1ec] sm:$0xf0]  ;;  %v4387_v27 = vld [vmem:[#allocation3 + $0x40] sm:$0xf0] }
 0x27d   : > { %v3774_v2 = vor.u32 %v4387_v27, %v3773_v21 }
 0x27e   : > { %3010 = vmatmul.bf16.gmra.mxu3 %v3938_v51  ;;  %v5975_v26 = vadd.f32 %v2954_v54, %v2906_v7  ;;  %v3981_v51 = vld [vmem:[#allocation3 + $0x1c8] sm:$0xf] }
 0x27f   : > { %3152 = vmatmul.bf16.gmra.mxu0 %v3914_v29  ;;  %v3982_v8 = vor.u32 %v4440_v6, %v3981_v51  ;;  %v4405_v6 = vld [vmem:[#allocation3 + $0xd0] sm:$0xf0] }
 0x280   : > { %3103 = vmatmul.bf16.gmra.mxu2 %v3910_v9 }
 0x281   : > { %v2815_v12 = vpop.f32.mrf.mxu3 }
 0x282   : > { %v2816_v1 = vadd.f32 %v5946_v20, %v2815_v12 }
 0x283   : > { %v2908_v14 = vpop.f32.mrf.mxu2 }
 0x284   : > { %v2909_v56 = vadd.f32 %v2908_v14, %v2860_v17  ;;  %v2959_v15 = vpop.f32.mrf.mxu0  ;;  %v2865_v45 = vadd.f32 %v5933_v31, %v2816_v1  ;;  %v3986_v31 = vor.u32 %v4436_v5, %v3983_v18  ;;  %v4530_v17 = vld [vmem:[#allocation13 + $0x38] sm:$0xff]  ;;  %v4529_v1 = vld [vmem:[#allocation13 + $0x30] sm:$0xff] }
 0x285   : > { %3314 = vmatpush.bf16.msrb.mxu1 %v4530_v17  ;;  %v4526_v17 = vld [vmem:[#allocation13 + $0x18] sm:$0xff] }
 0x286   : > { %v5978_v40 = vadd.f32 %v2957_v53, %v2909_v56  ;;  %v4010_v53 = vor.u32 %v4448_v57, %v4009_v3 }
 0x289   : > { %v2817_v63 = vpop.f32.mrf.mxu3  ;;  %3315 = vmatpush.bf16.msrb.mxu1 %v4529_v1 }
 0x28a   : > { %v2818_v50 = vadd.f32 %v5946_v20, %v2817_v63 }
 0x28b   : > { %v2910_v25 = vpop.f32.mrf.mxu2 }
 0x28c   : > { %v2911_v24 = vadd.f32 %v2910_v25, %v2862_v16  ;;  %v2962_v32 = vpop.f32.mrf.mxu0  ;;  %v2867_v38 = vadd.f32 %v5935_v36, %v2818_v50  ;;  %v4449_v16 = vld [vmem:[#allocation3 + $0x230] sm:$0xf0] }
 0x28d   : > { %v4018_v41 = vor.u32 %v4449_v16, %v4017_v11  ;;  %v4445_v50 = vld [vmem:[#allocation3 + $0x214] sm:$0xf]  ;;  %v4432_v16 = vld [vmem:[#allocation3 + $0x1a8] sm:$0xf0] }
 0x28e   : > { %3015 = vmatmul.bf16.gmra.mxu3 %v3974_v33  ;;  %v5981_v43 = vadd.f32 %v2959_v15, %v2911_v24 }
 0x28f   : > { %3157 = vmatmul.bf16.gmra.mxu0 %v3950_v28 }
 0x290   : > { %3108 = vmatmul.bf16.gmra.mxu2 %v3946_v37 }
 0x291   : > { %v2820_v44 = vpop.f32.mrf.mxu3 }
 0x292   : > { %v2821_v42 = vadd.f32 %v5946_v20, %v2820_v44 }
 0x293   : > { %v2913_v46 = vpop.f32.mrf.mxu2 }
 0x294   : > { %v2914_v47 = vadd.f32 %v2913_v46, %v2865_v45  ;;  %v2964_v54 = vpop.f32.mrf.mxu0  ;;  %v2870_v36 = vadd.f32 %v5937_v4, %v2821_v42  ;;  %v4396_v46 = vld [vmem:[#allocation3 + $0x88] sm:$0xf0] }
 0x296   : > { %v5985_v52 = vadd.f32 %v2962_v32, %v2914_v47 }
 0x299   : > { %v2822_v61 = vpop.f32.mrf.mxu3 }
 0x29a   : > { %v2823_v14 = vadd.f32 %v5946_v20, %v2822_v61  ;;  %v3809_v61 = vld [vmem:[#allocation3 + $0x68] sm:$0xf] }
 0x29b   : > { %v2915_v58 = vpop.f32.mrf.mxu2  ;;  %v3810_v57 = vor.u32 %v4396_v46, %v3809_v61  ;;  %v4523_v46 = vld [vmem:[#allocation13] sm:$0xff]  ;;  %v4450_v61 = vld [vmem:[#allocation3 + $0x238] sm:$0xf0] }
 0x29c   : > { %v2916_v7 = vadd.f32 %v2915_v58, %v2867_v38  ;;  %v2967_v60 = vpop.f32.mrf.mxu0  ;;  %v2872_v10 = vadd.f32 %v5939_v55, %v2823_v14 }
 0x29e   : > { %3020 = vmatmul.bf16.gmra.mxu3 %v4010_v53  ;;  %v5989_v29 = vadd.f32 %v2964_v54, %v2916_v7  ;;  %v3845_v53 = vld [vmem:[#allocation3 + $0xb0] sm:$0xf] }
 0x29f   : > { %3162 = vmatmul.bf16.gmra.mxu0 %v3986_v31  ;;  %v3846_v51 = vor.u32 %v4405_v6, %v3845_v53 }
 0x2a0   : > { %3113 = vmatmul.bf16.gmra.mxu2 %v3982_v8  ;;  %v4527_v8 = vld [vmem:[#allocation13 + $0x20] sm:$0xff] }
 0x2a1   : > { %v2825_v9 = vpop.f32.mrf.mxu3 }
 0x2a2   : > { %v2826_v4 = vadd.f32 %v5946_v20, %v2825_v9  ;;  %v4414_v9 = vld [vmem:[#allocation3 + $0x118] sm:$0xf0] }
 0x2a3   : > { %v2918_v62 = vpop.f32.mrf.mxu2 }
 0x2a4   : > { %v2919_v12 = vadd.f32 %v2918_v62, %v2870_v36  ;;  %v2969_v15 = vpop.f32.mrf.mxu0  ;;  %v2875_v33 = vadd.f32 %v5941_v59, %v2826_v4  ;;  %v3881_v36 = vld [vmem:[#allocation3 + $0xf8] sm:$0xf] }
 0x2a5   : > { %v3882_v62 = vor.u32 %v4414_v9, %v3881_v36 }
 0x2a6   : > { %v5993_v56 = vadd.f32 %v2967_v60, %v2919_v12 }
 0x2a9   : > { %v2827_v30 = vpop.f32.mrf.mxu3 }
 0x2aa   : > { %v2828_v37 = vadd.f32 %v5946_v20, %v2827_v30  ;;  %v3917_v30 = vld [vmem:[#allocation3 + $0x140] sm:$0xf] }
 0x2ab   : > { %v2920_v63 = vpop.f32.mrf.mxu2 }
 0x2ac   : > { %v2921_v25 = vadd.f32 %v2920_v63, %v2872_v10  ;;  %v2972_v55 = vpop.f32.mrf.mxu0  ;;  %v2877_v47 = vadd.f32 %v5948_v49, %v2828_v37  ;;  %v4528_v49 = vld [vmem:[#allocation13 + $0x28] sm:$0xff]  ;;  %v4525_v63 = vld [vmem:[#allocation13 + $0x10] sm:$0xff] }
 0x2ad   : > { %3316 = vmatpush.bf16.msrb.mxu1 %v4528_v49 }
 0x2ae   : > { %3181 = vmatmul.bf16.vlgmr.msra.gmra.mxu3 %v3774_v2  ;;  %v5997_v24 = vadd.f32 %v2969_v15, %v2921_v25  ;;  %v4423_v15 = vld [vmem:[#allocation3 + $0x160] sm:$0xf0]  ;;  %v3953_v25 = vld [vmem:[#allocation3 + $0x188] sm:$0xf] }
 0x2af   : > { %v3918_v27 = vor.u32 %v4423_v15, %v3917_v30  ;;  %v3954_v2 = vor.u32 %v4432_v16, %v3953_v25 }
 0x2b0   : > { %3118 = vmatmul.bf16.gmra.mxu2 %v4018_v41  ;;  %v4524_v41 = vld [vmem:[#allocation13 + $0x8] sm:$0xff] }
 0x2b1   : > { %v2986_v32 = vpop.f32.mrf.mxu3  ;;  %3317 = vmatpush.bf16.msrb.mxu1 %v4527_v8 }
 0x2b2   : > { %v6001_v34 = vadd.f32 %v2986_v32, %v5953_v22  ;;  %v4019_v22 = vld [vmem:[#allocation3 + $0x234] sm:$0xf0] }
 0x2b3   : > { %v2923_v35 = vpop.f32.mrf.mxu2  ;;  %v4022_v5 = vor.u32 %v4445_v50, %v4019_v22  ;;  %v4025_v22 = vld [vmem:[#allocation3 + $0x218] sm:$0xf] }
 0x2b4   : > { %v2924_v28 = vadd.f32 %v2923_v35, %v2875_v33  ;;  %v2974_v38 = vpop.f32.mrf.mxu0  ;;  %v3989_v33 = vld [vmem:[#allocation3 + $0x1d0] sm:$0xf] }
 0x2b5   : > { %3318 = vmatpush.bf16.msrb.mxu1 %v4526_v17 }
 0x2b6   : > { %v6004_v44 = vadd.f32 %v2972_v55, %v2924_v28  ;;  %v4441_v55 = vld [vmem:[#allocation3 + $0x1f0] sm:$0xf0] }
 0x2b7   : > { %v3990_v28 = vor.u32 %v4441_v55, %v3989_v33 }
 0x2b9   : > { %v2988_v45 = vpop.f32.mrf.mxu3  ;;  %3319 = vmatpush.bf16.msrb.mxu1 %v4525_v63 }
 0x2ba   : > { %v6008_v54 = vadd.f32 %v2988_v45, %v5957_v48 }
 0x2bb   : > { %v2925_v59 = vpop.f32.mrf.mxu2 }
 0x2bc   : > { %v2926_v3 = vadd.f32 %v2925_v59, %v2877_v47 }
 0x2bd   : > { %3320 = vmatpush.bf16.msrb.mxu1 %v4524_v41 }
 0x2be   : > { %3186 = vmatmul.bf16.gmra.mxu3 %v3810_v57  ;;  %v6010_v20 = vadd.f32 %v2974_v38, %v2926_v3 }
 0x2c0   : > { %3167 = vmatmul.bf16.vlgmr.msra.gmra.mxu2 %v4022_v5 }
 0x2c1   : > { %v2991_v18 = vpop.f32.mrf.mxu3  ;;  %3321 = vmatpush.bf16.msrb.mxu1 %v4523_v46 }
 0x2c2   : > { %v6013_v58 = vadd.f32 %v2991_v18, %v5960_v23 }
 0x2c3   : > { %v3084_v21 = vpop.f32.mrf.mxu2 }
 0x2c9   : > { %v2993_v48 = vpop.f32.mrf.mxu3 }
 0x2ca   : > { %v6016_v7 = vadd.f32 %v2993_v48, %v5963_v13 }
 0x2cb   : > { %v3086_v32 = vpop.f32.mrf.mxu2 }
 0x2ce   : > { %3191 = vmatmul.bf16.gmra.mxu3 %v3846_v51 }
 0x2d1   : > { %v2996_v31 = vpop.f32.mrf.mxu3 }
 0x2d2   : > { %v6019_v42 = vadd.f32 %v2996_v31, %v5966_v19 }
 0x2d3   : > { %v3089_v1 = vpop.f32.mrf.mxu2 }
 0x2d9   : > { %v2998_v60 = vpop.f32.mrf.mxu3 }
 0x2da   : > { %v6022_v23 = vadd.f32 %v2998_v60, %v5969_v39 }
 0x2db   : > { %v3091_v59 = vpop.f32.mrf.mxu2 }
 0x2de   : > { %3196 = vmatmul.bf16.gmra.mxu3 %v3882_v62 }
 0x2e1   : > { %v3001_v12 = vpop.f32.mrf.mxu3 }
 0x2e2   : > { %v6025_v13 = vadd.f32 %v3001_v12, %v5972_v0 }
 0x2e9   : > { %v3003_v14 = vpop.f32.mrf.mxu3 }
 0x2ea   : > { %v6028_v19 = vadd.f32 %v3003_v14, %v5975_v26 }
 0x2ee   : > { %3201 = vmatmul.bf16.gmra.mxu3 %v3918_v27 }
 0x2f1   : > { %v3006_v10 = vpop.f32.mrf.mxu3 }
 0x2f2   : > { %v6031_v39 = vadd.f32 %v3006_v10, %v5978_v40 }
 0x2f9   : > { %v3008_v11 = vpop.f32.mrf.mxu3 }
 0x2fa   : > { %v6034_v0 = vadd.f32 %v3008_v11, %v5981_v43  ;;  %v3035_v43 = vpop.f32.mrf.mxu1 }
 0x2fb   : > { %v3036_v31 = vadd.f32 %v3035_v43, %v6001_v34 }
 0x2fd   : > { %v3085_v8 = vadd.f32 %v3084_v21, %v3036_v31 }
 0x2fe   : > { %3206 = vmatmul.bf16.gmra.mxu3 %v3954_v2 }
 0x301   : > { %v3011_v26 = vpop.f32.mrf.mxu3 }
 0x302   : > { %v6037_v4 = vadd.f32 %v3011_v26, %v5985_v52  ;;  %v3133_v52 = vpop.f32.mrf.mxu0  ;;  %v3037_v47 = vpop.f32.mrf.mxu1 }
 0x303   : > { %v3038_v60 = vadd.f32 %v3037_v47, %v6008_v54  ;;  %v3134_v12 = vadd.f32 %v3133_v52, %v3085_v8 }
 0x305   : > { %v3087_v36 = vadd.f32 %v3086_v32, %v3038_v60 }
 0x309   : > { %v3013_v40 = vpop.f32.mrf.mxu3 }
 0x30a   : > { %v6040_v35 = vadd.f32 %v3013_v40, %v5989_v29  ;;  %v4026_v29 = vor.u32 %v4450_v61, %v4025_v22  ;;  %v3135_v57 = vpop.f32.mrf.mxu0  ;;  %v3040_v38 = vpop.f32.mrf.mxu1 }
 0x30b   : > { %v3136_v14 = vadd.f32 %v3135_v57, %v3087_v36  ;;  %v3041_v34 = vadd.f32 %v3040_v38, %v6013_v58 }
 0x30d   : > { %v3090_v54 = vadd.f32 %v3089_v1, %v3041_v34 }
 0x30e   : > { %3211 = vmatmul.bf16.gmra.mxu3 %v3990_v28 }
 0x311   : > { %v3016_v37 = vpop.f32.mrf.mxu3 }
 0x312   : > { %v6043_v45 = vadd.f32 %v3016_v37, %v5993_v56  ;;  %v3094_v56 = vpop.f32.mrf.mxu2  ;;  %v3138_v49 = vpop.f32.mrf.mxu0 }
 0x313   : > { %v3042_v53 = vpop.f32.mrf.mxu1  ;;  %v3139_v26 = vadd.f32 %v3138_v49, %v3090_v54 }
 0x314   : > { %v3043_v25 = vadd.f32 %v3042_v53, %v6016_v7 }
 0x316   : > { %v3092_v2 = vadd.f32 %v3091_v59, %v3043_v25 }
 0x319   : > { %v3018_v50 = vpop.f32.mrf.mxu3 }
 0x31a   : > { %v6046_v3 = vadd.f32 %v3018_v50, %v5997_v24  ;;  %v3096_v51 = vpop.f32.mrf.mxu2  ;;  %v3140_v9 = vpop.f32.mrf.mxu0 }
 0x31b   : > { %v3045_v62 = vpop.f32.mrf.mxu1  ;;  %v3141_v40 = vadd.f32 %v3140_v9, %v3092_v2 }
 0x31c   : > { %v3046_v58 = vadd.f32 %v3045_v62, %v6019_v42 }
 0x31e   : > { %3216 = vmatmul.bf16.gmra.mxu3 %v4026_v29  ;;  %v3095_v1 = vadd.f32 %v3094_v56, %v3046_v58 }
 0x321   : > { %v3021_v5 = vpop.f32.mrf.mxu3 }
 0x322   : > { %v6049_v18 = vadd.f32 %v3021_v5, %v6004_v44  ;;  %v3099_v44 = vpop.f32.mrf.mxu2  ;;  %v3143_v10 = vpop.f32.mrf.mxu0 }
 0x323   : > { %v3047_v11 = vpop.f32.mrf.mxu1  ;;  %v3144_v29 = vadd.f32 %v3143_v10, %v3095_v1 }
 0x324   : > { %v3048_v7 = vadd.f32 %v3047_v11, %v6022_v23 }
 0x326   : > { %v3097_v22 = vadd.f32 %v3096_v51, %v3048_v7 }
 0x329   : > { %v3023_v48 = vpop.f32.mrf.mxu3 }
 0x32a   : > { %v6052_v6 = vadd.f32 %v3023_v48, %v6010_v20  ;;  %v3101_v16 = vpop.f32.mrf.mxu2  ;;  %v3145_v41 = vpop.f32.mrf.mxu0 }
 0x32b   : > { %v3050_v33 = vpop.f32.mrf.mxu1  ;;  %v3146_v38 = vadd.f32 %v3145_v41, %v3097_v22 }
 0x32c   : > { %v3051_v60 = vadd.f32 %v3050_v33, %v6025_v13 }
 0x32e   : > { %v3100_v9 = vadd.f32 %v3099_v44, %v3051_v60 }
 0x331   : > { %v3182_v24 = vpop.f32.mrf.mxu3 }
 0x332   : > { %v3183_v17 = vadd.f32 %v3182_v24, %v3134_v12  ;;  %v3104_v43 = vpop.f32.mrf.mxu2  ;;  %v3148_v47 = vpop.f32.mrf.mxu0 }
 0x333   : > { %v3052_v59 = vpop.f32.mrf.mxu1  ;;  %v3149_v62 = vadd.f32 %v3148_v47, %v3100_v9 }
 0x334   : > { %v3222_v27 = vmax.f32 %v3183_v17, 0.0  ;;  %v3053_v23 = vadd.f32 %v3052_v59, %v6028_v19 }
 0x336   : > { %v3102_v51 = vadd.f32 %v3101_v16, %v3053_v23 }
 0x339   : > { %v3184_v15 = vpop.f32.mrf.mxu3 }
 0x33a   : > { %v3185_v30 = vadd.f32 %v3184_v15, %v3136_v14  ;;  %v3106_v61 = vpop.f32.mrf.mxu2  ;;  %v3150_v48 = vpop.f32.mrf.mxu0 }
 0x33b   : > { %v3055_v24 = vpop.f32.mrf.mxu1  ;;  %v3151_v14 = vadd.f32 %v3150_v48, %v3102_v51 }
 0x33c   : > { %v3223_v20 = vmax.f32 %v3185_v30, 0.0  ;;  %v3056_v13 = vadd.f32 %v3055_v24, %v6031_v39 }
 0x33e   : > { %v3238_v63 = vpack.c.bf16 %v3223_v20, %v3222_v27 }
 0x340   : > { %3322 = vmatmul.bf16.vlgmr.msrb.gmra.mxu1 %v3238_v63 }
 0x341   : > { %v3187_v21 = vpop.f32.mrf.mxu3 }
 0x342   : > { %v3188_v32 = vadd.f32 %v3187_v21, %v3139_v26  ;;  %v3109_v42 = vpop.f32.mrf.mxu2  ;;  %v3153_v36 = vpop.f32.mrf.mxu0  ;;  %v3105_v21 = vadd.f32 %v3104_v43, %v3056_v13 }
 0x343   : > { %v3057_v12 = vpop.f32.mrf.mxu1 }
 0x344   : > { %v3224_v37 = vmax.f32 %v3188_v32, 0.0  ;;  %v3058_v19 = vadd.f32 %v3057_v12, %v6034_v0  ;;  %v3154_v25 = vadd.f32 %v3153_v36, %v3105_v21 }
 0x346   : > { %v3107_v54 = vadd.f32 %v3106_v61, %v3058_v19 }
 0x349   : > { %v3189_v55 = vpop.f32.mrf.mxu3 }
 0x34a   : > { %v3190_v28 = vadd.f32 %v3189_v55, %v3141_v40  ;;  %v3111_v15 = vpop.f32.mrf.mxu2  ;;  %v3155_v11 = vpop.f32.mrf.mxu0 }
 0x34b   : > { %v3060_v34 = vpop.f32.mrf.mxu1  ;;  %v3156_v26 = vadd.f32 %v3155_v11, %v3107_v54 }
 0x34c   : > { %v3225_v46 = vmax.f32 %v3190_v28, 0.0  ;;  %v3061_v39 = vadd.f32 %v3060_v34, %v6037_v4 }
 0x34e   : > { %v3239_v52 = vpack.c.bf16 %v3225_v46, %v3224_v37  ;;  %v3110_v43 = vadd.f32 %v3109_v42, %v3061_v39  ;;  %v564_v39 = vld [vmem:[%s5443_s5 + $0x8] sm:$0xff]  }
 0x350   : > { %3327 = vmatmul.bf16.gmra.mxu1 %v3239_v52 }
 0x351   : > { %v3192_v50 = vpop.f32.mrf.mxu3 }
 0x352   : > { %v3193_v57 = vadd.f32 %v3192_v50, %v3144_v29  ;;  %v3114_v16 = vpop.f32.mrf.mxu2  ;;  %v3158_v41 = vpop.f32.mrf.mxu0 }
 0x353   : > { %v3062_v33 = vpop.f32.mrf.mxu1  ;;  %v3159_v1 = vadd.f32 %v3158_v41, %v3110_v43  ;;  %v3365_v43 = vunpack.c.l.bf16 %v564_v39 }
 0x354   : > { %v3226_v53 = vmax.f32 %v3193_v57, 0.0  ;;  %v3063_v0 = vadd.f32 %v3062_v33, %v6040_v35 }
 0x356   : > { %v3112_v47 = vadd.f32 %v3111_v15, %v3063_v0  ;;  %v3366_v0 = vunpack.c.h.bf16 %v564_v39 }
 0x359   : > { %v3194_v5 = vpop.f32.mrf.mxu3 }
 0x35a   : > { %v3195_v49 = vadd.f32 %v3194_v5, %v3146_v38  ;;  %v3116_v37 = vpop.f32.mrf.mxu2  ;;  %v3160_v58 = vpop.f32.mrf.mxu0 }
 0x35b   : > { %v3065_v50 = vpop.f32.mrf.mxu1  ;;  %v3161_v22 = vadd.f32 %v3160_v58, %v3112_v47 }
 0x35c   : > { %v3227_v31 = vmax.f32 %v3195_v49, 0.0  ;;  %v3066_v4 = vadd.f32 %v3065_v50, %v6043_v45 }
 0x35e   : > { %v3240_v8 = vpack.c.bf16 %v3227_v31, %v3226_v53  ;;  %v3115_v35 = vadd.f32 %v3114_v16, %v3066_v4 }
 0x360   : > { %3332 = vmatmul.bf16.gmra.mxu1 %v3240_v8 }
 0x361   : > { %v3197_v56 = vpop.f32.mrf.mxu3 }
 0x362   : > { %v3198_v17 = vadd.f32 %v3197_v56, %v3149_v62  ;;  %v3119_v7 = vpop.f32.mrf.mxu2  ;;  %v3163_v5 = vpop.f32.mrf.mxu0 }
 0x363   : > { %v3067_v48 = vpop.f32.mrf.mxu1  ;;  %v3164_v42 = vadd.f32 %v3163_v5, %v3115_v35 }
 0x364   : > { %v3228_v20 = vmax.f32 %v3198_v17, 0.0  ;;  %v3068_v24 = vadd.f32 %v3067_v48, %v6046_v3 }
 0x366   : > { %v3117_v8 = vadd.f32 %v3116_v37, %v3068_v24 }
 0x369   : > { %v3199_v30 = vpop.f32.mrf.mxu3 }
 0x36a   : > { %v3200_v27 = vadd.f32 %v3199_v30, %v3151_v14  ;;  %v3121_v53 = vpop.f32.mrf.mxu2  ;;  %v3165_v60 = vpop.f32.mrf.mxu0 }
 0x36b   : > { %v3166_v9 = vadd.f32 %v3165_v60, %v3117_v8  ;;  %v3070_v23 = vpop.f32.mrf.mxu1 }
 0x36c   : > { %v3229_v10 = vmax.f32 %v3200_v27, 0.0  ;;  %v3071_v15 = vadd.f32 %v3070_v23, %v6049_v18  ;;  %v6073_v18 = vld [vmem:[%s6305_s27] ss:$0 sm:$0xff] }
 0x36e   : > { %v3241_v63 = vpack.c.bf16 %v3229_v10, %v3228_v20  ;;  %v3120_v27 = vadd.f32 %v3119_v7, %v3071_v15  ;;  %v570_v15 = vld [vmem:[%s5443_s5 + $0x20] sm:$0xff]  }
 0x370   : > { %3337 = vmatmul.bf16.gmra.mxu1 %v3241_v63 }
 0x371   : > { %v3202_v44 = vpop.f32.mrf.mxu3 }
 0x372   : > { %v3203_v2 = vadd.f32 %v3202_v44, %v3154_v25  ;;  %v3168_v62 = vpop.f32.mrf.mxu2 }
 0x373   : > { %v3072_v30 = vpop.f32.mrf.mxu1  ;;  %v3169_v63 = vadd.f32 %v3168_v62, %v3120_v27  ;;  %v3371_v27 = vunpack.c.l.bf16 %v570_v15 }
 0x374   : > { %v3230_v55 = vmax.f32 %v3203_v2, 0.0  ;;  %v3073_v3 = vadd.f32 %v3072_v30, %v6052_v6  ;;  %v562_v6 = vld [vmem:[%s5443_s5] sm:$0xff]  }
 0x375   : > { %v3363_v2 = vunpack.c.l.bf16 %v562_v6 }
 0x376   : > { %v3122_v10 = vadd.f32 %v3121_v53, %v3073_v3  ;;  %v3372_v3 = vunpack.c.h.bf16 %v570_v15 }
 0x379   : > { %v3204_v32 = vpop.f32.mrf.mxu3 }
 0x37a   : > { %v3205_v40 = vadd.f32 %v3204_v32, %v3156_v26  ;;  %v3170_v20 = vpop.f32.mrf.mxu2  ;;  %v3364_v26 = vunpack.c.h.bf16 %v562_v6 }
 0x37b   : > { %v3171_v11 = vadd.f32 %v3170_v20, %v3122_v10 }
 0x37c   : > { %v3231_v28 = vmax.f32 %v3205_v40, 0.0 }
 0x37e   : > { %v3242_v46 = vpack.c.bf16 %v3231_v28, %v3230_v55 }
 0x380   : > { %3342 = vmatmul.bf16.gmra.mxu1 %v3242_v46 }
 0x381   : > { %v3207_v52 = vpop.f32.mrf.mxu3 }
 0x382   : > { %v3208_v59 = vadd.f32 %v3207_v52, %v3159_v1 }
 0x384   : > { %v3232_v57 = vmax.f32 %v3208_v59, 0.0 }
 0x389   : > { %v3209_v61 = vpop.f32.mrf.mxu3 }
 0x38a   : > { %v3210_v29 = vadd.f32 %v3209_v61, %v3161_v22 }
 0x38c   : > { %v3233_v38 = vmax.f32 %v3210_v29, 0.0  ;;  %v566_v29 = vld [vmem:[%s5443_s5 + $0x10] sm:$0xff]  }
 0x38d   : > { %v3368_v5 = vunpack.c.h.bf16 %v566_v29 }
 0x38e   : > { %v3243_v49 = vpack.c.bf16 %v3233_v38, %v3232_v57  ;;  %v3367_v38 = vunpack.c.l.bf16 %v566_v29 }
 0x390   : > { %3347 = vmatmul.bf16.gmra.mxu1 %v3243_v49 }
 0x391   : > { %v3212_v31 = vpop.f32.mrf.mxu3 }
 0x392   : > { %v3213_v56 = vadd.f32 %v3212_v31, %v3164_v42  ;;  %v568_v42 = vld [vmem:[%s5443_s5 + $0x18] sm:$0xff]  }
 0x394   : > { %v3234_v12 = vmax.f32 %v3213_v56, 0.0  ;;  %v3369_v56 = vunpack.c.l.bf16 %v568_v42 }
 0x399   : > { %v3214_v51 = vpop.f32.mrf.mxu3 }
 0x39a   : > { %v3215_v36 = vadd.f32 %v3214_v51, %v3166_v9  ;;  %v3370_v9 = vunpack.c.h.bf16 %v568_v42 }
 0x39c   : > { %v3235_v17 = vmax.f32 %v3215_v36, 0.0 }
 0x39e   : > { %v3244_v14 = vpack.c.bf16 %v3235_v17, %v3234_v12 }
 0x3a0   : > { %3352 = vmatmul.bf16.gmra.mxu1 %v3244_v14 }
 0x3a1   : > { %v3217_v45 = vpop.f32.mrf.mxu3 }
 0x3a2   : > { %v3218_v13 = vadd.f32 %v3217_v45, %v3169_v63 }
 0x3a4   : > { %v3236_v21 = vmax.f32 %v3218_v13, 0.0 }
 0x3a9   : > { %v3219_v34 = vpop.f32.mrf.mxu3 }
 0x3aa   : > { %v3220_v44 = vadd.f32 %v3219_v34, %v3171_v11 }
 0x3ac   : > { %v3237_v19 = vmax.f32 %v3220_v44, 0.0 }
 0x3ae   : > { %v3245_v16 = vpack.c.bf16 %v3237_v19, %v3236_v21  ;;  %v572_v19 = vld [vmem:[%s5443_s5 + $0x28] sm:$0xff]  }
 0x3af   : > { %v3374_v6 = vunpack.c.h.bf16 %v572_v19 }
 0x3b0   : > { %3357 = vmatmul.bf16.gmra.mxu1 %v3245_v16 }
 0x3bd   : > { %v3323_v54 = vpop.f32.mrf.mxu1 }
 0x3be   : > { %v3324_v25 = vadd.f32 %v6073_v18, %v3323_v54  ;;  %v3373_v54 = vunpack.c.l.bf16 %v572_v19 }
 0x3c0   : > { %v3379_v32 = vadd.f32 %v3363_v2, %v3324_v25 }
 0x3c2   : > { %v3395_v55 = vmax.f32 %v3379_v32, 0.0 }
 0x3c5   : > { %v3325_v41 = vpop.f32.mrf.mxu1 }
 0x3c6   : > { %v3326_v40 = vadd.f32 %v6073_v18, %v3325_v41 }
 0x3c8   : > { %v3380_v33 = vadd.f32 %v3364_v26, %v3326_v40 }
 0x3ca   : > { %v3396_v28 = vmax.f32 %v3380_v33, 0.0 }
 0x3cc   : > { %v4535_v37 = vpack.c.bf16 %v3396_v28, %v3395_v55  ;;  %v574_v28 = vld [vmem:[%s5443_s5 + $0x30] sm:$0xff]  }
 0x3cd   : > { %v3328_v46 = vpop.f32.mrf.mxu1  ;;  %v3376_v39 = vunpack.c.h.bf16 %v574_v28 }
 0x3ce   : > { %4536 = vst [vmem:[%s6080_s24] sm:$0xff] %v4535_v37   ;;  %v3329_v52 = vadd.f32 %v6073_v18, %v3328_v46  ;;  %v3375_v46 = vunpack.c.l.bf16 %v574_v28 }
 0x3d0   : > { %v3381_v47 = vadd.f32 %v3365_v43, %v3329_v52 }
 0x3d2   : > { %v3397_v7 = vmax.f32 %v3381_v47, 0.0 }
 0x3d5   : > { %v3330_v58 = vpop.f32.mrf.mxu1 }
 0x3d6   : > { %v3331_v50 = vadd.f32 %v6073_v18, %v3330_v58 }
 0x3d8   : > { %v3382_v1 = vadd.f32 %v3366_v0, %v3331_v50 }
 0x3da   : > { %v3398_v59 = vmax.f32 %v3382_v1, 0.0 }
 0x3dc   : > { %v4540_v22 = vpack.c.bf16 %v3398_v59, %v3397_v7  ;;  %v576_v59 = vld [vmem:[%s5443_s5 + $0x38] sm:$0xff]   ;;  %s3461_s5 = sshll.u32 %s3458_s30, 4  ;;  %s3462_s5 = int_to_ptr.hbm [resolvable:$true] %s3461_s5 }
 0x3dd   : > { %v3333_v61 = vpop.f32.mrf.mxu1  ;;  %v3378_v29 = vunpack.c.h.bf16 %v576_v59  ;;  %s4963_s10 = sshra.s32 %s3462_s5, 4  ;;  %s4964_s10 = int_to_ptr.hbm [resolvable:$true] %s4963_s10 }
 0x3de   : > { %4572 = vst [vmem:[%s6080_s24 + $0x8] sm:$0xff] %v4540_v22   ;;  %v3334_v57 = vadd.f32 %v6073_v18, %v3333_v61  ;;  %v3377_v61 = vunpack.c.l.bf16 %v576_v59  ;;  %s4965_s18 = scalar_lea.hbm %s4964_s10, 64  ;;  %p4970_p0 = scmp.lt.s32.totalorder %s4964_s10, %s6307_s9 }
 0x3df   : > { %p4966_p2 = scmp.ne.s32.totalorder %s4964_s10, %s4965_s18  ;;  %p4971_p4 = scmp.lt.s32.totalorder %s4969_s25, %s4965_s18 }
 0x3e0   : > { %v3383_v48 = vadd.f32 %v3367_v38, %v3334_v57 }
 0x3e1   : > { %p4967_p8 = pnand %p4966_p2, %p5374_p5  ;;  %p4972_p10 = por %p4971_p4, %p4970_p0 }
 0x3e2   : > { %v3399_v31 = vmax.f32 %v3383_v48, 0.0 }
 0x3e3   : > { %p4968_p9 = pneg %p4967_p8 }
 0x3e5   : > { %v3335_v49 = vpop.f32.mrf.mxu1  ;;  %p4973_p13 = pnand %p4972_p10, %p4968_p9 }
 0x3e6   : > { %v3336_v4 = vadd.f32 %v6073_v18, %v3335_v49 }
 0x3e8   : > { %v3384_v53 = vadd.f32 %v3368_v5, %v3336_v4 }
 0x3ea   : > { %v3400_v35 = vmax.f32 %v3384_v53, 0.0 }
 0x3ec   : > { %v4545_v24 = vpack.c.bf16 %v3400_v35, %v3399_v31 }
 0x3ed   : > { %v3338_v8 = vpop.f32.mrf.mxu1 }
 0x3ee   : > { %4573 = vst [vmem:[%s6080_s24 + $0x10] sm:$0xff] %v4545_v24   ;;  %v3339_v60 = vadd.f32 %v6073_v18, %v3338_v8 }
 0x3f0   : > { %v3385_v51 = vadd.f32 %v3369_v56, %v3339_v60 }
 0x3f2   : > { %v3401_v12 = vmax.f32 %v3385_v51, 0.0 }
 0x3f5   : > { %v3340_v23 = vpop.f32.mrf.mxu1 }
 0x3f6   : > { %v3341_v36 = vadd.f32 %v6073_v18, %v3340_v23 }
 0x3f8   : > { %v3386_v62 = vadd.f32 %v3370_v9, %v3341_v36 }
 0x3fa   : > { %v3402_v17 = vmax.f32 %v3386_v62, 0.0 }
 0x3fc   : > { %v4550_v14 = vpack.c.bf16 %v3402_v17, %v3401_v12 }
 0x3fd   : > { %v3343_v45 = vpop.f32.mrf.mxu1 }
 0x3fe   : > { %4574 = vst [vmem:[%s6080_s24 + $0x18] sm:$0xff] %v4550_v14   ;;  %v3344_v30 = vadd.f32 %v6073_v18, %v3343_v45 }
 0x400   : > { %v3387_v10 = vadd.f32 %v3371_v27, %v3344_v30 }
 0x402   : > { %v3403_v13 = vmax.f32 %v3387_v10, 0.0 }
 0x405   : > { %v3345_v20 = vpop.f32.mrf.mxu1 }
 0x406   : > { %v3346_v63 = vadd.f32 %v6073_v18, %v3345_v20 }
 0x408   : > { %v3388_v11 = vadd.f32 %v3372_v3, %v3346_v63 }
 0x40a   : > { %v3404_v34 = vmax.f32 %v3388_v11, 0.0 }
 0x40c   : > { %v4555_v44 = vpack.c.bf16 %v3404_v34, %v3403_v13 }
 0x40d   : > { %v3348_v21 = vpop.f32.mrf.mxu1 }
 0x40e   : > { %4575 = vst [vmem:[%s6080_s24 + $0x20] sm:$0xff] %v4555_v44   ;;  %v3349_v16 = vadd.f32 %v6073_v18, %v3348_v21 }
 0x410   : > { %v3389_v2 = vadd.f32 %v3373_v54, %v3349_v16 }
 0x412   : > { %v3405_v32 = vmax.f32 %v3389_v2, 0.0 }
 0x415   : > { %v3350_v25 = vpop.f32.mrf.mxu1 }
 0x416   : > { %v3351_v26 = vadd.f32 %v6073_v18, %v3350_v25 }
 0x418   : > { %v3390_v41 = vadd.f32 %v3374_v6, %v3351_v26 }
 0x41a   : > { %v3406_v40 = vmax.f32 %v3390_v41, 0.0 }
 0x41c   : > { %v4560_v33 = vpack.c.bf16 %v3406_v40, %v3405_v32 }
 0x41d   : > { %v3353_v55 = vpop.f32.mrf.mxu1 }
 0x41e   : > { %4576 = vst [vmem:[%s6080_s24 + $0x28] sm:$0xff] %v4560_v33   ;;  %v3354_v37 = vadd.f32 %v6073_v18, %v3353_v55 }
 0x420   : > { %v3391_v43 = vadd.f32 %v3375_v46, %v3354_v37 }
 0x422   : > { %v3407_v47 = vmax.f32 %v3391_v43, 0.0 }
 0x425   : > { %v3355_v52 = vpop.f32.mrf.mxu1 }
 0x426   : > { %v3356_v0 = vadd.f32 %v6073_v18, %v3355_v52 }
 0x428   : > { %v3392_v58 = vadd.f32 %v3376_v39, %v3356_v0 }
 0x42a   : > { %v3408_v50 = vmax.f32 %v3392_v58, 0.0 }
 0x42c   : > { %v4565_v1 = vpack.c.bf16 %v3408_v50, %v3407_v47 }
 0x42d   : > { %v3358_v7 = vpop.f32.mrf.mxu1 }
 0x42e   : > { %4577 = vst [vmem:[%s6080_s24 + $0x30] sm:$0xff] %v4565_v1   ;;  %v3359_v22 = vadd.f32 %v6073_v18, %v3358_v7 }
 0x430   : > { %v3393_v38 = vadd.f32 %v3377_v61, %v3359_v22 }
 0x432   : > { %v3409_v48 = vmax.f32 %v3393_v38, 0.0 }
 0x435   : > { %v3360_v57 = vpop.f32.mrf.mxu1 }
 0x436   : > { %v3361_v5 = vadd.f32 %v6073_v18, %v3360_v57 }
 0x438   : > { %v3394_v49 = vadd.f32 %v3378_v29, %v3361_v5 }
 0x43a   : > { %v3410_v4 = vmax.f32 %v3394_v49, 0.0 }
 0x43c   : > { %v4570_v53 = vpack.c.bf16 %v3410_v4, %v3409_v48 }
 0x43e   : > { %4578 = vst [vmem:[%s6080_s24 + $0x38] sm:$0xff] %v4570_v53  }
 0x43f   : > { %4976 = shalt.err (!%p4973_p13)
}
 0x440   : > { %s5118_s12 = smov 64   ;;  %s5119_s1 = smov 4  }
 0x441   : > { %4613 = dma.vmem_to_hbm [thread:$0]  (%p5374_p5), %s3460_s23, 1024, %s3462_s5, %s3444_s14, %s5118_s12, %s5118_s12, %s5119_s1  }
 0x442 PF: > { %p4646_p12 = scmp.ge.s32.totalorder %s5111_s22, 2  ;;  %s3476_s13 = sand.u32 1, %s5083_s15  }
 0x443   : > { %s3477_s27 = scalar_lea.sflag [#allocation6], %s3476_s13 }
 0x444   : > { %p4636_p7 = pnand %p4646_p12, %p5378_p11 }
 0x446   : > { %p4637_p6 = pneg %p4636_p7 }
 0x448   : > { %5054 = dma.done.wait (%p4637_p6), %s3477_s27, 1024  }
 0x449   : > { %5056 = vsyncadd (%p4637_p6), %s3477_s27, 4294966272  ;;  %s30_s22 = sadd.s32 1, %s5111_s22   ;;  %s6309_s30 = sld [smem:[#allocation23_spill]] }
 0x44a   : > { %p6133_p1 = scmp.ge.s32.totalorder %s30_s22, 6   ;;  %s6310_s12 = sld [smem:[#allocation24_spill]] }
 0x44b   : > { %s6311_s13 = sld [smem:[#allocation25_spill]]  ;;  %s6319_s10 = smov %s5067_s11 }
 0x44c   : > { %s6312_s14 = sld [smem:[#allocation37_spill]]  ;;  %s6320_s11 = smov %s5420_s26 }
 0x44d   : > { %s6313_s4 = sld [smem:[#allocation26_spill]]  ;;  %s6321_s15 = smov %s5087_s16 }
 0x44e   : > { %s6314_s17 = sld [smem:[#allocation38_spill]] }
 0x44f   : > { %s6315_s18 = sld [smem:[#allocation29_spill]]  ;;  %29 = sbr.rel (!%p6133_p1) target bundleno = 25 (0x19), region = 137 }
 0x450   : > { %s6316_s19 = sld [smem:[#allocation30_spill]] }
 0x451   : > { %s6317_s20 = sld [smem:[#allocation32_spill]] }
 0x452   : > { %s6318_s21 = sld [smem:[#allocation33_spill]] }
 0x453   : > { %s6322_s16 = smov %s6313_s4 }
 0x454   :  { %3483 = vsyncpa [#allocation5], 1 }
 0x455   :  { %3485 = vsyncpa [#allocation5 + $0x1], 1 }
 0x456   :  { %3486 = vsyncpa [#allocation8], 1 }
 0x457   :  { %3488 = vsyncpa [#allocation8 + $0x1], 1 }
 0x458   :  { %3489 = vsyncpa [#allocation11], 1 }
 0x459   :  { %3490 = vsyncpa [#allocation14], 1 }
 0x45a   :  { %3491 = vsyncpa [#allocation6], 1 }
 0x45b   :  { %3493 = vsyncpa [#allocation6 + $0x1], 1 }

</bundles_post_ra>
